<compile_context>
chip_gen: v7x
topology: tpu7x:2x2x1
jax: 0.10.0
libtpu: 0.0.40
codegen_flags: <defaults>
</compile_context>

<pallas_src>
import functools

import jax
import jax.numpy as jnp
from jax.experimental import pallas as pl
from jax.experimental.pallas import tpu as pltpu

EPS = 1e-5


# ---------------------------------------------------------------------------
# Fused kernel: whole ResidualBlock forward in VMEM.
# ---------------------------------------------------------------------------
def _residual_block_kernel(*refs, stride, N, Ho, Wo, Cin, Cout, has_proj):
    if has_proj:
        (xq_ref, w1_ref, w2_ref,
         g1_ref, b1_ref, g2_ref, b2_ref, gs_ref, bs_ref,
         o_ref, h1p_ref) = refs
    else:
        (xq_ref, w1_ref, w2_ref,
         g1_ref, b1_ref, g2_ref, b2_ref,
         o_ref, h1p_ref) = refs
        gs_ref = bs_ref = None

    M = N * Ho * Wo
    inv_m = 1.0 / M
    s = stride

    def x_tap(di, dj):
        # x_pad[n, di + s*i, dj + s*j, :] for i < Ho, j < Wo, read as a
        # contiguous static slice of stride-parity component p = (di%s, dj%s).
        p = (di % s) * s + (dj % s)
        oi, oj = di // s, dj // s
        return xq_ref[p * N:(p + 1) * N, oi:oi + Ho, oj:oj + Wo, :]

    def h_tap(di, dj):
        return h1p_ref[:, di:di + Ho, dj:dj + Wo, :]

    def im2col(tap_fn, cin):
        # (M, 9*cin) bf16 patch matrix built in VMEM (never materialised in
        # HBM).  Column order = tap-major / cin-minor, matching the wrapper's
        # (9*cin, Cout) weight reshape.
        taps = [tap_fn(t // 3, t % 3) for t in range(9)]
        return jnp.concatenate(taps, axis=-1).reshape(M, 9 * cin)

    def batchnorm(y, g_ref, b_ref):
        # Training-mode BN, two-pass (mean, then centred variance), all f32.
        mean = jnp.sum(y, axis=0, keepdims=True) * inv_m
        d = y - mean
        var = jnp.sum(d * d, axis=0, keepdims=True) * inv_m
        return g_ref[...] * (d * jax.lax.rsqrt(var + EPS)) + b_ref[...]

    # --- conv1 (3x3, stride) [+ folded 1x1 projection skip]: one big-K dot.
    xpatch = im2col(x_tap, Cin)                              # (M, 9*Cin) bf16
    y1s = jnp.dot(xpatch, w1_ref[...], preferred_element_type=jnp.float32)

    # --- BN1 + ReLU -> h1 stays resident (bf16 halo scratch for conv2 taps).
    h1 = jnp.maximum(batchnorm(y1s[:, :Cout], g1_ref, b1_ref), 0.0)

    # Zero only the 1-pixel halo (4 thin stores), then one interior store.
    zrow = jnp.zeros((N, 1, Wo + 2, Cout), jnp.bfloat16)
    zcol = jnp.zeros((N, Ho, 1, Cout), jnp.bfloat16)
    h1p_ref[:, 0:1, :, :] = zrow
    h1p_ref[:, Ho + 1:Ho + 2, :, :] = zrow
    h1p_ref[:, 1:1 + Ho, 0:1, :] = zcol
    h1p_ref[:, 1:1 + Ho, Wo + 1:Wo + 2, :] = zcol
    h1p_ref[:, 1:1 + Ho, 1:1 + Wo, :] = (
        h1.reshape(N, Ho, Wo, Cout).astype(jnp.bfloat16))

    # --- conv2 (3x3, stride 1) + BN2: one big-K dot.
    hpatch = im2col(h_tap, Cout)                             # (M, 9*Cout) bf16
    y2 = jnp.dot(hpatch, w2_ref[...], preferred_element_type=jnp.float32)
    res = batchnorm(y2, g2_ref, b2_ref)

    # --- skip branch.
    if has_proj:
        # Projection result rides along in the extra columns of the conv1 dot.
        skip = batchnorm(y1s[:, Cout:], gs_ref, bs_ref)
    else:
        # Identity skip: centre tap of x on the output grid (bf16-rounded).
        skip = xpatch[:, 4 * Cin:5 * Cin].astype(jnp.float32)

    # --- residual add + final ReLU, single store.
    # TODO(synk): present the output lane-dense as (N*Ho, Wo*Cout) (and
    # channel-block the intermediates) once a cross-layer layout contract
    # makes the repack worthwhile at production channel counts.
    o_ref[...] = jnp.maximum(res + skip, 0.0)


# ---------------------------------------------------------------------------
# VMEM footprint guardrail (whole-block-resident structure).
# ---------------------------------------------------------------------------
def _vmem_footprint_bytes(N, H, W, Ho, Wo, Cin, Cout, stride, has_proj):
    M = N * Ho * Wo
    hq, wq = (H + 2) // stride, (W + 2) // stride
    xq = stride * stride * N * hq * wq * Cin * 2              # bf16 input
    w1 = 9 * Cin * (2 * Cout if has_proj else Cout) * 2
    w2 = 9 * Cout * Cout * 2
    bn = (6 if has_proj else 4) * Cout * 4
    out = M * Cout * 4
    scratch = N * (Ho + 2) * (Wo + 2) * Cout * 2              # bf16 halo scratch
    patches = M * 9 * Cin * 2 + M * 9 * Cout * 2              # bf16 im2col
    live_f32 = 4 * M * Cout * 4                               # y1s/h1/y2/res-ish
    # BlockSpec double-buffers inputs/outputs; ignores per-vreg lane padding
    # of sub-128 channel dims, so treat as a lower bound.
    return 2 * (xq + w1 + w2 + bn + out) + scratch + patches + live_f32


# ---------------------------------------------------------------------------
# Wrapper: NCHW in / NCHW out (PyTorch convention).
# ---------------------------------------------------------------------------
def residual_block(x_nchw, params, stride):
    assert stride in (1, 2)
    x = jnp.transpose(x_nchw, (0, 2, 3, 1))                   # NHWC
    N, H, W, Cin = x.shape
    Cout = params["w1"].shape[-1]
    assert H % stride == 0 and W % stride == 0
    Ho = (H + 2 - 3) // stride + 1
    Wo = (W + 2 - 3) // stride + 1
    M = N * Ho * Wo
    has_proj = stride != 1
    if not has_proj:
        assert Cin == Cout, "identity skip requires Cin == Cout"

    # bf16 cast + spatial pad + stride-parity split: one XLA-fused HBM prep
    # pass producing xq (same total size as the padded input, half the bytes
    # of the old f32 version; no 9x im2col expansion in HBM).  Every 3x3 tap
    # and the strided 1x1 skip sampling then becomes a contiguous static
    # slice in VMEM.
    xp = jnp.pad(x.astype(jnp.bfloat16), ((0, 0), (1, 1), (1, 1), (0, 0)))
    comps = [xp[:, pi::stride, pj::stride, :]
             for pi in range(stride) for pj in range(stride)]
    xq = jnp.concatenate(comps, axis=0) if stride > 1 else xp

    # Conv1 weight as (9*Cin, Cout): rows tap-major / cin-minor == the im2col
    # column order.  For the projection block, fold the 1x1 skip weight in as
    # an extra Cout-wide column block living only on the centre-tap rows.
    w1r = params["w1"].reshape(9 * Cin, Cout)
    if has_proj:
        ws_big = jnp.zeros((9 * Cin, Cout), w1r.dtype)
        ws_big = ws_big.at[4 * Cin:5 * Cin, :].set(params["ws"].reshape(Cin, Cout))
        w1r = jnp.concatenate([w1r, ws_big], axis=1)
    w1r = w1r.astype(jnp.bfloat16)
    w2r = params["w2"].reshape(9 * Cout, Cout).astype(jnp.bfloat16)

    bn_names = ["g1", "b1", "g2", "b2"] + (["gs", "bs"] if has_proj else [])
    bn_params = [params[n].reshape(1, Cout).astype(jnp.float32) for n in bn_names]

    inputs = [xq, w1r, w2r] + bn_params
    in_specs = [
        pl.BlockSpec(xq.shape, lambda i: (0, 0, 0, 0)),
        pl.BlockSpec(w1r.shape, lambda i: (0, 0)),
        pl.BlockSpec(w2r.shape, lambda i: (0, 0)),
    ] + [pl.BlockSpec((1, Cout), lambda i: (0, 0)) for _ in bn_params]

    footprint = _vmem_footprint_bytes(N, H, W, Ho, Wo, Cin, Cout, stride, has_proj)
    assert footprint < 40 * 1024 * 1024, (
        f"ResidualBlock VMEM footprint ~{footprint / 2**20:.1f} MiB too large "
        "for a single whole-block invocation")
    # TODO(synk): for larger batches / v7x megacore, switch to an M-tiled
    # two-phase BN pipeline (partial stats -> combine -> normalise) with the
    # M grid axis marked "parallel" so both TensorCores are used and tiles
    # double-buffer over HBM.

    kernel = functools.partial(
        _residual_block_kernel, stride=stride, N=N, Ho=Ho, Wo=Wo,
        Cin=Cin, Cout=Cout, has_proj=has_proj)

    out = pl.pallas_call(
        kernel,
        out_shape=jax.ShapeDtypeStruct((M, Cout), jnp.float32),
        grid=(1,),
        in_specs=in_specs,
        out_specs=pl.BlockSpec((M, Cout), lambda i: (0, 0)),
        scratch_shapes=[pltpu.VMEM((N, Ho + 2, Wo + 2, Cout), jnp.bfloat16)],
        compiler_params=pltpu.CompilerParams(
            dimension_semantics=("arbitrary",),
            vmem_limit_bytes=48 * 1024 * 1024),
    )(*inputs)

    return jnp.transpose(out.reshape(N, Ho, Wo, Cout), (0, 3, 1, 2))  # NCHW


# ---------------------------------------------------------------------------
# Pure-JAX reference (for correctness check).
# ---------------------------------------------------------------------------
def _ref_conv(x, w_hwio, stride, pad):
    return jax.lax.conv_general_dilated(
        x, w_hwio, (stride, stride), [(pad, pad), (pad, pad)],
        dimension_numbers=("NHWC", "HWIO", "NHWC"))


def _ref_bn(y, g, b):
    mean = y.mean(axis=(0, 1, 2))
    var = ((y - mean) ** 2).mean(axis=(0, 1, 2))
    return g * (y - mean) / jnp.sqrt(var + EPS) + b


def residual_block_ref(x_nchw, params, stride):
    x = jnp.transpose(x_nchw, (0, 2, 3, 1))
    h = jax.nn.relu(_ref_bn(_ref_conv(x, params["w1"], stride, 1),
                            params["g1"], params["b1"]))
    res = _ref_bn(_ref_conv(h, params["w2"], 1, 1), params["g2"], params["b2"])
    if stride != 1:
        skip = _ref_bn(_ref_conv(x, params["ws"], stride, 0),
                       params["gs"], params["bs"])
    else:
        skip = x
    out = jax.nn.relu(res + skip)
    return jnp.transpose(out, (0, 3, 1, 2))


# ---------------------------------------------------------------------------
if __name__ == "__main__":
    root = jax.random.PRNGKey(0)

    # --- Case 1: stride 2 (1x1 projection skip), x: (2, 4, 16, 16) NCHW ----
    N, Cin, H, W = 2, 4, 16, 16
    Cout, stride = 8, 2
    ks = jax.random.split(root, 10)
    # Conv weights kept in HWIO layout (kh, kw, Cin, Cout); this is the
    # PyTorch (Cout, Cin, kh, kw) weight transposed to (2, 3, 1, 0).
    params = {
        "w1": 0.1 * jax.random.normal(ks[0], (3, 3, Cin, Cout), jnp.float32),
        "g1": 1.0 + 0.1 * jax.random.normal(ks[1], (Cout,), jnp.float32),
        "b1": 0.05 * jax.random.normal(ks[2], (Cout,), jnp.float32),
        "w2": 0.1 * jax.random.normal(ks[3], (3, 3, Cout, Cout), jnp.float32),
        "g2": 1.0 + 0.1 * jax.random.normal(ks[4], (Cout,), jnp.float32),
        "b2": 0.05 * jax.random.normal(ks[5], (Cout,), jnp.float32),
        "ws": 0.1 * jax.random.normal(ks[6], (1, 1, Cin, Cout), jnp.float32),
        "gs": 1.0 + 0.1 * jax.random.normal(ks[7], (Cout,), jnp.float32),
        "bs": 0.05 * jax.random.normal(ks[8], (Cout,), jnp.float32),
    }
    x = jax.random.normal(ks[9], (N, Cin, H, W), jnp.float32)

    out = jax.block_until_ready(residual_block(x, params, stride))
    ref = jax.block_until_ready(residual_block_ref(x, params, stride))
    assert out.shape == (N, Cout, H // stride, W // stride), out.shape
    err = float(jnp.max(jnp.abs(out - ref)))
    # bf16 MXU operands / bf16 activation DMA, f32 accumulation & BN math.
    assert err < 1e-1, f"stride-2 max abs err {err}"

    # --- Case 2: stride 1 (identity skip, Cin == Cout) ----------------------
    C1 = 8
    k2 = jax.random.split(jax.random.PRNGKey(1), 7)
    params1 = {
        "w1": 0.1 * jax.random.normal(k2[0], (3, 3, C1, C1), jnp.float32),
        "g1": 1.0 + 0.1 * jax.random.normal(k2[1], (C1,), jnp.float32),
        "b1": 0.05 * jax.random.normal(k2[2], (C1,), jnp.float32),
        "w2": 0.1 * jax.random.normal(k2[3], (3, 3, C1, C1), jnp.float32),
        "g2": 1.0 + 0.1 * jax.random.normal(k2[4], (C1,), jnp.float32),
        "b2": 0.05 * jax.random.normal(k2[5], (C1,), jnp.float32),
    }
    x1 = jax.random.normal(k2[6], (2, C1, 16, 16), jnp.float32)
    out1 = jax.block_until_ready(residual_block(x1, params1, 1))
    ref1 = jax.block_until_ready(residual_block_ref(x1, params1, 1))
    assert out1.shape == (2, C1, 16, 16), out1.shape
    err1 = float(jnp.max(jnp.abs(out1 - ref1)))
    assert err1 < 1e-1, f"stride-1 max abs err {err1}"

    print("KERNEL_OK")
</pallas_src>

<mosaic_0001>
module attributes {stable_mosaic.version = 11 : i64} {
  func.func @_residual_block_kernel(%arg0: i32, %arg1: memref<8x9x9x4xbf16, #tpu.memory_space<vmem>>, %arg2: memref<36x16xbf16, #tpu.memory_space<vmem>>, %arg3: memref<72x8xbf16, #tpu.memory_space<vmem>>, %arg4: memref<1x8xf32, #tpu.memory_space<vmem>>, %arg5: memref<1x8xf32, #tpu.memory_space<vmem>>, %arg6: memref<1x8xf32, #tpu.memory_space<vmem>>, %arg7: memref<1x8xf32, #tpu.memory_space<vmem>>, %arg8: memref<1x8xf32, #tpu.memory_space<vmem>>, %arg9: memref<1x8xf32, #tpu.memory_space<vmem>>, %arg10: memref<128x8xf32, #tpu.memory_space<vmem>>, %arg11: memref<2x10x10x8xbf16, #tpu.memory_space<vmem>>) attributes {dimension_semantics = [#tpu.dimension_semantics<arbitrary>], iteration_bounds = array<i64: 1>, scalar_prefetch = 0 : i64, scratch_operands = 1 : i64, tpu.core_type = #tpu.core_type<tc>, window_params = [{pipeline_mode = #tpu.pipeline_mode<synchronous>, transform_indices = @transform_0, window_bounds = array<i64: 8, 9, 9, 4>}, {pipeline_mode = #tpu.pipeline_mode<synchronous>, transform_indices = @transform_1, window_bounds = array<i64: 36, 16>}, {pipeline_mode = #tpu.pipeline_mode<synchronous>, transform_indices = @transform_2, window_bounds = array<i64: 72, 8>}, {pipeline_mode = #tpu.pipeline_mode<synchronous>, transform_indices = @transform_3, window_bounds = array<i64: 1, 8>}, {pipeline_mode = #tpu.pipeline_mode<synchronous>, transform_indices = @transform_4, window_bounds = array<i64: 1, 8>}, {pipeline_mode = #tpu.pipeline_mode<synchronous>, transform_indices = @transform_5, window_bounds = array<i64: 1, 8>}, {pipeline_mode = #tpu.pipeline_mode<synchronous>, transform_indices = @transform_6, window_bounds = array<i64: 1, 8>}, {pipeline_mode = #tpu.pipeline_mode<synchronous>, transform_indices = @transform_7, window_bounds = array<i64: 1, 8>}, {pipeline_mode = #tpu.pipeline_mode<synchronous>, transform_indices = @transform_8, window_bounds = array<i64: 1, 8>}, {pipeline_mode = #tpu.pipeline_mode<synchronous>, transform_indices = @transform_9, window_bounds = array<i64: 128, 8>}]} {
    %c0 = arith.constant 0 : index
    %c0_0 = arith.constant 0 : index
    %c0_1 = arith.constant 0 : index
    %c0_2 = arith.constant 0 : index
    %0 = vector.load %arg1[%c0, %c0_0, %c0_1, %c0_2] : memref<8x9x9x4xbf16, #tpu.memory_space<vmem>>, vector<2x8x8x4xbf16>
    %c2 = arith.constant 2 : index
    %c0_3 = arith.constant 0 : index
    %c0_4 = arith.constant 0 : index
    %c0_5 = arith.constant 0 : index
    %1 = vector.load %arg1[%c2, %c0_3, %c0_4, %c0_5] : memref<8x9x9x4xbf16, #tpu.memory_space<vmem>>, vector<2x8x8x4xbf16>
    %c0_6 = arith.constant 0 : index
    %c0_7 = arith.constant 0 : index
    %c1 = arith.constant 1 : index
    %c0_8 = arith.constant 0 : index
    %2 = vector.load %arg1[%c0_6, %c0_7, %c1, %c0_8] : memref<8x9x9x4xbf16, #tpu.memory_space<vmem>>, vector<2x8x8x4xbf16>
    %c4 = arith.constant 4 : index
    %c0_9 = arith.constant 0 : index
    %c0_10 = arith.constant 0 : index
    %c0_11 = arith.constant 0 : index
    %3 = vector.load %arg1[%c4, %c0_9, %c0_10, %c0_11] : memref<8x9x9x4xbf16, #tpu.memory_space<vmem>>, vector<2x8x8x4xbf16>
    %c6 = arith.constant 6 : index
    %c0_12 = arith.constant 0 : index
    %c0_13 = arith.constant 0 : index
    %c0_14 = arith.constant 0 : index
    %4 = vector.load %arg1[%c6, %c0_12, %c0_13, %c0_14] : memref<8x9x9x4xbf16, #tpu.memory_space<vmem>>, vector<2x8x8x4xbf16>
    %c4_15 = arith.constant 4 : index
    %c0_16 = arith.constant 0 : index
    %c1_17 = arith.constant 1 : index
    %c0_18 = arith.constant 0 : index
    %5 = vector.load %arg1[%c4_15, %c0_16, %c1_17, %c0_18] : memref<8x9x9x4xbf16, #tpu.memory_space<vmem>>, vector<2x8x8x4xbf16>
    %c0_19 = arith.constant 0 : index
    %c1_20 = arith.constant 1 : index
    %c0_21 = arith.constant 0 : index
    %c0_22 = arith.constant 0 : index
    %6 = vector.load %arg1[%c0_19, %c1_20, %c0_21, %c0_22] : memref<8x9x9x4xbf16, #tpu.memory_space<vmem>>, vector<2x8x8x4xbf16>
    %c2_23 = arith.constant 2 : index
    %c1_24 = arith.constant 1 : index
    %c0_25 = arith.constant 0 : index
    %c0_26 = arith.constant 0 : index
    %7 = vector.load %arg1[%c2_23, %c1_24, %c0_25, %c0_26] : memref<8x9x9x4xbf16, #tpu.memory_space<vmem>>, vector<2x8x8x4xbf16>
    %c0_27 = arith.constant 0 : index
    %c1_28 = arith.constant 1 : index
    %c1_29 = arith.constant 1 : index
    %c0_30 = arith.constant 0 : index
    %8 = vector.load %arg1[%c0_27, %c1_28, %c1_29, %c0_30] : memref<8x9x9x4xbf16, #tpu.memory_space<vmem>>, vector<2x8x8x4xbf16>
    %9 = tpu.concatenate %0, %1, %2, %3, %4, %5, %6, %7, %8 in 3 : vector<2x8x8x4xbf16>, vector<2x8x8x4xbf16>, vector<2x8x8x4xbf16>, vector<2x8x8x4xbf16>, vector<2x8x8x4xbf16>, vector<2x8x8x4xbf16>, vector<2x8x8x4xbf16>, vector<2x8x8x4xbf16>, vector<2x8x8x4xbf16> -> vector<2x8x8x36xbf16>
    %10 = vector.shape_cast %9 : vector<2x8x8x36xbf16> to vector<128x36xbf16>
    %c0_31 = arith.constant 0 : index
    %c0_32 = arith.constant 0 : index
    %11 = vector.load %arg2[%c0_31, %c0_32] : memref<36x16xbf16, #tpu.memory_space<vmem>>, vector<36x16xbf16>
    %cst = arith.constant dense<0.000000e+00> : vector<128x16xf32>
    %12 = tpu.matmul %10, %11, %cst {dimension_numbers = #tpu.dot_dimension_numbers<[1], [0], [0], [1], [0, 0, 1, 1], [], []>} : vector<128x36xbf16>, vector<36x16xbf16>, vector<128x16xf32> -> vector<128x16xf32>
    %13 = vector.extract_strided_slice %12 {offsets = [0, 0], sizes = [128, 8], strides = [1, 1]} : vector<128x16xf32> to vector<128x8xf32>
    %cst_33 = arith.constant dense<0.000000e+00> : vector<8xf32>
    %14 = vector.multi_reduction <add>, %13, %cst_33 [0] : vector<128x8xf32> to vector<8xf32>
    %15 = vector.shape_cast %14 : vector<8xf32> to vector<1x8xf32>
    %cst_34 = arith.constant 7.812500e-03 : f32
    %16 = vector.broadcast %cst_34 : f32 to vector<1x8xf32>
    %17 = arith.mulf %15, %16 : vector<1x8xf32>
    %18 = vector.broadcast %17 : vector<1x8xf32> to vector<128x8xf32>
    %19 = arith.subf %13, %18 : vector<128x8xf32>
    %20 = arith.mulf %19, %19 : vector<128x8xf32>
    %cst_35 = arith.constant dense<0.000000e+00> : vector<8xf32>
    %21 = vector.multi_reduction <add>, %20, %cst_35 [0] : vector<128x8xf32> to vector<8xf32>
    %22 = vector.shape_cast %21 : vector<8xf32> to vector<1x8xf32>
    %cst_36 = arith.constant 7.812500e-03 : f32
    %23 = vector.broadcast %cst_36 : f32 to vector<1x8xf32>
    %24 = arith.mulf %22, %23 : vector<1x8xf32>
    %c0_37 = arith.constant 0 : index
    %c0_38 = arith.constant 0 : index
    %25 = vector.load %arg4[%c0_37, %c0_38] : memref<1x8xf32, #tpu.memory_space<vmem>>, vector<1x8xf32>
    %cst_39 = arith.constant 9.99999974E-6 : f32
    %26 = vector.broadcast %cst_39 : f32 to vector<1x8xf32>
    %27 = arith.addf %24, %26 : vector<1x8xf32>
    %28 = math.rsqrt %27 : vector<1x8xf32>
    %29 = vector.broadcast %28 : vector<1x8xf32> to vector<128x8xf32>
    %30 = arith.mulf %19, %29 : vector<128x8xf32>
    %31 = vector.broadcast %25 : vector<1x8xf32> to vector<128x8xf32>
    %32 = arith.mulf %31, %30 : vector<128x8xf32>
    %c0_40 = arith.constant 0 : index
    %c0_41 = arith.constant 0 : index
    %33 = vector.load %arg5[%c0_40, %c0_41] : memref<1x8xf32, #tpu.memory_space<vmem>>, vector<1x8xf32>
    %34 = vector.broadcast %33 : vector<1x8xf32> to vector<128x8xf32>
    %35 = arith.addf %32, %34 : vector<128x8xf32>
    %cst_42 = arith.constant 0.000000e+00 : f32
    %36 = vector.broadcast %cst_42 : f32 to vector<128x8xf32>
    %37 = arith.maximumf %35, %36 : vector<128x8xf32>
    %cst_43 = arith.constant 0.000000e+00 : bf16
    %38 = vector.broadcast %cst_43 : bf16 to vector<2x1x10x8xbf16>
    %cst_44 = arith.constant 0.000000e+00 : bf16
    %39 = vector.broadcast %cst_44 : bf16 to vector<2x8x1x8xbf16>
    %c0_45 = arith.constant 0 : index
    %c0_46 = arith.constant 0 : index
    %c0_47 = arith.constant 0 : index
    %c0_48 = arith.constant 0 : index
    %40 = vector.load %arg11[%c0_45, %c0_46, %c0_47, %c0_48] : memref<2x10x10x8xbf16, #tpu.memory_space<vmem>>, vector<2x1x10x8xbf16>
    tpu.vector_store %arg11[%c0_45, %c0_46, %c0_47, %c0_48], %38 {strides = array<i32>} : memref<2x10x10x8xbf16, #tpu.memory_space<vmem>>, vector<2x1x10x8xbf16>,
    %c0_49 = arith.constant 0 : index
    %c9 = arith.constant 9 : index
    %c0_50 = arith.constant 0 : index
    %c0_51 = arith.constant 0 : index
    %41 = vector.load %arg11[%c0_49, %c9, %c0_50, %c0_51] : memref<2x10x10x8xbf16, #tpu.memory_space<vmem>>, vector<2x1x10x8xbf16>
    tpu.vector_store %arg11[%c0_49, %c9, %c0_50, %c0_51], %38 {strides = array<i32>} : memref<2x10x10x8xbf16, #tpu.memory_space<vmem>>, vector<2x1x10x8xbf16>,
    %c0_52 = arith.constant 0 : index
    %c1_53 = arith.constant 1 : index
    %c0_54 = arith.constant 0 : index
    %c0_55 = arith.constant 0 : index
    %42 = vector.load %arg11[%c0_52, %c1_53, %c0_54, %c0_55] : memref<2x10x10x8xbf16, #tpu.memory_space<vmem>>, vector<2x8x1x8xbf16>
    tpu.vector_store %arg11[%c0_52, %c1_53, %c0_54, %c0_55], %39 {strides = array<i32>} : memref<2x10x10x8xbf16, #tpu.memory_space<vmem>>, vector<2x8x1x8xbf16>,
    %c0_56 = arith.constant 0 : index
    %c1_57 = arith.constant 1 : index
    %c9_58 = arith.constant 9 : index
    %c0_59 = arith.constant 0 : index
    %43 = vector.load %arg11[%c0_56, %c1_57, %c9_58, %c0_59] : memref<2x10x10x8xbf16, #tpu.memory_space<vmem>>, vector<2x8x1x8xbf16>
    tpu.vector_store %arg11[%c0_56, %c1_57, %c9_58, %c0_59], %39 {strides = array<i32>} : memref<2x10x10x8xbf16, #tpu.memory_space<vmem>>, vector<2x8x1x8xbf16>,
    %44 = vector.shape_cast %37 : vector<128x8xf32> to vector<2x8x8x8xf32>
    %45 = arith.truncf %44 : vector<2x8x8x8xf32> to vector<2x8x8x8xbf16>
    %c0_60 = arith.constant 0 : index
    %c1_61 = arith.constant 1 : index
    %c1_62 = arith.constant 1 : index
    %c0_63 = arith.constant 0 : index
    %46 = vector.load %arg11[%c0_60, %c1_61, %c1_62, %c0_63] : memref<2x10x10x8xbf16, #tpu.memory_space<vmem>>, vector<2x8x8x8xbf16>
    tpu.vector_store %arg11[%c0_60, %c1_61, %c1_62, %c0_63], %45 {strides = array<i32>} : memref<2x10x10x8xbf16, #tpu.memory_space<vmem>>, vector<2x8x8x8xbf16>,
    %c0_64 = arith.constant 0 : index
    %c0_65 = arith.constant 0 : index
    %c0_66 = arith.constant 0 : index
    %c0_67 = arith.constant 0 : index
    %47 = vector.load %arg11[%c0_64, %c0_65, %c0_66, %c0_67] : memref<2x10x10x8xbf16, #tpu.memory_space<vmem>>, vector<2x8x8x8xbf16>
    %c0_68 = arith.constant 0 : index
    %c0_69 = arith.constant 0 : index
    %c1_70 = arith.constant 1 : index
    %c0_71 = arith.constant 0 : index
    %48 = vector.load %arg11[%c0_68, %c0_69, %c1_70, %c0_71] : memref<2x10x10x8xbf16, #tpu.memory_space<vmem>>, vector<2x8x8x8xbf16>
    %c0_72 = arith.constant 0 : index
    %c0_73 = arith.constant 0 : index
    %c2_74 = arith.constant 2 : index
    %c0_75 = arith.constant 0 : index
    %49 = vector.load %arg11[%c0_72, %c0_73, %c2_74, %c0_75] : memref<2x10x10x8xbf16, #tpu.memory_space<vmem>>, vector<2x8x8x8xbf16>
    %c0_76 = arith.constant 0 : index
    %c1_77 = arith.constant 1 : index
    %c0_78 = arith.constant 0 : index
    %c0_79 = arith.constant 0 : index
    %50 = vector.load %arg11[%c0_76, %c1_77, %c0_78, %c0_79] : memref<2x10x10x8xbf16, #tpu.memory_space<vmem>>, vector<2x8x8x8xbf16>
    %c0_80 = arith.constant 0 : index
    %c1_81 = arith.constant 1 : index
    %c1_82 = arith.constant 1 : index
    %c0_83 = arith.constant 0 : index
    %51 = vector.load %arg11[%c0_80, %c1_81, %c1_82, %c0_83] : memref<2x10x10x8xbf16, #tpu.memory_space<vmem>>, vector<2x8x8x8xbf16>
    %c0_84 = arith.constant 0 : index
    %c1_85 = arith.constant 1 : index
    %c2_86 = arith.constant 2 : index
    %c0_87 = arith.constant 0 : index
    %52 = vector.load %arg11[%c0_84, %c1_85, %c2_86, %c0_87] : memref<2x10x10x8xbf16, #tpu.memory_space<vmem>>, vector<2x8x8x8xbf16>
    %c0_88 = arith.constant 0 : index
    %c2_89 = arith.constant 2 : index
    %c0_90 = arith.constant 0 : index
    %c0_91 = arith.constant 0 : index
    %53 = vector.load %arg11[%c0_88, %c2_89, %c0_90, %c0_91] : memref<2x10x10x8xbf16, #tpu.memory_space<vmem>>, vector<2x8x8x8xbf16>
    %c0_92 = arith.constant 0 : index
    %c2_93 = arith.constant 2 : index
    %c1_94 = arith.constant 1 : index
    %c0_95 = arith.constant 0 : index
    %54 = vector.load %arg11[%c0_92, %c2_93, %c1_94, %c0_95] : memref<2x10x10x8xbf16, #tpu.memory_space<vmem>>, vector<2x8x8x8xbf16>
    %c0_96 = arith.constant 0 : index
    %c2_97 = arith.constant 2 : index
    %c2_98 = arith.constant 2 : index
    %c0_99 = arith.constant 0 : index
    %55 = vector.load %arg11[%c0_96, %c2_97, %c2_98, %c0_99] : memref<2x10x10x8xbf16, #tpu.memory_space<vmem>>, vector<2x8x8x8xbf16>
    %56 = tpu.concatenate %47, %48, %49, %50, %51, %52, %53, %54, %55 in 3 : vector<2x8x8x8xbf16>, vector<2x8x8x8xbf16>, vector<2x8x8x8xbf16>, vector<2x8x8x8xbf16>, vector<2x8x8x8xbf16>, vector<2x8x8x8xbf16>, vector<2x8x8x8xbf16>, vector<2x8x8x8xbf16>, vector<2x8x8x8xbf16> -> vector<2x8x8x72xbf16>
    %57 = vector.shape_cast %56 : vector<2x8x8x72xbf16> to vector<128x72xbf16>
    %c0_100 = arith.constant 0 : index
    %c0_101 = arith.constant 0 : index
    %58 = vector.load %arg3[%c0_100, %c0_101] : memref<72x8xbf16, #tpu.memory_space<vmem>>, vector<72x8xbf16>
    %cst_102 = arith.constant dense<0.000000e+00> : vector<128x8xf32>
    %59 = tpu.matmul %57, %58, %cst_102 {dimension_numbers = #tpu.dot_dimension_numbers<[1], [0], [0], [1], [0, 0, 1, 1], [], []>} : vector<128x72xbf16>, vector<72x8xbf16>, vector<128x8xf32> -> vector<128x8xf32>
    %cst_103 = arith.constant dense<0.000000e+00> : vector<8xf32>
    %60 = vector.multi_reduction <add>, %59, %cst_103 [0] : vector<128x8xf32> to vector<8xf32>
    %61 = vector.shape_cast %60 : vector<8xf32> to vector<1x8xf32>
    %cst_104 = arith.constant 7.812500e-03 : f32
    %62 = vector.broadcast %cst_104 : f32 to vector<1x8xf32>
    %63 = arith.mulf %61, %62 : vector<1x8xf32>
    %64 = vector.broadcast %63 : vector<1x8xf32> to vector<128x8xf32>
    %65 = arith.subf %59, %64 : vector<128x8xf32>
    %66 = arith.mulf %65, %65 : vector<128x8xf32>
    %cst_105 = arith.constant dense<0.000000e+00> : vector<8xf32>
    %67 = vector.multi_reduction <add>, %66, %cst_105 [0] : vector<128x8xf32> to vector<8xf32>
    %68 = vector.shape_cast %67 : vector<8xf32> to vector<1x8xf32>
    %cst_106 = arith.constant 7.812500e-03 : f32
    %69 = vector.broadcast %cst_106 : f32 to vector<1x8xf32>
    %70 = arith.mulf %68, %69 : vector<1x8xf32>
    %c0_107 = arith.constant 0 : index
    %c0_108 = arith.constant 0 : index
    %71 = vector.load %arg6[%c0_107, %c0_108] : memref<1x8xf32, #tpu.memory_space<vmem>>, vector<1x8xf32>
    %cst_109 = arith.constant 9.99999974E-6 : f32
    %72 = vector.broadcast %cst_109 : f32 to vector<1x8xf32>
    %73 = arith.addf %70, %72 : vector<1x8xf32>
    %74 = math.rsqrt %73 : vector<1x8xf32>
    %75 = vector.broadcast %74 : vector<1x8xf32> to vector<128x8xf32>
    %76 = arith.mulf %65, %75 : vector<128x8xf32>
    %77 = vector.broadcast %71 : vector<1x8xf32> to vector<128x8xf32>
    %78 = arith.mulf %77, %76 : vector<128x8xf32>
    %c0_110 = arith.constant 0 : index
    %c0_111 = arith.constant 0 : index
    %79 = vector.load %arg7[%c0_110, %c0_111] : memref<1x8xf32, #tpu.memory_space<vmem>>, vector<1x8xf32>
    %80 = vector.broadcast %79 : vector<1x8xf32> to vector<128x8xf32>
    %81 = arith.addf %78, %80 : vector<128x8xf32>
    %82 = vector.extract_strided_slice %12 {offsets = [0, 8], sizes = [128, 8], strides = [1, 1]} : vector<128x16xf32> to vector<128x8xf32>
    %cst_112 = arith.constant dense<0.000000e+00> : vector<8xf32>
    %83 = vector.multi_reduction <add>, %82, %cst_112 [0] : vector<128x8xf32> to vector<8xf32>
    %84 = vector.shape_cast %83 : vector<8xf32> to vector<1x8xf32>
    %cst_113 = arith.constant 7.812500e-03 : f32
    %85 = vector.broadcast %cst_113 : f32 to vector<1x8xf32>
    %86 = arith.mulf %84, %85 : vector<1x8xf32>
    %87 = vector.broadcast %86 : vector<1x8xf32> to vector<128x8xf32>
    %88 = arith.subf %82, %87 : vector<128x8xf32>
    %89 = arith.mulf %88, %88 : vector<128x8xf32>
    %cst_114 = arith.constant dense<0.000000e+00> : vector<8xf32>
    %90 = vector.multi_reduction <add>, %89, %cst_114 [0] : vector<128x8xf32> to vector<8xf32>
    %91 = vector.shape_cast %90 : vector<8xf32> to vector<1x8xf32>
    %cst_115 = arith.constant 7.812500e-03 : f32
    %92 = vector.broadcast %cst_115 : f32 to vector<1x8xf32>
    %93 = arith.mulf %91, %92 : vector<1x8xf32>
    %c0_116 = arith.constant 0 : index
    %c0_117 = arith.constant 0 : index
    %94 = vector.load %arg8[%c0_116, %c0_117] : memref<1x8xf32, #tpu.memory_space<vmem>>, vector<1x8xf32>
    %cst_118 = arith.constant 9.99999974E-6 : f32
    %95 = vector.broadcast %cst_118 : f32 to vector<1x8xf32>
    %96 = arith.addf %93, %95 : vector<1x8xf32>
    %97 = math.rsqrt %96 : vector<1x8xf32>
    %98 = vector.broadcast %97 : vector<1x8xf32> to vector<128x8xf32>
    %99 = arith.mulf %88, %98 : vector<128x8xf32>
    %100 = vector.broadcast %94 : vector<1x8xf32> to vector<128x8xf32>
    %101 = arith.mulf %100, %99 : vector<128x8xf32>
    %c0_119 = arith.constant 0 : index
    %c0_120 = arith.constant 0 : index
    %102 = vector.load %arg9[%c0_119, %c0_120] : memref<1x8xf32, #tpu.memory_space<vmem>>, vector<1x8xf32>
    %103 = vector.broadcast %102 : vector<1x8xf32> to vector<128x8xf32>
    %104 = arith.addf %101, %103 : vector<128x8xf32>
    %105 = arith.addf %81, %104 : vector<128x8xf32>
    %cst_121 = arith.constant 0.000000e+00 : f32
    %106 = vector.broadcast %cst_121 : f32 to vector<128x8xf32>
    %107 = arith.maximumf %105, %106 : vector<128x8xf32>
    %c0_122 = arith.constant 0 : index
    %c0_123 = arith.constant 0 : index
    %108 = vector.load %arg10[%c0_122, %c0_123] : memref<128x8xf32, #tpu.memory_space<vmem>>, vector<128x8xf32>
    tpu.vector_store %arg10[%c0_122, %c0_123], %107 {strides = array<i32>} : memref<128x8xf32, #tpu.memory_space<vmem>>, vector<128x8xf32>,
    return
  }
  func.func @transform_0(%arg0: i32) -> (i32, i32, i32, i32) {
    %c0_i32 = arith.constant 0 : i32
    %c0_i32_0 = arith.constant 0 : i32
    %c0_i32_1 = arith.constant 0 : i32
    %c0_i32_2 = arith.constant 0 : i32
    %c0_i32_3 = arith.constant 0 : i32
    return %c0_i32, %c0_i32_0, %c0_i32_1, %c0_i32_2 : i32, i32, i32, i32
  }
  func.func @transform_1(%arg0: i32) -> (i32, i32) {
    %c0_i32 = arith.constant 0 : i32
    %c0_i32_0 = arith.constant 0 : i32
    %c0_i32_1 = arith.constant 0 : i32
    return %c0_i32, %c0_i32_0 : i32, i32
  }
  func.func @transform_2(%arg0: i32) -> (i32, i32) {
    %c0_i32 = arith.constant 0 : i32
    %c0_i32_0 = arith.constant 0 : i32
    %c0_i32_1 = arith.constant 0 : i32
    return %c0_i32, %c0_i32_0 : i32, i32
  }
  func.func @transform_3(%arg0: i32) -> (i32, i32) {
    %c0_i32 = arith.constant 0 : i32
    %c0_i32_0 = arith.constant 0 : i32
    %c0_i32_1 = arith.constant 0 : i32
    return %c0_i32, %c0_i32_0 : i32, i32
  }
  func.func @transform_4(%arg0: i32) -> (i32, i32) {
    %c0_i32 = arith.constant 0 : i32
    %c0_i32_0 = arith.constant 0 : i32
    %c0_i32_1 = arith.constant 0 : i32
    return %c0_i32, %c0_i32_0 : i32, i32
  }
  func.func @transform_5(%arg0: i32) -> (i32, i32) {
    %c0_i32 = arith.constant 0 : i32
    %c0_i32_0 = arith.constant 0 : i32
    %c0_i32_1 = arith.constant 0 : i32
    return %c0_i32, %c0_i32_0 : i32, i32
  }
  func.func @transform_6(%arg0: i32) -> (i32, i32) {
    %c0_i32 = arith.constant 0 : i32
    %c0_i32_0 = arith.constant 0 : i32
    %c0_i32_1 = arith.constant 0 : i32
    return %c0_i32, %c0_i32_0 : i32, i32
  }
  func.func @transform_7(%arg0: i32) -> (i32, i32) {
    %c0_i32 = arith.constant 0 : i32
    %c0_i32_0 = arith.constant 0 : i32
    %c0_i32_1 = arith.constant 0 : i32
    return %c0_i32, %c0_i32_0 : i32, i32
  }
  func.func @transform_8(%arg0: i32) -> (i32, i32) {
    %c0_i32 = arith.constant 0 : i32
    %c0_i32_0 = arith.constant 0 : i32
    %c0_i32_1 = arith.constant 0 : i32
    return %c0_i32, %c0_i32_0 : i32, i32
  }
  func.func @transform_9(%arg0: i32) -> (i32, i32) {
    %c0_i32 = arith.constant 0 : i32
    %c0_i32_0 = arith.constant 0 : i32
    %c0_i32_1 = arith.constant 0 : i32
    return %c0_i32, %c0_i32_0 : i32, i32
  }
}

</mosaic_0001>

<bundles_post_ra>
// kernel: tpu_custom_call.1
= control target key start
LH: loop header
LB: loop body
LE: loop exit
PB: predicated region body
PF: predicated region fallthrough
CT: control target
= control target key end

     0   :  { %s5217_s15 = smov 4   ;;  %s5218_s13 = smov 8   ;;  %vm1555_vm0 = vcmask 1041408   ;;  %vm1190_vm1 = vcmask 31744   ;;  %vm1239_vm2 = vcmask 64512   ;;  %vm1272_vm3 = vcmask 97280   ;;  %s7998_s0 = inlined_call_operand.vmem [shape: bf16[8,9,9,4], index: 0, kind: input, shape index: {}]   ;;  %s7999_s1 = inlined_call_operand.vmem [shape: bf16[36,16], index: 1, kind: input, shape index: {}]   ;;  %s8000_s3 = inlined_call_operand.vmem [shape: f32[1,8], index: 3, kind: input, shape index: {}]   ;;  %s8001_s4 = inlined_call_operand.vmem [shape: f32[1,8], index: 4, kind: input, shape index: {}]   ;;  %s8002_s2 = inlined_call_operand.vmem [shape: bf16[72,8], index: 2, kind: input, shape index: {}]   ;;  %s8003_s7 = inlined_call_operand.vmem [shape: f32[1,8], index: 7, kind: input, shape index: {}]   ;;  %s8004_s8 = inlined_call_operand.vmem [shape: f32[1,8], index: 8, kind: input, shape index: {}]   ;;  %s8005_s5 = inlined_call_operand.vmem [shape: f32[1,8], index: 5, kind: input, shape index: {}]   ;;  %s8006_s6 = inlined_call_operand.vmem [shape: f32[1,8], index: 6, kind: input, shape index: {}]   ;;  %s8007_s9 = inlined_call_operand.vmem [shape: f32[128,8], index: 9, kind: output, shape index: {}]  }
   0x1   :  { %v4953_v0 = vld [vmem:[%s7998_s0 + $0xa0] ss:$0 sps:$4 sm:$0xff]   ;;  %v4954_v1 = vld [vmem:[%s7998_s0 + $0x90] ss:$0 sps:$4 sm:$0xff]   ;;  %v4955_v2 = vld [vmem:[%s7998_s0 + $0xa8] ss:$0 sps:$4 sm:$0xff]  }
   0x2   :  { %234 = vrot.lane.b32.xlu1 %v4953_v0, %s5217_s15  ;;  %v4956_v3 = vld [vmem:[%s7998_s0 + $0x98] ss:$0 sps:$4 sm:$0xff]   ;;  %v5297_v4 = vld [vmem:[%s7998_s0 + $0x8] sm:$0xf]  ;;  %230 = vrot.lane.b32.xlu0 %v4954_v1, %s5217_s15  ;;  %s5219_s27 = smov 12   ;;  %s5220_s19 = smov 16  }
   0x3   :  { %v67_v5 = vld [vmem:[%s7998_s0 + $0xc] sm:$0x1]  ;;  %v5306_v6 = vld [vmem:[%s7998_s0] sm:$0xf]  ;;  %v66_v7 = vld [vmem:[%s7998_s0 + $0x4] sm:$0x1] }
   0x4   :  { %v4548_v8 = vcombine.low %v5297_v4, %v67_v5  ;;  %v4547_v9 = vcombine.low %v5306_v6, %v66_v7  ;;  %v5316_v10 = vld [vmem:[%s7998_s0 + $0x18] sm:$0xf]  ;;  %v69_v11 = vld [vmem:[%s7998_s0 + $0x1c] sm:$0x1]  ;;  %v5324_v12 = vld [vmem:[%s7998_s0 + $0x10] sm:$0xf] }
   0x5   :  { %v4550_v13 = vcombine.low %v5316_v10, %v69_v11  ;;  %v68_v14 = vld [vmem:[%s7998_s0 + $0x14] sm:$0x1]  ;;  %v4436_v32 = vld [vmem:[%s7998_s0 + $0x128] sm:$0xf]  ;;  %v4435_v33 = vld [vmem:[%s7998_s0 + $0x120] sm:$0xf] }
   0x6   :  { %236 = vrot.lane.b32.xlu1 %v4955_v2, %s5217_s15  ;;  %v350_v15 = vshrl.u32 %v4548_v8, 16  ;;  %v352_v16 = vshll.u32 %v4548_v8, 16  ;;  %v343_v17 = vshrl.u32 %v4547_v9, 16  ;;  %v345_v18 = vshll.u32 %v4547_v9, 16  ;;  %232 = vrot.lane.b32.xlu0 %v4956_v3, %s5217_s15  ;;  %v4468_v34 = vld [vmem:[%s7998_s0 + $0x12c] sm:$0x1] }
   0x7   :  { %v366_v19 = vshll.u32 %v4550_v13, 16  ;;  %v4549_v20 = vcombine.low %v5324_v12, %v68_v14  ;;  %v364_v23 = vshrl.u32 %v4550_v13, 16  ;;  %v4564_v35 = vcombine.low %v4436_v32, %v4436_v32  ;;  %v4467_v37 = vld [vmem:[%s7998_s0 + $0x124] sm:$0x1]  ;;  %v4438_v38 = vld [vmem:[%s7998_s0 + $0x138] sm:$0xf] }
   0x8   :  { %v354_v21 = vrot.slane %v352_v16, 1  ;;  %v347_v22 = vrot.slane %v345_v18, 1  ;;  %v4563_v36 = vcombine.low %v4435_v33, %v4435_v33  ;;  %v4437_v39 = vld [vmem:[%s7998_s0 + $0x130] sm:$0xf]  ;;  %v4596_v40 = vcombine.low %v4436_v32, %v4468_v34  ;;  %v4470_v44 = vld [vmem:[%s7998_s0 + $0x13c] sm:$0x1] }
   0x9   :  { %v368_v24 = vrot.slane %v366_v19, 1  ;;  %v357_v25 = vshrl.u32 %v4549_v20, 16  ;;  %v359_v26 = vshll.u32 %v4549_v20, 16  ;;  %v4595_v41 = vcombine.low %v4435_v33, %v4467_v37  ;;  %v4469_v45 = vld [vmem:[%s7998_s0 + $0x134] sm:$0x1]  ;;  %s5221_s22 = smov 20  }
   0xa   :  { %v355_v27 = vor.u32 %v354_v21, %v350_v15  ;;  %v348_v28 = vor.u32 %v347_v22, %v343_v17  ;;  %v4566_v42 = vcombine.low %v4438_v38, %v4438_v38  ;;  %v4565_v43 = vcombine.low %v4437_v39, %v4437_v39  ;;  %v4969_v46 = vld [vmem:[%s7998_s0 + $0x1b8] ss:$0 sps:$4 sm:$0xff]   ;;  %v4970_v49 = vld [vmem:[%s7998_s0 + $0x1b0] ss:$0 sps:$4 sm:$0xff]   ;;  %v4971_v52 = vld [vmem:[%s7998_s0 + $0x1c8] ss:$0 sps:$4 sm:$0xff]  }
   0xb   :  { %v361_v29 = vrot.slane %v359_v26, 1  ;;  %v369_v30 = vor.u32 %v368_v24, %v364_v23  ;;  %v4598_v47 = vcombine.low %v4438_v38, %v4470_v44  ;;  %v4597_v48 = vcombine.low %v4437_v39, %v4469_v45  ;;  %v4972_v55 = vld [vmem:[%s7998_s0 + $0x1c0] ss:$0 sps:$4 sm:$0xff]   ;;  %v4484_v5 = vld [vmem:[%s7998_s0 + $0x10] sm:$0xf]  ;;  %s5222_s17 = smov 24  }
   0xc   :  { %456 = vrot.lane.b32.xlu1 %v355_v27, %s5218_s13  ;;  %454 = vrot.lane.b32.xlu0 %v348_v28, %s5218_s13  ;;  %v704_v50 = vshll.u32 %v4596_v40, 16  ;;  %v697_v51 = vshll.u32 %v4595_v41, 16  ;;  %v702_v53 = vshrl.u32 %v4596_v40, 16  ;;  %v695_v54 = vshrl.u32 %v4595_v41, 16  ;;  %v4483_v7 = vld [vmem:[%s7998_s0 + $0x8] sm:$0xf] }
   0xd   :  { %v362_v31 = vor.u32 %v361_v29, %v357_v25  ;;  %v718_v58 = vshll.u32 %v4598_v47, 16  ;;  %v711_v59 = vshll.u32 %v4597_v48, 16  ;;  %v716_v60 = vshrl.u32 %v4598_v47, 16  ;;  %v4516_v8 = vld [vmem:[%s7998_s0 + $0x14] sm:$0x1]  ;;  %v5041_v26 = vld [vmem:[%s7999_s1] sm:$0xff]  }
   0xe   :  { %v706_v56 = vrot.slane %v704_v50, 1  ;;  %v699_v57 = vrot.slane %v697_v51, 1  ;;  %v709_v61 = vshrl.u32 %v4597_v48, 16  ;;  %v4612_v9 = vcombine.low %v4484_v5, %v4484_v5  ;;  %v4515_v11 = vld [vmem:[%s7998_s0 + $0xc] sm:$0x1]  ;;  %4889 = vmatprep.subr.bf16.mxu0 %v5041_v26  ;;  %s5223_s12 = smov 28  }
   0xf   :  { %v720_v0 = vrot.slane %v718_v58, 1  ;;  %v713_v1 = vrot.slane %v711_v59, 1  ;;  %v4611_v13 = vcombine.low %v4483_v7, %v4483_v7  ;;  %v4486_v14 = vld [vmem:[%s7998_s0 + $0x20] sm:$0xf]  ;;  %v4485_v15 = vld [vmem:[%s7998_s0 + $0x18] sm:$0xf]  ;;  %v4644_v16 = vcombine.low %v4484_v5, %v4516_v8  ;;  %4890 = vmatpush3.bf16.msra.mxu0 %v5041_v26 }
  0x10   :  { %460 = vrot.lane.b32.xlu1 %v369_v30, %s5218_s13  ;;  %458 = vrot.lane.b32.xlu0 %v362_v31, %s5218_s13  ;;  %v707_v62 = vor.u32 %v706_v56, %v702_v53  ;;  %v700_v63 = vor.u32 %v699_v57, %v695_v54  ;;  %v4643_v17 = vcombine.low %v4483_v7, %v4515_v11  ;;  %v4518_v20 = vld [vmem:[%s7998_s0 + $0x24] sm:$0x1]  ;;  %v4517_v21 = vld [vmem:[%s7998_s0 + $0x1c] sm:$0x1]  ;;  %s5224_s24 = smov 32   ;;  %vm1305_vm4 = vcmask 130048  }
  0x11   :  { %v721_v2 = vor.u32 %v720_v0, %v716_v60  ;;  %v714_v3 = vor.u32 %v713_v1, %v709_v61  ;;  %v4614_v18 = vcombine.low %v4486_v14, %v4486_v14  ;;  %v4613_v19 = vcombine.low %v4485_v15, %v4485_v15  ;;  %v4981_v22 = vld [vmem:[%s7998_s0 + $0xa0] ss:$0 sps:$4 sm:$0xff]   ;;  %v4982_v23 = vld [vmem:[%s7998_s0 + $0x98] ss:$0 sps:$4 sm:$0xff]   ;;  %v4983_v29 = vld [vmem:[%s7998_s0 + $0xb0] ss:$0 sps:$4 sm:$0xff]  }
  0x12   :  { %v1056_v24 = vshll.u32 %v4644_v16, 16  ;;  %v1049_v25 = vshll.u32 %v4643_v17, 16  ;;  %v4646_v27 = vcombine.low %v4486_v14, %v4518_v20  ;;  %v4645_v28 = vcombine.low %v4485_v15, %v4517_v21  ;;  %v4984_v30 = vld [vmem:[%s7998_s0 + $0xa8] ss:$0 sps:$4 sm:$0xff]   ;;  %v37_v37 = vld [vmem:[%s7998_s0 + $0x20] sm:$0xf] }
  0x13   :  { %v1054_v31 = vshrl.u32 %v4644_v16, 16  ;;  %v1047_v33 = vshrl.u32 %v4643_v17, 16  ;;  %v4985_v44 = vld [vmem:[%s7998_s0 + $0xb8] ss:$0 sps:$4 sm:$0xff]   ;;  %v4986_v45 = vld [vmem:[%s7998_s0 + $0xb0] ss:$0 sps:$4 sm:$0xff]  }
  0x14   :  { %536 = vrot.lane.b32.xlu1 %v4564_v35, %s5219_s27  ;;  %534 = vrot.lane.b32.xlu0 %v4563_v36, %s5219_s27  ;;  %v1058_v32 = vrot.slane %v1056_v24, 1  ;;  %v1051_v34 = vrot.slane %v1049_v25, 1  ;;  %v38_v35 = vld [vmem:[%s7998_s0 + $0x28] sm:$0xf]  ;;  %v71_v36 = vld [vmem:[%s7998_s0 + $0x2c] sm:$0x1] }
  0x15   :  { %v1070_v40 = vshll.u32 %v4646_v27, 16  ;;  %v1063_v41 = vshll.u32 %v4645_v28, 16  ;;  %v1061_v47 = vshrl.u32 %v4645_v28, 16  ;;  %v4552_v48 = vcombine.low %v38_v35, %v71_v36  ;;  %v40_v50 = vld [vmem:[%s7998_s0 + $0x38] sm:$0xf]  ;;  %s5228_s11 = smov 64  }
  0x16   :  { %v1059_v38 = vor.u32 %v1058_v32, %v1054_v31  ;;  %v1052_v39 = vor.u32 %v1051_v34, %v1047_v33  ;;  %v73_v51 = vld [vmem:[%s7998_s0 + $0x3c] sm:$0x1]  ;;  %v39_v54 = vld [vmem:[%s7998_s0 + $0x30] sm:$0xf]  ;;  %v4987_v0 = vld [vmem:[%s7998_s0 + $0xc8] ss:$0 sps:$4 sm:$0xff]  }
  0x17   :  { %v1065_v53 = vrot.slane %v1063_v41, 1  ;;  %v380_v56 = vshll.u32 %v4552_v48, 16  ;;  %v4554_v57 = vcombine.low %v40_v50, %v73_v51  ;;  %v4988_v1 = vld [vmem:[%s7998_s0 + $0xc0] ss:$0 sps:$4 sm:$0xff]   ;;  %v4440_v20 = vld [vmem:[%s7998_s0 + $0x148] sm:$0xf] }
  0x18   :  { %540 = vrot.lane.b32.xlu1 %v4566_v42, %s5219_s27  ;;  %538 = vrot.lane.b32.xlu0 %v4565_v43, %s5219_s27  ;;  %v70_v42 = vld [vmem:[%s7998_s0 + $0x24] sm:$0x1]  ;;  %v5046_v43 = vld [vmem:[%s7999_s1 + $0x8] sm:$0xff]   ;;  %vm1338_vm5 = vcmask 162816   ;;  %vm1371_vm6 = vcmask 195584   ;;  %vm1404_vm7 = vcmask 228352  }
  0x19   :  { %4891 = vmatprep.subr.bf16.mxu0 %v5046_v43  ;;  %v1066_v61 = vor.u32 %v1065_v53, %v1061_v47  ;;  %v5049_v8 = vld [vmem:[%s7999_s1 + $0x10] ss:$0 sps:$4 sm:$0x33]   ;;  %v392_v11 = vshrl.u32 %v4554_v57, 16  ;;  %v4439_v21 = vld [vmem:[%s7998_s0 + $0x140] sm:$0xf] }
  0x1a   :  { %4892 = vmatpush3.bf16.msra.mxu0 %v5046_v43  ;;  %v4567_v24 = vcombine.low %v4439_v21, %v4439_v21  ;;  %v4471_v25 = vld [vmem:[%s7998_s0 + $0x144] sm:$0x1]  ;;  %v4442_v26 = vld [vmem:[%s7998_s0 + $0x158] sm:$0xf]  ;;  %v4474_v32 = vld [vmem:[%s7998_s0 + $0x15c] sm:$0x1] }
  0x1b   :  { %4937 = vmatprep.subr.msk.bf16.mxu0 %vm1555_vm0, %v5049_v8  ;;  %v4473_v33 = vld [vmem:[%s7998_s0 + $0x154] sm:$0x1]  ;;  %v4602_v34 = vcombine.low %v4442_v26, %v4474_v32  ;;  %v5001_v36 = vld [vmem:[%s7998_s0 + $0x1d8] ss:$0 sps:$4 sm:$0xff]   ;;  %v5004_v43 = vld [vmem:[%s7998_s0 + $0x1e0] ss:$0 sps:$4 sm:$0xff]  }
  0x1c   :  { %616 = vrot.lane.b32.xlu1 %v4969_v46, %s5220_s19  ;;  %614 = vrot.lane.b32.xlu0 %v4970_v49, %s5220_s19  ;;  %v1068_v46 = vshrl.u32 %v4646_v27, 16  ;;  %v4551_v49 = vcombine.low %v37_v37, %v70_v42  ;;  %v4441_v27 = vld [vmem:[%s7998_s0 + $0x150] sm:$0xf]  ;;  %v5597_v32 = vld [vmem:[%s7998_s0 + $0x48] sm:$0xf]  ;;  %vm1437_vm8 = vcmask 261120  }
  0x1d   :  { %v4569_v31 = vcombine.low %v4441_v27, %v4441_v27  ;;  %v4601_v35 = vcombine.low %v4441_v27, %v4473_v33  ;;  %v5002_v37 = vld [vmem:[%s7998_s0 + $0x1d0] ss:$0 sps:$4 sm:$0xff]   ;;  %v74_v33 = vld [vmem:[%s7998_s0 + $0x4c] sm:$0x1]  ;;  %vm1530_vm9 = vcmask 293888   ;;  %vm4130_vm10 = vcmask 130112  }
  0x1e   :  { %v373_v58 = vshll.u32 %v4551_v49, 16  ;;  %vm1846_vm11 = vcmask 57344   ;;  %vm1857_vm12 = vsmask.f32 256  ;;  %vm1907_vm14 = vsmask.f32 7938 }
  0x1f   :  { %v739_v47 = vshll.u32 %v4601_v35, 16  ;;  %vm6269_vm13 = vmand %vm1846_vm11, %vm1857_vm12 }
  0x20   :  { %620 = vrot.lane.b32.xlu1 %v4971_v52, %s5220_s19  ;;  %618 = vrot.lane.b32.xlu0 %v4972_v55, %s5220_s19  ;;  %v1072_v52 = vrot.slane %v1070_v40, 1  ;;  %v72_v55 = vld [vmem:[%s7998_s0 + $0x34] sm:$0x1]  ;;  %v375_v5 = vrot.slane %v373_v58, 1  ;;  %v5003_v40 = vld [vmem:[%s7998_s0 + $0x1e8] ss:$0 sps:$4 sm:$0xff]   ;;  %vm6287_vm15 = vmand %vm1846_vm11, %vm1907_vm14 }
  0x21   :  { %v4553_v59 = vcombine.low %v39_v54, %v72_v55  ;;  %v741_v53 = vrot.slane %v739_v47, 1  ;;  %v4520_v58 = vld [vmem:[%s7998_s0 + $0x34] sm:$0x1] }
  0x22   :  { %v1073_v60 = vor.u32 %v1072_v52, %v1068_v46  ;;  %v746_v46 = vshll.u32 %v4602_v34, 16 }
  0x23   :  { %v387_v7 = vshll.u32 %v4553_v59, 16 }
  0x24   :  { %808 = vrot.lane.b32.xlu1 %v707_v62, %s5221_s22  ;;  %806 = vrot.lane.b32.xlu0 %v700_v63, %s5221_s22  ;;  %v378_v62 = vshrl.u32 %v4552_v48, 16  ;;  %v371_v63 = vshrl.u32 %v4551_v49, 16  ;;  %v744_v48 = vshrl.u32 %v4602_v34, 16  ;;  %v737_v49 = vshrl.u32 %v4601_v35, 16  ;;  %v5017_v34 = vld [vmem:[%s7998_s0 + $0xe0] ss:$0 sps:$4 sm:$0xff]  }
  0x25   :  { %v389_v17 = vrot.slane %v387_v7, 1  ;;  %v748_v52 = vrot.slane %v746_v46, 1  ;;  %v4521_v7 = vld [vmem:[%s7998_s0 + $0x3c] sm:$0x1] }
  0x26   :  { %v376_v15 = vor.u32 %v375_v5, %v371_v63  ;;  %v742_v55 = vor.u32 %v741_v53, %v737_v49  ;;  %v4489_v63 = vld [vmem:[%s7998_s0 + $0x38] sm:$0xf]  ;;  %v4522_v5 = vld [vmem:[%s7998_s0 + $0x44] sm:$0x1] }
  0x27   :  { %v749_v54 = vor.u32 %v748_v52, %v744_v48 }
  0x28   :  { %812 = vrot.lane.b32.xlu1 %v721_v2, %s5221_s22  ;;  %810 = vrot.lane.b32.xlu0 %v714_v3, %s5221_s22  ;;  %v382_v2 = vrot.slane %v380_v56, 1  ;;  %v394_v3 = vshll.u32 %v4554_v57, 16  ;;  %v4488_v56 = vld [vmem:[%s7998_s0 + $0x30] sm:$0xf]  ;;  %v4487_v57 = vld [vmem:[%s7998_s0 + $0x28] sm:$0xf] }
  0x2a   :  { %v383_v14 = vor.u32 %v382_v2, %v378_v62  ;;  %v396_v16 = vrot.slane %v394_v3, 1  ;;  %v4490_v62 = vld [vmem:[%s7998_s0 + $0x40] sm:$0xf]  ;;  %v4617_v3 = vcombine.low %v4489_v63, %v4489_v63 }
  0x2b   :  { %v4618_v2 = vcombine.low %v4490_v62, %v4490_v62 }
  0x2c   :  { %888 = vrot.lane.b32.xlu1 %v4612_v9, %s5222_s17  ;;  %886 = vrot.lane.b32.xlu0 %v4611_v13, %s5222_s17  ;;  %v1557_v9 = vsel %vm1555_vm0, %v5049_v8, 0  ;;  %v385_v13 = vshrl.u32 %v4553_v59, 16  ;;  %v4616_v59 = vcombine.low %v4488_v56, %v4488_v56  ;;  %v5013_v8 = vld [vmem:[%s7998_s0 + $0xc0] ss:$0 sps:$4 sm:$0xff]   ;;  %vm1844_vm0 = vcmask 60416  }
  0x2d   :  { %4894 = vmatpush3.bf16.msra.mxu0 %v1557_v9  ;;  %v5014_v9 = vld [vmem:[%s7998_s0 + $0xb8] ss:$0 sps:$4 sm:$0xff]  }
  0x30   :  { %892 = vrot.lane.b32.xlu1 %v4614_v18, %s5222_s17  ;;  %890 = vrot.lane.b32.xlu0 %v4613_v19, %s5222_s17  ;;  %v397_v18 = vor.u32 %v396_v16, %v392_v11  ;;  %v390_v19 = vor.u32 %v389_v17, %v385_v13  ;;  %v5015_v16 = vld [vmem:[%s7998_s0 + $0xd0] ss:$0 sps:$4 sm:$0xff]  }
  0x34   :  { %968 = vrot.lane.b32.xlu1 %v4981_v22, %s5223_s12  ;;  %966 = vrot.lane.b32.xlu0 %v4982_v23, %s5223_s12  ;;  %v4472_v22 = vld [vmem:[%s7998_s0 + $0x14c] sm:$0x1]  ;;  %v4568_v23 = vcombine.low %v4440_v20, %v4440_v20 }
  0x35   :  { %v4600_v28 = vcombine.low %v4440_v20, %v4472_v22 }
  0x37   :  { %v730_v41 = vshrl.u32 %v4600_v28, 16 }
  0x38   :  { %972 = vrot.lane.b32.xlu1 %v4983_v29, %s5223_s12  ;;  %970 = vrot.lane.b32.xlu0 %v4984_v30, %s5223_s12  ;;  %v4599_v29 = vcombine.low %v4439_v21, %v4471_v25  ;;  %v4570_v30 = vcombine.low %v4442_v26, %v4442_v26 }
  0x3a   :  { %v723_v42 = vshrl.u32 %v4599_v29, 16 }
  0x3c   :  { %1160 = vrot.lane.b32.xlu1 %v1059_v38, %s5224_s24  ;;  %1158 = vrot.lane.b32.xlu0 %v1052_v39, %s5224_s24  ;;  %v732_v38 = vshll.u32 %v4600_v28, 16  ;;  %v725_v39 = vshll.u32 %v4599_v29, 16  ;;  %v5587_v29 = vld [vmem:[%s7998_s0 + $0x50] sm:$0xf] }
  0x40   :  { %240 = vrot.lane.b32.xlu1 %v4985_v44, %s5217_s15  ;;  %238 = vrot.lane.b32.xlu0 %v4986_v45, %s5217_s15  ;;  %v734_v44 = vrot.slane %v732_v38, 1  ;;  %v727_v45 = vrot.slane %v725_v39, 1  ;;  %v5018_v39 = vld [vmem:[%s7998_s0 + $0xd8] ss:$0 sps:$4 sm:$0xff]  }
  0x42   :  { %v735_v50 = vor.u32 %v734_v44, %v730_v41  ;;  %v728_v51 = vor.u32 %v727_v45, %v723_v42  ;;  %v4555_v41 = vcombine.low %v5597_v32, %v74_v33  ;;  %v5615_v42 = vld [vmem:[%s7998_s0 + $0x60] sm:$0xf]  ;;  %v5623_v44 = vld [vmem:[%s7998_s0 + $0x58] sm:$0xf]  ;;  %v76_v45 = vld [vmem:[%s7998_s0 + $0x5c] sm:$0x1] }
  0x43   :  { %v4557_v53 = vcombine.low %v5623_v44, %v76_v45 }
  0x44   :  { %1164 = vrot.lane.b32.xlu1 %v1073_v60, %s5224_s24  ;;  %1162 = vrot.lane.b32.xlu0 %v1066_v61, %s5224_s24  ;;  %v4615_v60 = vcombine.low %v4487_v57, %v4487_v57  ;;  %v4519_v61 = vld [vmem:[%s7998_s0 + $0x2c] sm:$0x1] }
  0x48   :  { %244 = vrot.lane.b32.xlu1 %v4987_v0, %s5217_s15  ;;  %242 = vrot.lane.b32.xlu0 %v4988_v1, %s5217_s15  ;;  %v4648_v0 = vcombine.low %v4488_v56, %v4520_v58  ;;  %v4647_v1 = vcombine.low %v4487_v57, %v4519_v61  ;;  %v5019_v56 = vld [vmem:[%s7998_s0 + $0xf0] ss:$0 sps:$4 sm:$0xff]   ;;  %v399_v58 = vshrl.u32 %v4555_v41, 16 }
  0x4a   :  { %v1084_v11 = vshll.u32 %v4648_v0, 16  ;;  %v1077_v13 = vshll.u32 %v4647_v1, 16  ;;  %v1075_v21 = vshrl.u32 %v4647_v1, 16 }
  0x4c   :  { %464 = vrot.lane.b32.xlu1 %v383_v14, %s5218_s13  ;;  %462 = vrot.lane.b32.xlu0 %v376_v15, %s5218_s13  ;;  %v4650_v14 = vcombine.low %v4490_v62, %v4522_v5  ;;  %v4649_v15 = vcombine.low %v4489_v63, %v4521_v7  ;;  %v1086_v20 = vrot.slane %v1084_v11, 1  ;;  %v1079_v22 = vrot.slane %v1077_v13, 1 }
  0x4d   :  { %v415_v63 = vshll.u32 %v4557_v53, 16 }
  0x4e   :  { %v1091_v25 = vshll.u32 %v4649_v15, 16  ;;  %v1080_v28 = vor.u32 %v1079_v22, %v1075_v21  ;;  %v1096_v35 = vshrl.u32 %v4650_v14, 16  ;;  %v4476_v21 = vld [vmem:[%s7998_s0 + $0x174] sm:$0x1] }
  0x50   :  { %468 = vrot.lane.b32.xlu1 %v397_v18, %s5218_s13  ;;  %466 = vrot.lane.b32.xlu0 %v390_v19, %s5218_s13  ;;  %v5016_v18 = vld [vmem:[%s7998_s0 + $0xc8] ss:$0 sps:$4 sm:$0xff]   ;;  %v1082_v19 = vshrl.u32 %v4648_v0, 16  ;;  %v1093_v38 = vrot.slane %v1091_v25, 1  ;;  %v4475_v25 = vld [vmem:[%s7998_s0 + $0x16c] sm:$0x1] }
  0x52   :  { %v1087_v27 = vor.u32 %v1086_v20, %v1082_v19 }
  0x54   :  { %544 = vrot.lane.b32.xlu1 %v4568_v23, %s5219_s27  ;;  %542 = vrot.lane.b32.xlu0 %v4567_v24, %s5219_s27  ;;  %v1098_v24 = vshll.u32 %v4650_v14, 16 }
  0x58   :  { %548 = vrot.lane.b32.xlu1 %v4570_v30, %s5219_s27  ;;  %546 = vrot.lane.b32.xlu0 %v4569_v31, %s5219_s27  ;;  %v75_v31 = vld [vmem:[%s7998_s0 + $0x54] sm:$0x1] }
  0x5c   :  { %624 = vrot.lane.b32.xlu1 %v5001_v36, %s5220_s19  ;;  %622 = vrot.lane.b32.xlu0 %v5002_v37, %s5220_s19  ;;  %v1100_v36 = vrot.slane %v1098_v24, 1  ;;  %v1089_v37 = vshrl.u32 %v4649_v15, 16 }
  0x5e   :  { %v1101_v48 = vor.u32 %v1100_v36, %v1096_v35  ;;  %v1094_v49 = vor.u32 %v1093_v38, %v1089_v37  ;;  %v4478_v38 = vld [vmem:[%s7998_s0 + $0x184] sm:$0x1] }
  0x60   :  { %628 = vrot.lane.b32.xlu1 %v5003_v40, %s5220_s19  ;;  %626 = vrot.lane.b32.xlu0 %v5004_v43, %s5220_s19  ;;  %v4556_v40 = vcombine.low %v5587_v29, %v75_v31  ;;  %v77_v43 = vld [vmem:[%s7998_s0 + $0x64] sm:$0x1] }
  0x61   :  { %v4558_v52 = vcombine.low %v5615_v42, %v77_v43 }
  0x62   :  { %v406_v57 = vshrl.u32 %v4556_v40, 16 }
  0x63   :  { %v422_v62 = vshll.u32 %v4558_v52, 16 }
  0x64   :  { %816 = vrot.lane.b32.xlu1 %v735_v50, %s5221_s22  ;;  %814 = vrot.lane.b32.xlu0 %v728_v51, %s5221_s22  ;;  %v408_v50 = vshll.u32 %v4556_v40, 16  ;;  %v401_v51 = vshll.u32 %v4555_v41, 16 }
  0x66   :  { %v403_v61 = vrot.slane %v401_v51, 1 }
  0x68   :  { %820 = vrot.lane.b32.xlu1 %v749_v54, %s5221_s22  ;;  %818 = vrot.lane.b32.xlu0 %v742_v55, %s5221_s22  ;;  %v404_v7 = vor.u32 %v403_v61, %v399_v58 }
  0x6c   :  { %896 = vrot.lane.b32.xlu1 %v4616_v59, %s5222_s17  ;;  %894 = vrot.lane.b32.xlu0 %v4615_v60, %s5222_s17  ;;  %v5020_v59 = vld [vmem:[%s7998_s0 + $0xe8] ss:$0 sps:$4 sm:$0xff]   ;;  %v410_v60 = vrot.slane %v408_v50, 1 }
  0x6e   :  { %v411_v5 = vor.u32 %v410_v60, %v406_v57 }
  0x70   :  { %900 = vrot.lane.b32.xlu1 %v4618_v2, %s5222_s17  ;;  %898 = vrot.lane.b32.xlu0 %v4617_v3, %s5222_s17  ;;  %v420_v2 = vshrl.u32 %v4558_v52, 16  ;;  %v413_v3 = vshrl.u32 %v4557_v53, 16 }
  0x74   :  { %976 = vrot.lane.b32.xlu1 %v5013_v8, %s5223_s12  ;;  %974 = vrot.lane.b32.xlu0 %v5014_v9, %s5223_s12  ;;  %v5573_v17 = vpop.permute.xlu1 %234  ;;  %v5578_v23 = vpop.permute.xlu0 %230  ;;  %v424_v8 = vrot.slane %v422_v62, 1  ;;  %v417_v9 = vrot.slane %v415_v63, 1 }
  0x76   :  { %v425_v14 = vor.u32 %v424_v8, %v420_v2  ;;  %v418_v15 = vor.u32 %v417_v9, %v413_v3 }
  0x78   :  { %980 = vrot.lane.b32.xlu1 %v5015_v16, %s5223_s12  ;;  %978 = vrot.lane.b32.xlu0 %v5016_v18, %s5223_s12  ;;  %v5582_v26 = vpop.permute.xlu1 %236  ;;  %v5589_v30 = vpop.permute.xlu0 %232  ;;  %v4444_v16 = vld [vmem:[%s7998_s0 + $0x170] sm:$0xf]  ;;  %v4443_v18 = vld [vmem:[%s7998_s0 + $0x168] sm:$0xf] }
  0x79   :  { %v4572_v22 = vcombine.low %v4444_v16, %v4444_v16  ;;  %v4571_v24 = vcombine.low %v4443_v18, %v4443_v18  ;;  %v4603_v35 = vcombine.low %v4443_v18, %v4475_v25  ;;  %v4491_v25 = vld [vmem:[%s7998_s0 + $0x50] sm:$0xf] }
  0x7b   :  { %v753_v51 = vshll.u32 %v4603_v35, 16  ;;  %v751_v58 = vshrl.u32 %v4603_v35, 16 }
  0x7c   :  { %1168 = vrot.lane.b32.xlu1 %v1087_v27, %s5224_s24  ;;  %1166 = vrot.lane.b32.xlu0 %v1080_v28, %s5224_s24  ;;  %v4446_v27 = vld [vmem:[%s7998_s0 + $0x180] sm:$0xf]  ;;  %v4445_v28 = vld [vmem:[%s7998_s0 + $0x178] sm:$0xf] }
  0x7d   :  { %v4574_v36 = vcombine.low %v4446_v27, %v4446_v27  ;;  %v4573_v37 = vcombine.low %v4445_v28, %v4445_v28  ;;  %v4606_v43 = vcombine.low %v4446_v27, %v4478_v38  ;;  %v755_v61 = vrot.slane %v753_v51, 1  ;;  %v4523_v38 = vld [vmem:[%s7998_s0 + $0x54] sm:$0x1] }
  0x7e   :  { %v5628_v46 = vpop.permute.xlu1 %456  ;;  %v5630_v47 = vpop.permute.xlu0 %454  ;;  %v5768_v51 = vcombine.low %v4491_v25, %v4523_v38 }
  0x7f   :  { %v774_v62 = vshll.u32 %v4606_v43, 16  ;;  %v756_v9 = vor.u32 %v755_v61, %v751_v58 }
  0x80   :  { %248 = vrot.lane.b32.xlu1 %v5017_v34, %s5217_s15  ;;  %246 = vrot.lane.b32.xlu0 %v5018_v39, %s5217_s15  ;;  %v4604_v34 = vcombine.low %v4444_v16, %v4476_v21  ;;  %v4477_v39 = vld [vmem:[%s7998_s0 + $0x17c] sm:$0x1] }
  0x81   :  { %v4605_v45 = vcombine.low %v4445_v28, %v4477_v39  ;;  %v4619_v39 = vcombine.low %v4491_v25, %v4491_v25 }
  0x82   :  { %v5636_v54 = vpop.permute.xlu1 %460  ;;  %v5638_v55 = vpop.permute.xlu0 %458  ;;  %v760_v50 = vshll.u32 %v4604_v34, 16  ;;  %v758_v57 = vshrl.u32 %v4604_v34, 16  ;;  %v4524_v34 = vld [vmem:[%s7998_s0 + $0x5c] sm:$0x1] }
  0x83   :  { %v767_v63 = vshll.u32 %v4605_v45, 16 }
  0x84   :  { %1172 = vrot.lane.b32.xlu1 %v1101_v48, %s5224_s24  ;;  %1170 = vrot.lane.b32.xlu0 %v1094_v49, %s5224_s24  ;;  %v5033_v48 = vld [vmem:[%s7998_s0 + $0x200] ss:$0 sps:$4 sm:$0xff]   ;;  %v5034_v49 = vld [vmem:[%s7998_s0 + $0x1f8] ss:$0 sps:$4 sm:$0xff]   ;;  %v762_v60 = vrot.slane %v760_v50, 1 }
  0x86   :  { %v5648_v0 = vpop.permute.xlu1 %536  ;;  %v5650_v1 = vpop.permute.xlu0 %534  ;;  %v763_v8 = vor.u32 %v762_v60, %v758_v57 }
  0x88   :  { %252 = vrot.lane.b32.xlu1 %v5019_v56, %s5217_s15  ;;  %250 = vrot.lane.b32.xlu0 %v5020_v59, %s5217_s15  ;;  %v5035_v56 = vld [vmem:[%s7998_s0 + $0x210] ss:$0 sps:$4 sm:$0xff]   ;;  %v5036_v59 = vld [vmem:[%s7998_s0 + $0x208] ss:$0 sps:$4 sm:$0xff]  }
  0x8a   :  { %v5654_v11 = vpop.permute.xlu1 %540  ;;  %v5656_v13 = vpop.permute.xlu0 %538 }
  0x8c   :  { %472 = vrot.lane.b32.xlu1 %v411_v5, %s5218_s13  ;;  %470 = vrot.lane.b32.xlu0 %v404_v7, %s5218_s13  ;;  %v772_v5 = vshrl.u32 %v4606_v43, 16  ;;  %v765_v7 = vshrl.u32 %v4605_v45, 16  ;;  %v4494_v43 = vld [vmem:[%s7998_s0 + $0x68] sm:$0xf] }
  0x8e   :  { %v5666_v19 = vpop.permute.xlu1 %616  ;;  %v5668_v20 = vpop.permute.xlu0 %614 }
  0x90   :  { %476 = vrot.lane.b32.xlu1 %v425_v14, %s5218_s13  ;;  %474 = vrot.lane.b32.xlu0 %v418_v15, %s5218_s13  ;;  %v776_v14 = vrot.slane %v774_v62, 1  ;;  %v769_v15 = vrot.slane %v767_v63, 1  ;;  %v4526_v62 = vld [vmem:[%s7998_s0 + $0x6c] sm:$0x1]  ;;  %v4525_v63 = vld [vmem:[%s7998_s0 + $0x64] sm:$0x1] }
  0x92   :  { %v5684_v31 = vpop.permute.xlu1 %620  ;;  %v5686_v33 = vpop.permute.xlu0 %618  ;;  %v777_v21 = vor.u32 %v776_v14, %v772_v5  ;;  %v1202_v5 = vsel %vm1190_vm1, %v5316_v10, %v5582_v26  ;;  %v1105_v14 = vshll.u32 %v5768_v51, 16 }
  0x94   :  { %552 = vrot.lane.b32.xlu1 %v4572_v22, %s5219_s27  ;;  %550 = vrot.lane.b32.xlu0 %v4571_v24, %s5219_s27  ;;  %v770_v22 = vor.u32 %v769_v15, %v765_v7  ;;  %v4492_v24 = vld [vmem:[%s7998_s0 + $0x58] sm:$0xf]  ;;  %v4654_v15 = vcombine.low %v4494_v43, %v4526_v62 }
  0x95   :  { %v4620_v35 = vcombine.low %v4492_v24, %v4492_v24  ;;  %v5762_v50 = vcombine.low %v4492_v24, %v4524_v34  ;;  %v1107_v34 = vrot.slane %v1105_v14, 1  ;;  %v5054_v14 = vld [vmem:[%s7998_s0 + $0x110] ss:$0 sps:$4 sm:$0xff]  }
  0x96   :  { %v5696_v40 = vpop.permute.xlu1 %808  ;;  %v5698_v41 = vpop.permute.xlu0 %806 }
  0x97   :  { %v1110_v25 = vshrl.u32 %v5762_v50, 16 }
  0x98   :  { %556 = vrot.lane.b32.xlu1 %v4574_v36, %s5219_s27  ;;  %554 = vrot.lane.b32.xlu0 %v4573_v37, %s5219_s27  ;;  %v1193_v36 = vsel %vm1190_vm1, %v5306_v6, %v5578_v23  ;;  %v1196_v37 = vsel %vm1190_vm1, %v5297_v4, %v5589_v30  ;;  %v4493_v23 = vld [vmem:[%s7998_s0 + $0x60] sm:$0xf] }
  0x99   :  { %v1243_v6 = vsel %vm1239_vm2, %v1196_v37, %v5628_v46  ;;  %v1241_v4 = vsel %vm1239_vm2, %v1193_v36, %v5630_v47  ;;  %v4621_v57 = vcombine.low %v4493_v23, %v4493_v23 }
  0x9a   :  { %v5708_v52 = vpop.permute.xlu1 %812  ;;  %v5710_v53 = vpop.permute.xlu0 %810  ;;  %v1276_v30 = vsel %vm1272_vm3, %v1243_v6, %v5648_v0  ;;  %v1274_v45 = vsel %vm1272_vm3, %v1241_v4, %v5650_v1  ;;  %v1126_v6 = vshll.u32 %v4654_v15, 16 }
  0x9b   :  { %v1309_v46 = vsel %vm1305_vm4, %v1276_v30, %v5666_v19  ;;  %v1307_v47 = vsel %vm1305_vm4, %v1274_v45, %v5668_v20  ;;  %v79_v45 = vld [vmem:[%s7998_s0 + $0x74] sm:$0x1] }
  0x9c   :  { %632 = vrot.lane.b32.xlu1 %v5033_v48, %s5220_s19  ;;  %630 = vrot.lane.b32.xlu0 %v5034_v49, %s5220_s19  ;;  %v1342_v0 = vsel %vm1338_vm5, %v1309_v46, %v5696_v40  ;;  %v1340_v1 = vsel %vm1338_vm5, %v1307_v47, %v5698_v41  ;;  %v5052_v47 = vld [vmem:[%s7998_s0 + $0x100] ss:$0 sps:$4 sm:$0xff]  }
  0x9e   :  { %v889_v2 = vpop.permute.xlu1 %888  ;;  %v887_v3 = vpop.permute.xlu0 %886 }
  0x9f   :  { %v1375_v19 = vsel %vm1371_vm6, %v1342_v0, %v889_v2  ;;  %v1373_v58 = vsel %vm1371_vm6, %v1340_v1, %v887_v3  ;;  %v1112_v2 = vshll.u32 %v5762_v50, 16  ;;  %v1199_v3 = vsel %vm1190_vm1, %v5324_v12, %v5573_v17 }
  0xa0   :  { %636 = vrot.lane.b32.xlu1 %v5035_v56, %s5220_s19  ;;  %634 = vrot.lane.b32.xlu0 %v5036_v59, %s5220_s19  ;;  %v4622_v56 = vcombine.low %v4494_v43, %v4494_v43  ;;  %v1247_v12 = vsel %vm1239_vm2, %v1202_v5, %v5636_v54  ;;  %v1245_v10 = vsel %vm1239_vm2, %v1199_v3, %v5638_v55 }
  0xa1   :  { %v1280_v17 = vsel %vm1272_vm3, %v1247_v12, %v5654_v11  ;;  %v1278_v26 = vsel %vm1272_vm3, %v1245_v10, %v5656_v13  ;;  %v1103_v11 = vshrl.u32 %v5768_v51, 16  ;;  %v1124_v51 = vshrl.u32 %v4654_v15, 16 }
  0xa2   :  { %v5722_v16 = vpop.permute.xlu1 %892  ;;  %v5724_v18 = vpop.permute.xlu0 %890  ;;  %v1313_v54 = vsel %vm1305_vm4, %v1280_v17, %v5684_v31  ;;  %v1311_v55 = vsel %vm1305_vm4, %v1278_v26, %v5686_v33  ;;  %v5050_v31 = vld [vmem:[%s7998_s0 + $0xf8] ss:$0 sps:$4 sm:$0xff]   ;;  %v5051_v33 = vld [vmem:[%s7998_s0 + $0xf0] ss:$0 sps:$4 sm:$0xff]   ;;  %v5055_v17 = vld [vmem:[%s7998_s0 + $0x108] ss:$0 sps:$4 sm:$0xff]  }
  0xa3   :  { %v1346_v13 = vsel %vm1338_vm5, %v1313_v54, %v5708_v52  ;;  %v1108_v30 = vor.u32 %v1107_v34, %v1103_v11 }
  0xa4   :  { %824 = vrot.lane.b32.xlu1 %v763_v8, %s5221_s22  ;;  %822 = vrot.lane.b32.xlu0 %v756_v9, %s5221_s22  ;;  %v5047_v8 = vld [vmem:[%s7998_s0 + $0xe8] ss:$0 sps:$4 sm:$0xff]   ;;  %v5048_v9 = vld [vmem:[%s7998_s0 + $0xe0] ss:$0 sps:$4 sm:$0xff]   ;;  %v1379_v52 = vsel %vm1371_vm6, %v1346_v13, %v5722_v16 }
  0xa6   :  { %v969_v27 = vpop.permute.xlu1 %968  ;;  %v967_v28 = vpop.permute.xlu0 %966 }
  0xa7   :  { %v1408_v20 = vsel %vm1404_vm7, %v1375_v19, %v969_v27  ;;  %v1406_v59 = vsel %vm1404_vm7, %v1373_v58, %v967_v28  ;;  %v1344_v27 = vsel %vm1338_vm5, %v1311_v55, %v5710_v53  ;;  %v1114_v28 = vrot.slane %v1112_v2, 1 }
  0xa8   :  { %828 = vrot.lane.b32.xlu1 %v777_v21, %s5221_s22  ;;  %826 = vrot.lane.b32.xlu0 %v770_v22, %s5221_s22  ;;  %v4653_v21 = vcombine.low %v4493_v23, %v4525_v63  ;;  %v1377_v53 = vsel %vm1371_vm6, %v1344_v27, %v5724_v18  ;;  %v5848_v18 = vld [vmem:[%s7998_s0 + $0x70] sm:$0xf] }
  0xa9   :  { %v1115_v16 = vor.u32 %v1114_v28, %v1110_v25  ;;  %v4560_v19 = vcombine.low %v5848_v18, %v79_v45 }
  0xaa   :  { %v973_v48 = vpop.permute.xlu1 %972  ;;  %v971_v49 = vpop.permute.xlu0 %970  ;;  %v1119_v4 = vshll.u32 %v4653_v21, 16  ;;  %v1117_v0 = vshrl.u32 %v4653_v21, 16 }
  0xab   :  { %v1410_v36 = vsel %vm1404_vm7, %v1377_v53, %v971_v49  ;;  %v78_v49 = vld [vmem:[%s7998_s0 + $0x6c] sm:$0x1]  ;;  %v436_v2 = vshll.u32 %v4560_v19, 16  ;;  %v434_v12 = vshrl.u32 %v4560_v19, 16 }
  0xac   :  { %904 = vrot.lane.b32.xlu1 %v4620_v35, %s5222_s17  ;;  %902 = vrot.lane.b32.xlu0 %v4619_v39, %s5222_s17  ;;  %v1412_v35 = vsel %vm1404_vm7, %v1379_v52, %v973_v48  ;;  %v5856_v48 = vld [vmem:[%s7998_s0 + $0x68] sm:$0xf]  ;;  %v1121_v1 = vrot.slane %v1119_v4, 1  ;;  %v4479_v4 = vld [vmem:[%s7998_s0 + $0x18c] sm:$0x1] }
  0xad   :  { %v4559_v58 = vcombine.low %v5856_v48, %v78_v49  ;;  %v438_v26 = vrot.slane %v436_v2, 1  ;;  %v5068_v2 = vld [vmem:[%s7998_s0 + $0x220] ss:$0 sps:$4 sm:$0xff]  }
  0xae   :  { %v1161_v60 = vpop.permute.xlu1 %1160  ;;  %v1159_v61 = vpop.permute.xlu0 %1158  ;;  %v1122_v63 = vor.u32 %v1121_v1, %v1117_v0  ;;  %v4482_v1 = vld [vmem:[%s7998_s0 + $0x1a4] sm:$0x1] }
  0xaf   :  { %v1441_v40 = vsel %vm1437_vm8, %v1408_v20, %v1161_v60  ;;  %v1439_v41 = vsel %vm1437_vm8, %v1406_v59, %v1159_v61  ;;  %v5879_v20 = vld [vmem:[%s7998_s0 + $0x80] sm:$0xf]  ;;  %v81_v59 = vld [vmem:[%s7998_s0 + $0x84] sm:$0x1]  ;;  %v5887_v60 = vld [vmem:[%s7998_s0 + $0x78] sm:$0xf]  ;;  %v439_v27 = vor.u32 %v438_v26, %v434_v12 }
  0xb0   :  { %908 = vrot.lane.b32.xlu1 %v4622_v56, %s5222_s17  ;;  %906 = vrot.lane.b32.xlu0 %v4621_v57, %s5222_s17  ;;  %v4659_v7 = vcombine.low %v1439_v41, %v1441_v40  ;;  %v1128_v56 = vrot.slane %v1126_v6, 1  ;;  %v5053_v57 = vld [vmem:[%s7998_s0 + $0xf8] ss:$0 sps:$4 sm:$0xff]   ;;  %v80_v61 = vld [vmem:[%s7998_s0 + $0x7c] sm:$0x1]  ;;  %v429_v3 = vshll.u32 %v4559_v58, 16  ;;  %v4562_v5 = vcombine.low %v5879_v20, %v81_v59 }
  0xb1   :  { %v427_v10 = vshrl.u32 %v4559_v58, 16  ;;  %v5070_v26 = vld [vmem:[%s7998_s0 + $0x230] ss:$0 sps:$4 sm:$0xff]  }
  0xb2   :  { %v5812_v22 = vpop.permute.xlu1 %240  ;;  %4895 = vmatprep.mubr.msk.bf16.mxu0 %vm1530_vm9, %v4659_v7  ;;  %v5815_v24 = vpop.permute.xlu0 %238  ;;  %v1129_v62 = vor.u32 %v1128_v56, %v1124_v51  ;;  %v4561_v7 = vcombine.low %v5887_v60, %v80_v61  ;;  %v431_v15 = vrot.slane %v429_v3, 1  ;;  %v450_v21 = vshll.u32 %v4562_v5, 16  ;;  %v5069_v3 = vld [vmem:[%s7998_s0 + $0x218] ss:$0 sps:$4 sm:$0xff]  }
  0xb3   :  { %v448_v11 = vshrl.u32 %v4562_v5, 16 }
  0xb4   :  { %984 = vrot.lane.b32.xlu1 %v5047_v8, %s5223_s12  ;;  %982 = vrot.lane.b32.xlu0 %v5048_v9, %s5223_s12  ;;  %v443_v54 = vshll.u32 %v4561_v7, 16  ;;  %v441_v13 = vshrl.u32 %v4561_v7, 16 }
  0xb6   :  { %v1165_v37 = vpop.permute.xlu1 %1164  ;;  %v1163_v38 = vpop.permute.xlu0 %1162  ;;  %v445_v28 = vrot.slane %v443_v54, 1 }
  0xb7   :  { %v1445_v39 = vsel %vm1437_vm8, %v1412_v35, %v1165_v37  ;;  %v1443_v43 = vsel %vm1437_vm8, %v1410_v36, %v1163_v38  ;;  %v4448_v36 = vld [vmem:[%s7998_s0 + $0x190] sm:$0xf]  ;;  %v4447_v37 = vld [vmem:[%s7998_s0 + $0x188] sm:$0xf] }
  0xb8   :  { %v4660_v23 = vcombine.low %v1443_v43, %v1445_v39  ;;  %988 = vrot.lane.b32.xlu1 %v5050_v31, %s5223_s12  ;;  %986 = vrot.lane.b32.xlu0 %v5051_v33, %s5223_s12  ;;  %v432_v31 = vor.u32 %v431_v15, %v427_v10  ;;  %v452_v33 = vrot.slane %v450_v21, 1  ;;  %v446_v35 = vor.u32 %v445_v28, %v441_v13  ;;  %v4480_v43 = vld [vmem:[%s7998_s0 + $0x194] sm:$0x1]  ;;  %v5071_v15 = vld [vmem:[%s7998_s0 + $0x228] ss:$0 sps:$4 sm:$0xff]  }
  0xb9   :  { %v4576_v6 = vcombine.low %v4448_v36, %v4448_v36  ;;  %v4607_v51 = vcombine.low %v4447_v37, %v4479_v4  ;;  %v4496_v4 = vld [vmem:[%s7998_s0 + $0x78] sm:$0xf] }
  0xba   :  { %v5861_v50 = vpop.permute.xlu1 %244  ;;  %4896 = vmatmul.mubr.msk.bf16.vlgmr.msra.gmra.mrb[0].mxu0 %vm1530_vm9, %v4660_v23  ;;  %v5864_v46 = vpop.permute.xlu0 %242  ;;  %v453_v53 = vor.u32 %v452_v33, %v448_v11  ;;  %v4575_v23 = vcombine.low %v4447_v37, %v4447_v37 }
  0xbb   :  { %v781_v61 = vshll.u32 %v4607_v51, 16  ;;  %v779_v10 = vshrl.u32 %v4607_v51, 16  ;;  %v4624_v51 = vcombine.low %v4496_v4, %v4496_v4 }
  0xbc   :  { %1176 = vrot.lane.b32.xlu1 %v1115_v16, %s5224_s24  ;;  %1174 = vrot.lane.b32.xlu0 %v1108_v30, %s5224_s24  ;;  %v4450_v16 = vld [vmem:[%s7998_s0 + $0x1a0] sm:$0xf]  ;;  %v4449_v30 = vld [vmem:[%s7998_s0 + $0x198] sm:$0xf] }
  0xbd   :  { %v4578_v56 = vcombine.low %v4450_v16, %v4450_v16  ;;  %v4577_v0 = vcombine.low %v4449_v30, %v4449_v30 }
  0xbe   :  { %v5892_v40 = vpop.permute.xlu1 %464  ;;  %v5894_v41 = vpop.permute.xlu0 %462 }
  0xc0   :  { %256 = vrot.lane.b32.xlu1 %v5052_v47, %s5217_s15  ;;  %254 = vrot.lane.b32.xlu0 %v5053_v57, %s5217_s15  ;;  %v4608_v47 = vcombine.low %v4448_v36, %v4480_v43  ;;  %v4481_v57 = vld [vmem:[%s7998_s0 + $0x19c] sm:$0x1] }
  0xc2   :  { %v5900_v8 = vpop.permute.xlu1 %468  ;;  %v5902_v9 = vpop.permute.xlu0 %466  ;;  %v788_v59 = vshll.u32 %v4608_v47, 16 }
  0xc4   :  { %1180 = vrot.lane.b32.xlu1 %v1129_v62, %s5224_s24  ;;  %1178 = vrot.lane.b32.xlu0 %v1122_v63, %s5224_s24  ;;  %v4610_v62 = vcombine.low %v4450_v16, %v4482_v1  ;;  %v4609_v63 = vcombine.low %v4449_v30, %v4481_v57  ;;  %v790_v12 = vrot.slane %v788_v59, 1  ;;  %v5212_v1 = vld [vmem:[%s7998_s0 + $0x20] sm:$0xf]  ;;  %v4527_v59 = vld [vmem:[%s7998_s0 + $0x74] sm:$0x1] }
  0xc5   :  { %v1205_v57 = vsel %vm1190_vm1, %v5212_v1, %v5815_v24  ;;  %v4497_v24 = vld [vmem:[%s7998_s0 + $0x80] sm:$0xf] }
  0xc6   :  { %v5912_v55 = vpop.permute.xlu1 %544  ;;  %v5914_v25 = vpop.permute.xlu0 %542  ;;  %v802_v21 = vshll.u32 %v4610_v62, 16  ;;  %v795_v54 = vshll.u32 %v4609_v63, 16  ;;  %v800_v33 = vshrl.u32 %v4610_v62, 16 }
  0xc8   :  { %260 = vrot.lane.b32.xlu1 %v5054_v14, %s5217_s15  ;;  %258 = vrot.lane.b32.xlu0 %v5055_v17, %s5217_s15  ;;  %v786_v14 = vshrl.u32 %v4608_v47, 16  ;;  %v783_v17 = vrot.slane %v781_v61, 1  ;;  %v804_v28 = vrot.slane %v802_v21, 1  ;;  %v4528_v47 = vld [vmem:[%s7998_s0 + $0x7c] sm:$0x1] }
  0xca   :  { %v5918_v34 = vpop.permute.xlu1 %548  ;;  %v5920_v52 = vpop.permute.xlu0 %546  ;;  %v805_v43 = vor.u32 %v804_v28, %v800_v33 }
  0xcc   :  { %480 = vrot.lane.b32.xlu1 %v439_v27, %s5218_s13  ;;  %478 = vrot.lane.b32.xlu0 %v432_v31, %s5218_s13  ;;  %v791_v27 = vor.u32 %v790_v12, %v786_v14  ;;  %v784_v31 = vor.u32 %v783_v17, %v779_v10  ;;  %v4656_v10 = vcombine.low %v4496_v4, %v4528_v47  ;;  %v5214_v4 = vld [vmem:[%s7998_s0 + $0x30] sm:$0xf] }
  0xce   :  { %v5930_v38 = vpop.permute.xlu1 %624  ;;  %v5932_v39 = vpop.permute.xlu0 %622  ;;  %v1140_v28 = vshll.u32 %v4656_v10, 16 }
  0xd0   :  { %484 = vrot.lane.b32.xlu1 %v453_v53, %s5218_s13  ;;  %482 = vrot.lane.b32.xlu0 %v446_v35, %s5218_s13  ;;  %v793_v53 = vshrl.u32 %v4609_v63, 16  ;;  %v797_v35 = vrot.slane %v795_v54, 1  ;;  %v1249_v63 = vsel %vm1239_vm2, %v1205_v57, %v5894_v41  ;;  %v1138_v57 = vshrl.u32 %v4656_v10, 16 }
  0xd2   :  { %v5948_v45 = vpop.permute.xlu1 %628  ;;  %v5950_v49 = vpop.permute.xlu0 %626 }
  0xd4   :  { %560 = vrot.lane.b32.xlu1 %v4576_v6, %s5219_s27  ;;  %558 = vrot.lane.b32.xlu0 %v4575_v23, %s5219_s27  ;;  %v798_v6 = vor.u32 %v797_v35, %v793_v53  ;;  %v4495_v23 = vld [vmem:[%s7998_s0 + $0x70] sm:$0xf] }
  0xd5   :  { %v4623_v61 = vcombine.low %v4495_v23, %v4495_v23  ;;  %v4655_v41 = vcombine.low %v4495_v23, %v4527_v59  ;;  %v1211_v23 = vsel %vm1190_vm1, %v5214_v4, %v5864_v46  ;;  %v1142_v59 = vrot.slane %v1140_v28, 1 }
  0xd6   :  { %v5960_v19 = vpop.permute.xlu1 %816  ;;  %v5962_v58 = vpop.permute.xlu0 %814 }
  0xd8   :  { %564 = vrot.lane.b32.xlu1 %v4578_v56, %s5219_s27  ;;  %562 = vrot.lane.b32.xlu0 %v4577_v0, %s5219_s27  ;;  %v5211_v56 = vld [vmem:[%s7998_s0 + $0x28] sm:$0xf] }
  0xd9   :  { %v1208_v0 = vsel %vm1190_vm1, %v5211_v56, %v5812_v22  ;;  %v4498_v22 = vld [vmem:[%s7998_s0 + $0x88] sm:$0xf] }
  0xda   :  { %v5972_v5 = vpop.permute.xlu1 %820  ;;  %v5974_v7 = vpop.permute.xlu0 %818  ;;  %v1251_v62 = vsel %vm1239_vm2, %v1208_v0, %v5892_v40 }
  0xdc   :  { %640 = vrot.lane.b32.xlu1 %v5068_v2, %s5220_s19  ;;  %638 = vrot.lane.b32.xlu0 %v5069_v3, %s5220_s19  ;;  %v1284_v2 = vsel %vm1272_vm3, %v1251_v62, %v5912_v55  ;;  %v1282_v3 = vsel %vm1272_vm3, %v1249_v63, %v5914_v25  ;;  %v5082_v62 = vld [vmem:[%s7998_s0 + $0x118] ss:$0 sps:$4 sm:$0xff]  }
  0xdd   :  { %v1317_v17 = vsel %vm1305_vm4, %v1284_v2, %v5930_v38  ;;  %v1315_v40 = vsel %vm1305_vm4, %v1282_v3, %v5932_v39  ;;  %v4529_v38 = vld [vmem:[%s7998_s0 + $0x84] sm:$0x1]  ;;  %v4625_v39 = vcombine.low %v4497_v24, %v4497_v24 }
  0xde   :  { %v897_v11 = vpop.permute.xlu1 %896  ;;  %v895_v13 = vpop.permute.xlu0 %894  ;;  %v1350_v55 = vsel %vm1338_vm5, %v1317_v17, %v5960_v19  ;;  %v1348_v25 = vsel %vm1338_vm5, %v1315_v40, %v5962_v58  ;;  %v1143_v17 = vor.u32 %v1142_v59, %v1138_v57 }
  0xdf   :  { %v1383_v21 = vsel %vm1371_vm6, %v1350_v55, %v897_v11  ;;  %v1381_v54 = vsel %vm1371_vm6, %v1348_v25, %v895_v13  ;;  %v5213_v11 = vld [vmem:[%s7998_s0 + $0x38] sm:$0xf] }
  0xe0   :  { %644 = vrot.lane.b32.xlu1 %v5070_v26, %s5220_s19  ;;  %642 = vrot.lane.b32.xlu0 %v5071_v15, %s5220_s19  ;;  %v4530_v26 = vld [vmem:[%s7998_s0 + $0x8c] sm:$0x1]  ;;  %v4626_v15 = vcombine.low %v4498_v22, %v4498_v22  ;;  %v1214_v13 = vsel %vm1190_vm1, %v5213_v11, %v5861_v50  ;;  %v5081_v50 = vld [vmem:[%s7998_s0 + $0x100] ss:$0 sps:$4 sm:$0xff]  }
  0xe1   :  { %v4658_v58 = vcombine.low %v4498_v22, %v4530_v26  ;;  %v1255_v47 = vsel %vm1239_vm2, %v1214_v13, %v5900_v8 }
  0xe2   :  { %v5986_v36 = vpop.permute.xlu1 %900  ;;  %v5988_v37 = vpop.permute.xlu0 %898  ;;  %v1288_v46 = vsel %vm1272_vm3, %v1255_v47, %v5918_v34 }
  0xe3   :  { %v1321_v8 = vsel %vm1305_vm4, %v1288_v46, %v5948_v45  ;;  %v5083_v45 = vld [vmem:[%s7998_s0 + $0x110] ss:$0 sps:$4 sm:$0xff]  }
  0xe4   :  { %832 = vrot.lane.b32.xlu1 %v791_v27, %s5221_s22  ;;  %830 = vrot.lane.b32.xlu0 %v784_v31, %s5221_s22  ;;  %v1354_v34 = vsel %vm1338_vm5, %v1321_v8, %v5972_v5 }
  0xe5   :  { %v1387_v5 = vsel %vm1371_vm6, %v1354_v34, %v5986_v36 }
  0xe6   :  { %v977_v16 = vpop.permute.xlu1 %976  ;;  %v975_v30 = vpop.permute.xlu0 %974 }
  0xe7   :  { %v1416_v27 = vsel %vm1404_vm7, %v1383_v21, %v977_v16  ;;  %v1414_v19 = vsel %vm1404_vm7, %v1381_v54, %v975_v30  ;;  %v5080_v30 = vld [vmem:[%s7998_s0 + $0x108] ss:$0 sps:$4 sm:$0xff]   ;;  %s5226_s0 = smov 48  }
  0xe8   :  { %836 = vrot.lane.b32.xlu1 %v805_v43, %s5221_s22  ;;  %834 = vrot.lane.b32.xlu0 %v798_v6, %s5221_s22  ;;  %v4657_v43 = vcombine.low %v4497_v24, %v4529_v38  ;;  %v1133_v6 = vshll.u32 %v4655_v41, 16 }
  0xea   :  { %v981_v14 = vpop.permute.xlu1 %980  ;;  %v979_v12 = vpop.permute.xlu0 %978  ;;  %v1135_v22 = vrot.slane %v1133_v6, 1  ;;  %v1147_v63 = vshll.u32 %v4657_v43, 16 }
  0xeb   :  { %v1420_v24 = vsel %vm1404_vm7, %v1387_v5, %v981_v14 }
  0xec   :  { %912 = vrot.lane.b32.xlu1 %v4624_v51, %s5222_s17  ;;  %910 = vrot.lane.b32.xlu0 %v4623_v61, %s5222_s17  ;;  %v1253_v51 = vsel %vm1239_vm2, %v1211_v23, %v5902_v9  ;;  %v1131_v61 = vshrl.u32 %v4655_v41, 16  ;;  %v1149_v25 = vrot.slane %v1147_v63, 1 }
  0xed   :  { %v1286_v56 = vsel %vm1272_vm3, %v1253_v51, %v5920_v52 }
  0xee   :  { %v1169_v31 = vpop.permute.xlu1 %1168  ;;  %v1167_v33 = vpop.permute.xlu0 %1166  ;;  %v1319_v9 = vsel %vm1305_vm4, %v1286_v56, %v5950_v49  ;;  %v1154_v49 = vshll.u32 %v4658_v58, 16  ;;  %v1136_v26 = vor.u32 %v1135_v22, %v1131_v61 }
  0xef   :  { %v1449_v53 = vsel %vm1437_vm8, %v1416_v27, %v1169_v31  ;;  %v1447_v35 = vsel %vm1437_vm8, %v1414_v19, %v1167_v33  ;;  %v1352_v52 = vsel %vm1338_vm5, %v1319_v9, %v5974_v7 }
  0xf0   :  { %v4661_v16 = vcombine.low %v1447_v35, %v1449_v53  ;;  %916 = vrot.lane.b32.xlu1 %v4626_v15, %s5222_s17  ;;  %914 = vrot.lane.b32.xlu0 %v4625_v39, %s5222_s17  ;;  %v1385_v7 = vsel %vm1371_vm6, %v1352_v52, %v5988_v37  ;;  %v1152_v15 = vshrl.u32 %v4658_v58, 16  ;;  %v1156_v36 = vrot.slane %v1154_v49, 1 }
  0xf1   :  { %v1418_v2 = vsel %vm1404_vm7, %v1385_v7, %v979_v12  ;;  %v1145_v37 = vshrl.u32 %v4657_v43, 16 }
  0xf2   :  { %v6078_v0 = vpop.permute.xlu1 %248  ;;  %4899 = vmatprep.mubr.msk.bf16.mxu0 %vm1530_vm9, %v4661_v16  ;;  %v6081_v1 = vpop.permute.xlu0 %246  ;;  %v1157_v38 = vor.u32 %v1156_v36, %v1152_v15 }
  0xf3   :  { %v1150_v39 = vor.u32 %v1149_v25, %v1145_v37  ;;  %v1220_v56 = vsel %vm1190_vm1, %v5587_v29, %v6078_v0  ;;  %v1217_v57 = vsel %vm1190_vm1, %v5597_v32, %v6081_v1 }
  0xf4   :  { %992 = vrot.lane.b32.xlu1 %v5080_v30, %s5223_s12  ;;  %990 = vrot.lane.b32.xlu0 %v5081_v50, %s5223_s12 }
  0xf6   :  { %v1173_v3 = vpop.permute.xlu1 %1172  ;;  %v1171_v10 = vpop.permute.xlu0 %1170 }
  0xf7   :  { %v1453_v40 = vsel %vm1437_vm8, %v1420_v24, %v1173_v3  ;;  %v1451_v41 = vsel %vm1437_vm8, %v1418_v2, %v1171_v10 }
  0xf8   :  { %v4662_v55 = vcombine.low %v1451_v41, %v1453_v40  ;;  %996 = vrot.lane.b32.xlu1 %v5082_v62, %s5223_s12  ;;  %994 = vrot.lane.b32.xlu0 %v5083_v45, %s5223_s12  ;;  %s5227_s12 = smov 56  }
  0xfa   :  { %v253_v14 = vpop.permute.xlu1 %252  ;;  %4900 = vmatmul.mubr.msk.bf16.gmra.mrb[4].mxu0 %vm1530_vm9, %v4662_v55  ;;  %v251_v12 = vpop.permute.xlu0 %250 }
  0xfb   :  { %v1226_v2 = vsel %vm1190_vm1, %v5615_v42, %v253_v14  ;;  %v1223_v3 = vsel %vm1190_vm1, %v5623_v44, %v251_v12 }
  0xfc   :  { %1184 = vrot.lane.b32.xlu1 %v1143_v17, %s5224_s24  ;;  %1182 = vrot.lane.b32.xlu0 %v1136_v26, %s5224_s24 }
  0xfe   :  { %v473_v21 = vpop.permute.xlu1 %472  ;;  %v471_v54 = vpop.permute.xlu0 %470 }
  0xff   :  { %v1259_v59 = vsel %vm1239_vm2, %v1220_v56, %v473_v21  ;;  %v1257_v8 = vsel %vm1239_vm2, %v1217_v57, %v471_v54 }
 0x100   :  { %1188 = vrot.lane.b32.xlu1 %v1157_v38, %s5224_s24  ;;  %1186 = vrot.lane.b32.xlu0 %v1150_v39, %s5224_s24 }
 0x102   :  { %v477_v27 = vpop.permute.xlu1 %476  ;;  %v475_v19 = vpop.permute.xlu0 %474 }
 0x103   :  { %v1263_v17 = vsel %vm1239_vm2, %v1226_v2, %v477_v27  ;;  %v1261_v40 = vsel %vm1239_vm2, %v1223_v3, %v475_v19 }
 0x106   :  { %v553_v31 = vpop.permute.xlu1 %552  ;;  %v551_v33 = vpop.permute.xlu0 %550 }
 0x107   :  { %v1292_v9 = vsel %vm1272_vm3, %v1259_v59, %v553_v31  ;;  %v1290_v61 = vsel %vm1272_vm3, %v1257_v8, %v551_v33 }
 0x10a   :  { %v557_v58 = vpop.permute.xlu1 %556  ;;  %v555_v28 = vpop.permute.xlu0 %554 }
 0x10b   :  { %v1296_v41 = vsel %vm1272_vm3, %v1263_v17, %v557_v58  ;;  %v1294_v26 = vsel %vm1272_vm3, %v1261_v40, %v555_v28 }
 0x10e   :  { %v633_v53 = vpop.permute.xlu1 %632  ;;  %v631_v35 = vpop.permute.xlu0 %630 }
 0x10f   :  { %v1325_v52 = vsel %vm1305_vm4, %v1292_v9, %v633_v53  ;;  %v1323_v62 = vsel %vm1305_vm4, %v1290_v61, %v631_v35 }
 0x112   :  { %v637_v43 = vpop.permute.xlu1 %636  ;;  %v635_v6 = vpop.permute.xlu0 %634 }
 0x113   :  { %v1329_v36 = vsel %vm1305_vm4, %v1296_v41, %v637_v43  ;;  %v1327_v42 = vsel %vm1305_vm4, %v1294_v26, %v635_v6 }
 0x116   :  { %v825_v11 = vpop.permute.xlu1 %824  ;;  %v823_v13 = vpop.permute.xlu0 %822 }
 0x117   :  { %v1358_v29 = vsel %vm1338_vm5, %v1325_v52, %v825_v11  ;;  %v1356_v0 = vsel %vm1338_vm5, %v1323_v62, %v823_v13 }
 0x11a   :  { %v829_v4 = vpop.permute.xlu1 %828  ;;  %v827_v23 = vpop.permute.xlu0 %826 }
 0x11b   :  { %v1362_v37 = vsel %vm1338_vm5, %v1329_v36, %v829_v4  ;;  %v1360_v44 = vsel %vm1338_vm5, %v1327_v42, %v827_v23 }
 0x11e   :  { %v905_v16 = vpop.permute.xlu1 %904  ;;  %v903_v30 = vpop.permute.xlu0 %902 }
 0x11f   :  { %v1391_v32 = vsel %vm1371_vm6, %v1358_v29, %v905_v16  ;;  %v1389_v1 = vsel %vm1371_vm6, %v1356_v0, %v903_v30 }
 0x122   :  { %v909_v50 = vpop.permute.xlu1 %908  ;;  %v907_v47 = vpop.permute.xlu0 %906 }
 0x123   :  { %v1395_v25 = vsel %vm1371_vm6, %v1362_v37, %v909_v50  ;;  %v1393_v14 = vsel %vm1371_vm6, %v1360_v44, %v907_v47 }
 0x126   :  { %v985_v51 = vpop.permute.xlu1 %984  ;;  %v983_v46 = vpop.permute.xlu0 %982 }
 0x127   :  { %v1424_v45 = vsel %vm1404_vm7, %v1391_v32, %v985_v51  ;;  %v1422_v49 = vsel %vm1404_vm7, %v1389_v1, %v983_v46 }
 0x12a   :  { %v989_v22 = vpop.permute.xlu1 %988  ;;  %v987_v34 = vpop.permute.xlu0 %986 }
 0x12b   :  { %v1428_v12 = vsel %vm1404_vm7, %v1395_v25, %v989_v22  ;;  %v1426_v38 = vsel %vm1404_vm7, %v1393_v14, %v987_v34 }
 0x12e   :  { %v1177_v63 = vpop.permute.xlu1 %1176  ;;  %v1175_v5 = vpop.permute.xlu0 %1174 }
 0x12f   :  { %v1457_v7 = vsel %vm1437_vm8, %v1424_v45, %v1177_v63  ;;  %v1455_v24 = vsel %vm1437_vm8, %v1422_v49, %v1175_v5 }
 0x130   :  { %v4663_v10 = vcombine.low %v1455_v24, %v1457_v7 }
 0x132   :  { %v257_v15 = vpop.permute.xlu1 %256  ;;  %4903 = vmatprep.mubr.msk.bf16.mxu0 %vm1530_vm9, %v4663_v10  ;;  %v255_v55 = vpop.permute.xlu0 %254 }
 0x133   :  { %v1232_v22 = vsel %vm1190_vm1, %v5848_v18, %v257_v15  ;;  %v1229_v34 = vsel %vm1190_vm1, %v5856_v48, %v255_v55 }
 0x136   :  { %v1181_v39 = vpop.permute.xlu1 %1180  ;;  %v1179_v21 = vpop.permute.xlu0 %1178 }
 0x137   :  { %v1461_v54 = vsel %vm1437_vm8, %v1428_v12, %v1181_v39  ;;  %v1459_v27 = vsel %vm1437_vm8, %v1426_v38, %v1179_v21 }
 0x138   :  { %v4664_v19 = vcombine.low %v1459_v27, %v1461_v54 }
 0x13a   :  { %v261_v31 = vpop.permute.xlu1 %260  ;;  %4904 = vmatmul.mubr.msk.bf16.gmra.mrb[8].mxu0 %vm1530_vm9, %v4664_v19  ;;  %v259_v33 = vpop.permute.xlu0 %258 }
 0x13b   :  { %v1238_v18 = vsel %vm1190_vm1, %v5879_v20, %v261_v31  ;;  %v1235_v48 = vsel %vm1190_vm1, %v5887_v60, %v259_v33  ;;  %vm6334_vm1 = vmand %vm1844_vm0, %vm1907_vm14 }
 0x13e   :  { %v481_v58 = vpop.permute.xlu1 %480  ;;  %v479_v28 = vpop.permute.xlu0 %478 }
 0x13f   :  { %v1267_v52 = vsel %vm1239_vm2, %v1232_v22, %v481_v58  ;;  %v1265_v62 = vsel %vm1239_vm2, %v1229_v34, %v479_v28 }
 0x142   :  { %v485_v53 = vpop.permute.xlu1 %484  ;;  %v483_v35 = vpop.permute.xlu0 %482 }
 0x143   :  { %v1271_v7 = vsel %vm1239_vm2, %v1238_v18, %v485_v53  ;;  %v1269_v24 = vsel %vm1239_vm2, %v1235_v48, %v483_v35 }
 0x146   :  { %v561_v43 = vpop.permute.xlu1 %560  ;;  %v559_v6 = vpop.permute.xlu0 %558 }
 0x147   :  { %v1300_v29 = vsel %vm1272_vm3, %v1267_v52, %v561_v43  ;;  %v1298_v0 = vsel %vm1272_vm3, %v1265_v62, %v559_v6 }
 0x14a   :  { %v565_v11 = vpop.permute.xlu1 %564  ;;  %v563_v13 = vpop.permute.xlu0 %562 }
 0x14b   :  { %v1304_v10 = vsel %vm1272_vm3, %v1271_v7, %v565_v11  ;;  %v1302_v17 = vsel %vm1272_vm3, %v1269_v24, %v563_v13  ;;  %vm3857_vm3 = vcmask 1043456  }
 0x14e   :  { %v641_v4 = vpop.permute.xlu1 %640  ;;  %v639_v23 = vpop.permute.xlu0 %638 }
 0x14f   :  { %v1333_v45 = vsel %vm1305_vm4, %v1300_v29, %v641_v4  ;;  %v1331_v49 = vsel %vm1305_vm4, %v1298_v0, %v639_v23 }
 0x152   :  { %v645_v16 = vpop.permute.xlu1 %644  ;;  %v643_v30 = vpop.permute.xlu0 %642 }
 0x153   :  { %v1337_v26 = vsel %vm1305_vm4, %v1304_v10, %v645_v16  ;;  %v1335_v15 = vsel %vm1305_vm4, %v1302_v17, %v643_v30 }
 0x156   :  { %v833_v50 = vpop.permute.xlu1 %832  ;;  %v831_v47 = vpop.permute.xlu0 %830 }
 0x157   :  { %v1366_v63 = vsel %vm1338_vm5, %v1333_v45, %v833_v50  ;;  %v1364_v5 = vsel %vm1338_vm5, %v1331_v49, %v831_v47 }
 0x15a   :  { %v837_v51 = vpop.permute.xlu1 %836  ;;  %v835_v46 = vpop.permute.xlu0 %834 }
 0x15b   :  { %v1370_v42 = vsel %vm1338_vm5, %v1337_v26, %v837_v51  ;;  %v1368_v37 = vsel %vm1338_vm5, %v1335_v15, %v835_v46  ;;  %vm3624_vm5 = vcmask 326656  }
 0x15e   :  { %v913_v56 = vpop.permute.xlu1 %912  ;;  %v911_v57 = vpop.permute.xlu0 %910 }
 0x15f   :  { %v1399_v2 = vsel %vm1371_vm6, %v1366_v63, %v913_v56  ;;  %v1397_v3 = vsel %vm1371_vm6, %v1364_v5, %v911_v57 }
 0x162   :  { %v917_v59 = vpop.permute.xlu1 %916  ;;  %v915_v8 = vpop.permute.xlu0 %914 }
 0x163   :  { %v1403_v25 = vsel %vm1371_vm6, %v1370_v42, %v917_v59  ;;  %v1401_v14 = vsel %vm1371_vm6, %v1368_v37, %v915_v8 }
 0x166   :  { %v993_v9 = vpop.permute.xlu1 %992  ;;  %v991_v61 = vpop.permute.xlu0 %990 }
 0x167   :  { %v1432_v20 = vsel %vm1404_vm7, %v1399_v2, %v993_v9  ;;  %v1430_v60 = vsel %vm1404_vm7, %v1397_v3, %v991_v61 }
 0x16a   :  { %v997_v32 = vpop.permute.xlu1 %996  ;;  %v995_v1 = vpop.permute.xlu0 %994 }
 0x16b   :  { %v1436_v12 = vsel %vm1404_vm7, %v1403_v25, %v997_v32  ;;  %v1434_v38 = vsel %vm1404_vm7, %v1401_v14, %v995_v1  ;;  %vm3657_vm7 = vcmask 392192  }
 0x16e   :  { %v1185_v40 = vpop.permute.xlu1 %1184  ;;  %v1183_v41 = vpop.permute.xlu0 %1182 }
 0x16f   :  { %v1465_v55 = vsel %vm1437_vm8, %v1432_v20, %v1185_v40  ;;  %v1463_v36 = vsel %vm1437_vm8, %v1430_v60, %v1183_v41 }
 0x170   :  { %v4665_v44 = vcombine.low %v1463_v36, %v1465_v55 }
 0x172   :  { %v1189_v39 = vpop.permute.xlu1 %1188  ;;  %4907 = vmatprep.mubr.msk.bf16.mxu0 %vm1530_vm9, %v4665_v44  ;;  %v1187_v21 = vpop.permute.xlu0 %1186 }
 0x173   :  { %v1469_v54 = vsel %vm1437_vm8, %v1436_v12, %v1189_v39  ;;  %v1467_v27 = vsel %vm1437_vm8, %v1434_v38, %v1187_v21  ;;  %v1877_v39 = vld [vmem:[#allocation2 + $0x38] sm:$0x1]  ;;  %v1880_v21 = vld [vmem:[#allocation2 + $0x40] sm:$0x1] }
 0x174   :  { %v4666_v19 = vcombine.low %v1467_v27, %v1469_v54  ;;  %v1878_v54 = vsel %vm6269_vm13, 0, %v1877_v39  ;;  %v1881_v27 = vsel %vm6269_vm13, 0, %v1880_v21 }
 0x175   :  { %1879 = vst [vmem:[#allocation2 + $0x38] sm:$0x1] %v1878_v54  ;;  %1882 = vst [vmem:[#allocation2 + $0x40] sm:$0x1] %v1881_v27 }
 0x176   :  { %4908 = vmatmul.mubr.msk.bf16.gmra.mrb[12].mxu0 %vm1530_vm9, %v4666_v19  ;;  %v1883_v19 = vld [vmem:[#allocation2 + $0x58] sm:$0x1]  ;;  %vm3690_vm9 = vcmask 457728  }
 0x18d   :  { %v6192_v31 = vpop.f32.mrb[0].mxu0 }
 0x18e   :  { %v6194_v33 = vpop.f32.mrb[1].mxu0  ;;  %v1659_v4 = vsel %vm1239_vm2, %v6192_v31, 0.0  ;;  %v4134_v23 = vsel %vm4130_vm10, %v6192_v31, 0.0 }
 0x18f   :  { %v6196_v58 = vpop.f32.mrb[2].mxu0  ;;  %v1656_v53 = vsel %vm1239_vm2, %v6194_v33, 0.0  ;;  %v4131_v35 = vsel %vm4130_vm10, %v6194_v33, 0.0 }
 0x190   :  { %v6198_v28 = vpop.f32.mrb[3].mxu0  ;;  %v1661_v50 = vsel %vm1239_vm2, %v6196_v58, 0.0  ;;  %v4136_v47 = vsel %vm4130_vm10, %v6196_v58, 0.0 }
 0x191   :  { %v1657_v43 = vsel %vm1239_vm2, %v6198_v28, 0.0  ;;  %v4132_v6 = vsel %vm4130_vm10, %v6198_v28, 0.0 }
 0x192   :  { %v1658_v11 = vadd.f32 %v1657_v43, %v1656_v53  ;;  %v4133_v13 = vadd.f32 %v4132_v6, %v4131_v35  ;;  %v1886_v53 = vld [vmem:[#allocation2 + $0x60] sm:$0x1]  ;;  %v1884_v35 = vsel %vm6269_vm13, 0, %v1883_v19  ;;  %v1889_v6 = vld [vmem:[#allocation2 + $0x68] sm:$0x1] }
 0x193   :  { %v1887_v43 = vsel %vm6269_vm13, 0, %v1886_v53  ;;  %1885 = vst [vmem:[#allocation2 + $0x58] sm:$0x1] %v1884_v35 }
 0x194   :  { %v1660_v16 = vadd.f32 %v1659_v4, %v1658_v11  ;;  %v4135_v30 = vadd.f32 %v4134_v23, %v4133_v13  ;;  %v1892_v11 = vld [vmem:[#allocation2 + $0x70] sm:$0x1]  ;;  %1888 = vst [vmem:[#allocation2 + $0x60] sm:$0x1] %v1887_v43  ;;  %v1890_v13 = vsel %vm6269_vm13, 0, %v1889_v6 }
 0x195   :  { %v1893_v4 = vsel %vm6269_vm13, 0, %v1892_v11  ;;  %v1895_v23 = vld [vmem:[#allocation2 + $0x78] sm:$0x1]  ;;  %1891 = vst [vmem:[#allocation2 + $0x68] sm:$0x1] %v1890_v13 }
 0x196   :  { %v1662_v51 = vadd.f32 %v1661_v50, %v1660_v16  ;;  %v4137_v46 = vadd.f32 %v4136_v47, %v4135_v30  ;;  %v1898_v16 = vld [vmem:[#allocation2 + $0x80] sm:$0x1]  ;;  %1894 = vst [vmem:[#allocation2 + $0x70] sm:$0x1] %v1893_v4  ;;  %v1896_v50 = vsel %vm6269_vm13, 0, %v1895_v23 }
 0x197   :  { %v1899_v47 = vsel %vm6269_vm13, 0, %v1898_v16  ;;  %1897 = vst [vmem:[#allocation2 + $0x78] sm:$0x1] %v1896_v50 }
 0x198   :  { %1900 = vst [vmem:[#allocation2 + $0x80] sm:$0x1] %v1899_v47 }
 0x1cd   :  { %v6216_v56 = vpop.f32.mrb[4].mxu0 }
 0x1ce   :  { %v6218_v57 = vpop.f32.mrb[5].mxu0  ;;  %v1667_v32 = vsel %vm1239_vm2, %v6216_v56, 0.0  ;;  %v4142_v1 = vsel %vm4130_vm10, %v6216_v56, 0.0 }
 0x1cf   :  { %v1663_v59 = vsel %vm1239_vm2, %v6218_v57, 0.0  ;;  %v4138_v8 = vsel %vm4130_vm10, %v6218_v57, 0.0  ;;  %v6224_v9 = vpop.f32.mrb[6].mxu0 }
 0x1d0   :  { %v1664_v61 = vadd.f32 %v1663_v59, %v1662_v51  ;;  %v4139_v22 = vadd.f32 %v4138_v8, %v4137_v46  ;;  %v6226_v34 = vpop.f32.mrb[7].mxu0  ;;  %v1669_v18 = vsel %vm1239_vm2, %v6224_v9, 0.0  ;;  %v4144_v48 = vsel %vm4130_vm10, %v6224_v9, 0.0  ;;  %v1901_v51 = vld [vmem:[#allocation2 + $0x88] sm:$0x1] }
 0x1d1   :  { %v1665_v52 = vsel %vm1239_vm2, %v6226_v34, 0.0  ;;  %v4140_v62 = vsel %vm4130_vm10, %v6226_v34, 0.0  ;;  %v1904_v46 = vld [vmem:[#allocation2 + $0x90] sm:$0x1]  ;;  %v1902_v59 = vsel %vm6269_vm13, 0, %v1901_v51 }
 0x1d2   :  { %v1666_v29 = vadd.f32 %v1665_v52, %v1664_v61  ;;  %v4141_v0 = vadd.f32 %v4140_v62, %v4139_v22  ;;  %v1905_v8 = vsel %vm6269_vm13, 0, %v1904_v46  ;;  %v1927_v61 = vld [vmem:[#allocation2 + $0x3c] sm:$0x1]  ;;  %v1930_v22 = vld [vmem:[#allocation2 + $0x44] sm:$0x1]  ;;  %v5225_v46 = vmov 0  }
 0x1d3   :  { %1903 = vst [vmem:[#allocation2 + $0x88] sm:$0x1] %v1902_v59  ;;  %1906 = vst [vmem:[#allocation2 + $0x90] sm:$0x1] %v1905_v8  ;;  %v1928_v52 = vsel %vm6287_vm15, 0, %v1927_v61  ;;  %v1931_v62 = vsel %vm6287_vm15, 0, %v1930_v22 }
 0x1d4   :  { %v1668_v45 = vadd.f32 %v1667_v32, %v1666_v29  ;;  %v4143_v49 = vadd.f32 %v4142_v1, %v4141_v0  ;;  %v1933_v29 = vld [vmem:[#allocation2 + $0x5c] sm:$0x1]  ;;  %v1936_v0 = vld [vmem:[#allocation2 + $0x64] sm:$0x1]  ;;  %1929 = vst [vmem:[#allocation2 + $0x3c] sm:$0x1] %v1928_v52 }
 0x1d5   :  { %1932 = vst [vmem:[#allocation2 + $0x44] sm:$0x1] %v1931_v62  ;;  %v1934_v32 = vsel %vm6287_vm15, 0, %v1933_v29  ;;  %v1937_v1 = vsel %vm6287_vm15, 0, %v1936_v0  ;;  %1845 = vst.msk [vmem:[#allocation2] sm:$0xf] %vm1844_vm0, %v5225_v46 }
 0x1d6   :  { %v1670_v63 = vadd.f32 %v1669_v18, %v1668_v45  ;;  %v4145_v5 = vadd.f32 %v4144_v48, %v4143_v49  ;;  %v1939_v45 = vld [vmem:[#allocation2 + $0x6c] sm:$0x1]  ;;  %v1942_v49 = vld [vmem:[#allocation2 + $0x74] sm:$0x1]  ;;  %1935 = vst [vmem:[#allocation2 + $0x5c] sm:$0x1] %v1934_v32 }
 0x1d7   :  { %1938 = vst [vmem:[#allocation2 + $0x64] sm:$0x1] %v1937_v1  ;;  %v1940_v18 = vsel %vm6287_vm15, 0, %v1939_v45  ;;  %v1943_v48 = vsel %vm6287_vm15, 0, %v1942_v49  ;;  %1847 = vst.msk [vmem:[#allocation2 + $0x4] sm:$0x1] %vm1846_vm11, %v5225_v46 }
 0x1d8   :  { %1941 = vst [vmem:[#allocation2 + $0x6c] sm:$0x1] %v1940_v18  ;;  %1944 = vst [vmem:[#allocation2 + $0x74] sm:$0x1] %v1943_v48  ;;  %v1862_v62 = vld [vmem:[#allocation2 + $0x10] sm:$0x1] }
 0x1d9   :  { %1848 = vst.msk [vmem:[#allocation2 + $0x50] sm:$0xf] %vm1844_vm0, %v5225_v46  ;;  %1851 = vst.msk [vmem:[#allocation2 + $0x48] sm:$0xf] %vm1844_vm0, %v5225_v46  ;;  %v1859_v29 = vld [vmem:[#allocation2 + $0x8] sm:$0x1] }
 0x1da   :  { %1849 = vst.msk [vmem:[#allocation2 + $0x54] sm:$0x1] %vm1846_vm11, %v5225_v46  ;;  %1852 = vst.msk [vmem:[#allocation2 + $0x4c] sm:$0x1] %vm1846_vm11, %v5225_v46  ;;  %v1863_v0 = vsel %vm6269_vm13, 0, %v1862_v62  ;;  %v1860_v32 = vsel %vm6269_vm13, 0, %v1859_v29 }
 0x1db   :  { %1853 = vst.msk [vmem:[#allocation2 + $0x98] sm:$0xf] %vm1844_vm0, %v5225_v46  ;;  %1864 = vst [vmem:[#allocation2 + $0x10] sm:$0x1] %v1863_v0 }
 0x1dc   :  { %1854 = vst.msk [vmem:[#allocation2 + $0x9c] sm:$0x1] %vm1846_vm11, %v5225_v46  ;;  %1861 = vst [vmem:[#allocation2 + $0x8] sm:$0x1] %v1860_v32  ;;  %vm3832_vm11 = vcmask 588800  }
 0x20d   :  { %v6240_v7 = vpop.f32.mrb[8].mxu0 }
 0x20e   :  { %v6242_v24 = vpop.f32.mrb[9].mxu0  ;;  %v1675_v55 = vsel %vm1239_vm2, %v6240_v7, 0.0  ;;  %v4150_v36 = vsel %vm4130_vm10, %v6240_v7, 0.0 }
 0x20f   :  { %v1671_v2 = vsel %vm1239_vm2, %v6242_v24, 0.0  ;;  %v4146_v3 = vsel %vm4130_vm10, %v6242_v24, 0.0  ;;  %v6248_v10 = vpop.f32.mrb[10].mxu0 }
 0x210   :  { %v1672_v17 = vadd.f32 %v1671_v2, %v1670_v63  ;;  %v4147_v20 = vadd.f32 %v4146_v3, %v4145_v5  ;;  %v6250_v60 = vpop.f32.mrb[11].mxu0  ;;  %v1677_v44 = vsel %vm1239_vm2, %v6248_v10, 0.0  ;;  %v4152_v25 = vsel %vm4130_vm10, %v6248_v10, 0.0  ;;  %v1945_v63 = vld [vmem:[#allocation2 + $0x7c] sm:$0x1] }
 0x211   :  { %v1673_v40 = vsel %vm1239_vm2, %v6250_v60, 0.0  ;;  %v4148_v41 = vsel %vm4130_vm10, %v6250_v60, 0.0  ;;  %v1948_v5 = vld [vmem:[#allocation2 + $0x84] sm:$0x1]  ;;  %v1946_v2 = vsel %vm6287_vm15, 0, %v1945_v63 }
 0x212   :  { %v1674_v26 = vadd.f32 %v1673_v40, %v1672_v17  ;;  %v4149_v15 = vadd.f32 %v4148_v41, %v4147_v20  ;;  %v1949_v3 = vsel %vm6287_vm15, 0, %v1948_v5  ;;  %v1951_v17 = vld [vmem:[#allocation2 + $0x8c] sm:$0x1]  ;;  %v1954_v20 = vld [vmem:[#allocation2 + $0x94] sm:$0x1] }
 0x213   :  { %1947 = vst [vmem:[#allocation2 + $0x7c] sm:$0x1] %v1946_v2  ;;  %1950 = vst [vmem:[#allocation2 + $0x84] sm:$0x1] %v1949_v3  ;;  %v1952_v40 = vsel %vm6287_vm15, 0, %v1951_v17  ;;  %v1955_v41 = vsel %vm6287_vm15, 0, %v1954_v20 }
 0x214   :  { %v1676_v42 = vadd.f32 %v1675_v55, %v1674_v26  ;;  %v4151_v37 = vadd.f32 %v4150_v36, %v4149_v15  ;;  %1953 = vst [vmem:[#allocation2 + $0x8c] sm:$0x1] %v1952_v40  ;;  %1956 = vst [vmem:[#allocation2 + $0x94] sm:$0x1] %v1955_v41 }
 0x216   :  { %v6264_v14 = vadd.f32 %v1677_v44, %v1676_v42  ;;  %v6266_v12 = vadd.f32 %v4152_v25, %v4151_v37  ;;  %v8047_v25 = vmov 0 }
 0x217   :  { %v8048_v25 = vsel %vm6334_vm1, 4294967295, %v8047_v25 }
 0x218   :  { %8049 = vst [vmem:[#allocation3_spill] sm:$0xff] %v8048_v25 }
 0x249   :  { %v6319_v26 = vpop.f32.mrb[12].mxu0 }
 0x24a   :  { %v6321_v15 = vpop.f32.mrb[13].mxu0  ;;  %v1683_v53 = vsel %vm1239_vm2, %v6319_v26, 0.0 }
 0x24b   :  { %v1679_v55 = vsel %vm1239_vm2, %v6321_v15, 0.0  ;;  %v4154_v36 = vsel %vm4130_vm10, %v6321_v15, 0.0  ;;  %v6327_v42 = vpop.f32.mrb[14].mxu0 }
 0x24c   :  { %v6329_v37 = vpop.f32.mrb[15].mxu0  ;;  %v1680_v44 = vadd.f32 %v1679_v55, %v6264_v14  ;;  %v4155_v39 = vadd.f32 %v4154_v36, %v6266_v12  ;;  %v4158_v14 = vsel %vm4130_vm10, %v6319_v26, 0.0  ;;  %v1685_v6 = vsel %vm1239_vm2, %v6327_v42, 0.0 }
 0x24d   :  { %v1681_v21 = vsel %vm1239_vm2, %v6329_v37, 0.0  ;;  %v4156_v54 = vsel %vm4130_vm10, %v6329_v37, 0.0  ;;  %v4160_v12 = vsel %vm4130_vm10, %v6327_v42, 0.0 }
 0x24e   :  { %v1682_v27 = vadd.f32 %v1681_v21, %v1680_v44  ;;  %v4157_v19 = vadd.f32 %v4156_v54, %v4155_v39 }
 0x250   :  { %v1684_v35 = vadd.f32 %v1683_v53, %v1682_v27  ;;  %v4159_v43 = vadd.f32 %v4158_v14, %v4157_v19 }
 0x252   :  { %v1686_v11 = vadd.f32 %v1685_v6, %v1684_v35  ;;  %v4161_v13 = vadd.f32 %v4160_v12, %v4159_v43 }
 0x254   :  { %v1687_v4 = vrot.slane %v1686_v11, 4  ;;  %v4162_v23 = vrot.slane %v4161_v13, 4 }
 0x256   :  { %v1688_v16 = vadd.f32 %v1687_v4, %v1686_v11  ;;  %v4163_v50 = vadd.f32 %v4162_v23, %v4161_v13 }
 0x258   :  { %v1689_v47 = vrot.slane %v1688_v16, 2  ;;  %v4164_v51 = vrot.slane %v4163_v50, 2 }
 0x25a   :  { %v1690_v59 = vadd.f32 %v1689_v47, %v1688_v16  ;;  %v4165_v8 = vadd.f32 %v4164_v51, %v4163_v50 }
 0x25c   :  { %v1691_v61 = vrot.slane %v1690_v59, 1  ;;  %v4166_v22 = vrot.slane %v4165_v8, 1 }
 0x25e   :  { %v1692_v52 = vadd.f32 %v1691_v61, %v1690_v59  ;;  %v4167_v45 = vadd.f32 %v4166_v22, %v4165_v8 }
 0x260   :  { %v1693_v1 = vmul.f32 0.0078125, %v1692_v52  ;;  %v4168_v14 = vmul.f32 0.0078125, %v4167_v45 }
 0x262   :  { %v6364_v49 = vsub.f32 %v6194_v33, %v1693_v1  ;;  %v6367_v18 = vsub.f32 %v6198_v28, %v1693_v1  ;;  %v6370_v48 = vsub.f32 %v6192_v31, %v1693_v1  ;;  %v6373_v63 = vsub.f32 %v6196_v58, %v1693_v1 }
 0x263   :  { %v6376_v5 = vsub.f32 %v6218_v57, %v1693_v1  ;;  %v6379_v2 = vsub.f32 %v6226_v34, %v1693_v1  ;;  %v6382_v3 = vsub.f32 %v6216_v56, %v1693_v1  ;;  %v6385_v17 = vsub.f32 %v6224_v9, %v1693_v1 }
 0x264   :  { %v6388_v20 = vsub.f32 %v6242_v24, %v1693_v1  ;;  %v6391_v40 = vsub.f32 %v6250_v60, %v1693_v1  ;;  %v6394_v41 = vsub.f32 %v6240_v7, %v1693_v1  ;;  %v6397_v55 = vsub.f32 %v6248_v10, %v1693_v1 }
 0x265   :  { %v6400_v36 = vsub.f32 %v6321_v15, %v1693_v1  ;;  %v6403_v44 = vsub.f32 %v6329_v37, %v1693_v1  ;;  %v6406_v39 = vsub.f32 %v6319_v26, %v1693_v1  ;;  %v6409_v21 = vsub.f32 %v6327_v42, %v1693_v1 }
 0x266   :  { %v1710_v54 = vmul.f32 %v6364_v49, %v6364_v49  ;;  %v1711_v27 = vmul.f32 %v6367_v18, %v6367_v18  ;;  %v1712_v19 = vmul.f32 %v6370_v48, %v6370_v48  ;;  %v1713_v53 = vmul.f32 %v6373_v63, %v6373_v63 }
 0x267   :  { %v1714_v35 = vmul.f32 %v6376_v5, %v6376_v5  ;;  %v1715_v43 = vmul.f32 %v6379_v2, %v6379_v2  ;;  %v1716_v11 = vmul.f32 %v6382_v3, %v6382_v3  ;;  %v1717_v4 = vmul.f32 %v6385_v17, %v6385_v17 }
 0x268   :  { %v1726_v6 = vsel %vm1239_vm2, %v1710_v54, 0.0  ;;  %v1727_v12 = vsel %vm1239_vm2, %v1711_v27, 0.0  ;;  %v1718_v23 = vmul.f32 %v6388_v20, %v6388_v20  ;;  %v1719_v16 = vmul.f32 %v6391_v40, %v6391_v40  ;;  %v6477_v27 = vld [vmem:[#allocation2 + $0x4] sm:$0x1] }
 0x269   :  { %v1728_v13 = vadd.f32 %v1727_v12, %v1726_v6  ;;  %v1729_v50 = vsel %vm1239_vm2, %v1712_v19, 0.0  ;;  %v1720_v47 = vmul.f32 %v6394_v41, %v6394_v41  ;;  %v1721_v51 = vmul.f32 %v6397_v55, %v6397_v55 }
 0x26a   :  { %v1731_v59 = vsel %vm1239_vm2, %v1713_v53, 0.0  ;;  %v1733_v8 = vsel %vm1239_vm2, %v1714_v35, 0.0  ;;  %v1735_v61 = vsel %vm1239_vm2, %v1715_v43, 0.0  ;;  %v6442_v22 = vsub.f32 %v6194_v33, %v4168_v14 }
 0x26b   :  { %v1730_v46 = vadd.f32 %v1729_v50, %v1728_v13  ;;  %v6445_v52 = vsub.f32 %v6198_v28, %v4168_v14  ;;  %v6448_v29 = vsub.f32 %v6192_v31, %v4168_v14  ;;  %v6451_v0 = vsub.f32 %v6196_v58, %v4168_v14 }
 0x26c   :  { %8050 = vst [vmem:[#allocation4_spill] sm:$0xff] %v6442_v22  ;;  %v6454_v32 = vsub.f32 %v6218_v57, %v4168_v14  ;;  %v6457_v1 = vsub.f32 %v6226_v34, %v4168_v14  ;;  %v6460_v45 = vsub.f32 %v6216_v56, %v4168_v14  ;;  %v6463_v33 = vsub.f32 %v6224_v9, %v4168_v14  ;;  %v2279_v34 = vld [vmem:[#allocation2] sm:$0xf] }
 0x26d   :  { %8051 = vst [vmem:[#allocation5_spill] sm:$0xff] %v6445_v52  ;;  %v1732_v62 = vadd.f32 %v1731_v59, %v1730_v46  ;;  %8052 = vst [vmem:[#allocation6_spill] sm:$0xff] %v6448_v29  ;;  %v6466_v28 = vsub.f32 %v6242_v24, %v4168_v14  ;;  %v6469_v54 = vsub.f32 %v6250_v60, %v4168_v14  ;;  %v1737_v53 = vsel %vm1239_vm2, %v1716_v11, 0.0 }
 0x26e   :  { %8053 = vst [vmem:[#allocation7_spill] sm:$0xff] %v6451_v0  ;;  %8054 = vst [vmem:[#allocation8_spill] sm:$0xff] %v6454_v32  ;;  %v6472_v58 = vsub.f32 %v6240_v7, %v4168_v14  ;;  %v6475_v57 = vsub.f32 %v6248_v10, %v4168_v14  ;;  %v6480_v56 = vsub.f32 %v6321_v15, %v4168_v14  ;;  %v1739_v43 = vsel %vm1239_vm2, %v1717_v4, 0.0 }
 0x26f   :  { %8055 = vst [vmem:[#allocation9_spill] sm:$0xff] %v6457_v1  ;;  %8056 = vst [vmem:[#allocation10_spill] sm:$0xff] %v6460_v45  ;;  %v1734_v31 = vadd.f32 %v1733_v8, %v1732_v62  ;;  %v6483_v9 = vsub.f32 %v6329_v37, %v4168_v14  ;;  %v6486_v24 = vsub.f32 %v6319_v26, %v4168_v14  ;;  %v1741_v6 = vsel %vm1239_vm2, %v1718_v23, 0.0 }
 0x270   :  { %8057 = vst [vmem:[#allocation11_spill] sm:$0xff] %v6463_v33  ;;  %8058 = vst [vmem:[#allocation12_spill] sm:$0xff] %v6466_v28  ;;  %v6489_v60 = vsub.f32 %v6327_v42, %v4168_v14  ;;  %v1722_v7 = vmul.f32 %v6400_v36, %v6400_v36  ;;  %v1723_v10 = vmul.f32 %v6403_v44, %v6403_v44  ;;  %v1743_v12 = vsel %vm1239_vm2, %v1719_v16, 0.0 }
 0x271   :  { %8059 = vst [vmem:[#allocation13_spill] sm:$0xff] %v6469_v54  ;;  %8060 = vst [vmem:[#allocation14_spill] sm:$0xff] %v6472_v58  ;;  %v1736_v19 = vadd.f32 %v1735_v61, %v1734_v31  ;;  %v4185_v15 = vmul.f32 %v6442_v22, %v6442_v22  ;;  %v1724_v37 = vmul.f32 %v6406_v39, %v6406_v39  ;;  %v1745_v13 = vsel %vm1239_vm2, %v1720_v47, 0.0  ;;  %v1918_v22 = vld [vmem:[#allocation2 + $0x24] sm:$0x1] }
 0x272   :  { %8061 = vst [vmem:[#allocation15_spill] sm:$0xff] %v6489_v60  ;;  %v4186_v26 = vmul.f32 %v6445_v52, %v6445_v52  ;;  %v6503_v42 = vcombine.low %v2279_v34, %v6477_v27  ;;  %v1725_v14 = vmul.f32 %v6409_v21, %v6409_v21  ;;  %v1747_v11 = vsel %vm1239_vm2, %v1721_v51, 0.0 }
 0x273   :  { %v1738_v35 = vadd.f32 %v1737_v53, %v1736_v19  ;;  %v4187_v50 = vmul.f32 %v6448_v29, %v6448_v29  ;;  %v1749_v59 = vsel %vm1239_vm2, %v1722_v7, 0.0  ;;  %v1751_v8 = vsel %vm1239_vm2, %v1723_v10, 0.0  ;;  %v2383_v53 = vld [vmem:[#allocation2 + $0x48] sm:$0xf] }
 0x274   :  { %v4201_v61 = vsel %vm4130_vm10, %v4185_v15, 0.0  ;;  %v4188_v4 = vmul.f32 %v6451_v0, %v6451_v0  ;;  %v4189_v23 = vmul.f32 %v6454_v32, %v6454_v32  ;;  %v4190_v16 = vmul.f32 %v6457_v1, %v6457_v1  ;;  %v1868_v32 = vld [vmem:[#allocation2 + $0x20] sm:$0x1] }
 0x275   :  { %v1740_v46 = vadd.f32 %v1739_v43, %v1738_v35  ;;  %v4202_v47 = vsel %vm4130_vm10, %v4186_v26, 0.0  ;;  %v6525_v62 = vsel %vm1239_vm2, %v1724_v37, 0.0  ;;  %v6528_v31 = vsel %vm1239_vm2, %v1725_v14, 0.0  ;;  %v6537_v26 = vld [vmem:[#allocation2 + $0x4c] sm:$0x1] }
 0x276   :  { %v4203_v34 = vadd.f32 %v4202_v47, %v4201_v61  ;;  %v4191_v7 = vmul.f32 %v6460_v45, %v6460_v45  ;;  %v4192_v10 = vmul.f32 %v6463_v33, %v6463_v33  ;;  %v4193_v19 = vmul.f32 %v6466_v28, %v6466_v28  ;;  %v6547_v61 = vld [vmem:[#allocation2 + $0x54] sm:$0x1] }
 0x277   :  { %v1742_v51 = vadd.f32 %v1741_v6, %v1740_v46  ;;  %v4204_v15 = vsel %vm4130_vm10, %v4187_v50, 0.0  ;;  %v6541_v14 = vmul.f32 %v6469_v54, %v6469_v54  ;;  %v6545_v35 = vmul.f32 %v6472_v58, %v6472_v58  ;;  %v2311_v6 = vld [vmem:[#allocation2] sm:$0xe]  ;;  %v2287_v46 = vld [vmem:[#allocation2 + $0x50] sm:$0xf] }
 0x278   :  { %v4205_v43 = vadd.f32 %v4204_v15, %v4203_v34  ;;  %v4206_v47 = vsel %vm4130_vm10, %v4188_v4, 0.0  ;;  %v4208_v50 = vsel %vm4130_vm10, %v4189_v23, 0.0  ;;  %v4210_v28 = vsel %vm4130_vm10, %v4190_v16, 0.0  ;;  %v2415_v58 = vld [vmem:[#allocation2 + $0x48] sm:$0xe] }
 0x279   :  { %v1744_v37 = vadd.f32 %v1743_v12, %v1742_v51  ;;  %v2505_v12 = vshrl.u32 %v6503_v42, 16  ;;  %v2507_v33 = vshll.u32 %v6503_v42, 16  ;;  %v4783_v45 = vcombine.low %v2383_v53, %v2383_v53  ;;  %v1865_v23 = vld [vmem:[#allocation2 + $0x18] sm:$0x1]  ;;  %v1871_v42 = vld [vmem:[#allocation2 + $0x28] sm:$0x1] }
 0x27a   :  { %v4207_v54 = vadd.f32 %v4206_v47, %v4205_v43  ;;  %v4212_v34 = vsel %vm4130_vm10, %v4191_v7, 0.0  ;;  %v4799_v15 = vcombine.low %v2383_v53, %v6537_v26  ;;  %v4712_v1 = vcombine.low %v2311_v6, %v6477_v27  ;;  %v1909_v6 = vld [vmem:[#allocation2 + $0xc] sm:$0x1] }
 0x27b   :  { %v1746_v51 = vadd.f32 %v1745_v13, %v1744_v37  ;;  %v4704_v4 = vcombine.low %v2287_v46, %v6547_v61  ;;  %v4214_v29 = vsel %vm4130_vm10, %v4192_v10, 0.0  ;;  %v2509_v13 = vrot.slane %v2507_v33, 1  ;;  %3174 = vrot.lane.b32.xlu1 %v4783_v45, %s5226_s0  ;;  %v1874_v37 = vld [vmem:[#allocation2 + $0x30] sm:$0x1] }
 0x27c   :  { %v4209_v16 = vadd.f32 %v4208_v50, %v4207_v54  ;;  %v4216_v7 = vsel %vm4130_vm10, %v4193_v19, 0.0  ;;  %v3290_v43 = vshrl.u32 %v4799_v15, 16  ;;  %v3292_v53 = vshll.u32 %v4799_v15, 16  ;;  %v1912_v54 = vld [vmem:[#allocation2 + $0x14] sm:$0x1] }
 0x27d   :  { %v1748_v0 = vadd.f32 %v1747_v11, %v1746_v51  ;;  %v4815_v27 = vcombine.low %v2415_v58, %v6537_v26  ;;  %v2510_v52 = vor.u32 %v2509_v13, %v2505_v12  ;;  %v2563_v11 = vshll.u32 %v4704_v4, 16  ;;  %v1915_v50 = vld [vmem:[#allocation2 + $0x1c] sm:$0x1]  ;;  %v1924_v58 = vld [vmem:[#allocation2 + $0x34] sm:$0x1] }
 0x27e   :  { %v4211_v47 = vadd.f32 %v4210_v28, %v4209_v16  ;;  %v2696_v10 = vrot.slane %v4712_v1, 1  ;;  %v3294_v33 = vrot.slane %v3292_v53, 1  ;;  %v2561_v51 = vshrl.u32 %v4704_v4, 16  ;;  %v1921_v28 = vld [vmem:[#allocation2 + $0x2c] sm:$0x1] }
 0x27f   :  { %v1750_v46 = vadd.f32 %v1749_v59, %v1748_v0  ;;  %v1869_v45 = vsel %vm6269_vm13, 0, %v1868_v32  ;;  %2616 = vrot.lane.b32.xlu0 %v2510_v52, %s5218_s13  ;;  %v2565_v15 = vrot.slane %v2563_v11, 1  ;;  %v1866_v0 = vsel %vm6269_vm13, 0, %v1865_v23  ;;  %v2319_v26 = vld [vmem:[#allocation2 + $0x50] sm:$0xe] }
 0x280   :  { %v4213_v19 = vadd.f32 %v4212_v34, %v4211_v47  ;;  %1870 = vst [vmem:[#allocation2 + $0x20] sm:$0x1] %v1869_v45  ;;  %v3295_v59 = vor.u32 %v3294_v33, %v3290_v43  ;;  %1867 = vst [vmem:[#allocation2 + $0x18] sm:$0x1] %v1866_v0  ;;  %v1872_v1 = vsel %vm6269_vm13, 0, %v1871_v42  ;;  %v1875_v32 = vsel %vm6269_vm13, 0, %v1874_v37 }
 0x281   :  { %v1752_v25 = vadd.f32 %v1751_v8, %v1750_v46  ;;  %v1910_v8 = vsel %vm6287_vm15, 0, %v1909_v6  ;;  %v3439_v34 = vrot.slane %v4815_v27, 1  ;;  %1873 = vst [vmem:[#allocation2 + $0x28] sm:$0x1] %v1872_v1  ;;  %1876 = vst [vmem:[#allocation2 + $0x30] sm:$0x1] %v1875_v32  ;;  %v2566_v42 = vor.u32 %v2565_v15, %v2561_v51 }
 0x282   :  { %v4215_v12 = vadd.f32 %v4214_v29, %v4213_v19  ;;  %1911 = vst [vmem:[#allocation2 + $0xc] sm:$0x1] %v1910_v8  ;;  %v1913_v4 = vsel %vm6287_vm15, 0, %v1912_v54  ;;  %3366 = vrot.lane.b32.xlu1 %v3295_v59, %s5227_s12  ;;  %v1916_v23 = vsel %vm6287_vm15, 0, %v1915_v50  ;;  %v1919_v16 = vsel %vm6287_vm15, 0, %v1918_v22 }
 0x283   :  { %v1754_v52 = vadd.f32 %v6525_v62, %v1752_v25  ;;  %1914 = vst [vmem:[#allocation2 + $0x14] sm:$0x1] %v1913_v4  ;;  %v1922_v25 = vsel %vm6287_vm15, 0, %v1921_v28  ;;  %v1925_v29 = vsel %vm6287_vm15, 0, %v1924_v58  ;;  %2712 = vrot.lane.b32.xlu0 %v2696_v10, %s5220_s19  ;;  %v4720_v37 = vcombine.low %v2319_v26, %v6547_v61  ;;  %1917 = vst [vmem:[#allocation2 + $0x1c] sm:$0x1] %v1916_v23 }
 0x284   :  { %v4217_v13 = vadd.f32 %v4216_v7, %v4215_v12  ;;  %1920 = vst [vmem:[#allocation2 + $0x24] sm:$0x1] %v1919_v16  ;;  %1923 = vst [vmem:[#allocation2 + $0x2c] sm:$0x1] %v1922_v25  ;;  %v4196_v22 = vmul.f32 %v6475_v57, %v6475_v57  ;;  %v4218_v43 = vsel %vm4130_vm10, %v6541_v14, 0.0  ;;  %v4220_v7 = vsel %vm4130_vm10, %v6545_v35, 0.0 }
 0x285   :  { %v1756_v62 = vadd.f32 %v6528_v31, %v1754_v52  ;;  %1926 = vst [vmem:[#allocation2 + $0x34] sm:$0x1] %v1925_v29  ;;  %v4197_v31 = vmul.f32 %v6480_v56, %v6480_v56  ;;  %v2704_v6 = vrot.slane %v4720_v37, 1  ;;  %v4198_v46 = vmul.f32 %v6483_v9, %v6483_v9 }
 0x286   :  { %v4219_v53 = vadd.f32 %v4218_v43, %v4217_v13  ;;  %3462 = vrot.lane.b32.xlu1 %v3439_v34, %s5228_s11  ;;  %v4222_v14 = vsel %vm4130_vm10, %v4196_v22, 0.0  ;;  %v4199_v54 = vmul.f32 %v6486_v24, %v6486_v24  ;;  %v4200_v33 = vmul.f32 %v6489_v60, %v6489_v60  ;;  %v2267_v60 = vld [vmem:[#allocation2 + $0x88] sm:$0xf] }
 0x287   :  { %v1757_v30 = vrot.slane %v1756_v62, 4  ;;  %2632 = vrot.lane.b32.xlu0 %v2566_v42, %s5218_s13  ;;  %v4224_v35 = vsel %vm4130_vm10, %v4197_v31, 0.0  ;;  %v4226_v51 = vsel %vm4130_vm10, %v4198_v46, 0.0  ;;  %v4678_v42 = vld [vmem:[%s8000_s3] ss:$0 sm:$0xff] }
 0x288   :  { %v4221_v27 = vadd.f32 %v4220_v7, %v4219_v53  ;;  %v4228_v15 = vsel %vm4130_vm10, %v4199_v54, 0.0  ;;  %v4230_v58 = vsel %vm4130_vm10, %v4200_v33, 0.0  ;;  %vm3723_vm10 = vcmask 523264  }
 0x289   :  { %v1758_v61 = vadd.f32 %v1757_v30, %v1756_v62 }
 0x28a   :  { %v4223_v11 = vadd.f32 %v4222_v14, %v4221_v27 }
 0x28b   :  { %v1759_v47 = vrot.slane %v1758_v61, 2  ;;  %2728 = vrot.lane.b32.xlu0 %v2704_v6, %s5220_s19 }
 0x28c   :  { %v4225_v10 = vadd.f32 %v4224_v35, %v4223_v11 }
 0x28d   :  { %v1760_v50 = vadd.f32 %v1759_v47, %v1758_v61 }
 0x28e   :  { %v4227_v19 = vadd.f32 %v4226_v51, %v4225_v10 }
 0x28f   :  { %v1761_v45 = vrot.slane %v1760_v50, 1 }
 0x290   :  { %v4229_v28 = vadd.f32 %v4228_v15, %v4227_v19 }
 0x291   :  { %v1762_v0 = vadd.f32 %v1761_v45, %v1760_v50 }
 0x292   :  { %v4231_v26 = vadd.f32 %v4230_v58, %v4229_v28 }
 0x293   :  { %v1763_v59 = vmul.f32 0.0078125, %v1762_v0 }
 0x294   :  { %v4232_v32 = vrot.slane %v4231_v26, 4 }
 0x295   :  { %v1765_v1 = vadd.f32 1e-05, %v1763_v59 }
 0x296   :  { %v4233_v8 = vadd.f32 %v4232_v32, %v4231_v26 }
 0x297   :  { %5205 = vrsqrt.f32 %v1765_v1 }
 0x298   :  { %v4234_v52 = vrot.slane %v4233_v8, 2 }
 0x29a   :  { %v4235_v12 = vadd.f32 %v4234_v52, %v4233_v8 }
 0x29c   :  { %v4236_v34 = vrot.slane %v4235_v12, 1 }
 0x29e   :  { %v4237_v4 = vadd.f32 %v4236_v34, %v4235_v12 }
 0x2a0   :  { %v6610_v16 = vmul.f32 0.0078125, %v4237_v4 }
 0x2a1   :  { %v5206_v23 = vpop.eup %5205 }
 0x2a2   :  { %v1767_v25 = vmul.f32 %v5206_v23, %v6364_v49  ;;  %v1768_v29 = vmul.f32 %v5206_v23, %v6367_v18  ;;  %v1769_v62 = vmul.f32 %v5206_v23, %v6370_v48  ;;  %v1770_v13 = vmul.f32 %v5206_v23, %v6373_v63 }
 0x2a3   :  { %v1771_v37 = vmul.f32 %v5206_v23, %v6376_v5  ;;  %v1772_v22 = vmul.f32 %v5206_v23, %v6379_v2  ;;  %v1773_v43 = vmul.f32 %v5206_v23, %v6382_v3  ;;  %v1774_v30 = vmul.f32 %v5206_v23, %v6385_v17 }
 0x2a4   :  { %v1775_v49 = vmul.f32 %v5206_v23, %v6388_v20  ;;  %v1776_v18 = vmul.f32 %v5206_v23, %v6391_v40  ;;  %v1777_v48 = vmul.f32 %v5206_v23, %v6394_v41  ;;  %v1778_v63 = vmul.f32 %v5206_v23, %v6397_v55  ;;  %v4679_v41 = vld [vmem:[%s8001_s4] ss:$0 sm:$0xff]  ;;  %s5229_s4 = smov 40  }
 0x2a5   :  { %v1779_v53 = vmul.f32 %v5206_v23, %v6400_v36  ;;  %v1780_v31 = vmul.f32 %v5206_v23, %v6403_v44  ;;  %v1781_v5 = vmul.f32 %v5206_v23, %v6406_v39  ;;  %v1782_v2 = vmul.f32 %v5206_v23, %v6409_v21 }
 0x2a6   :  { %v1789_v7 = vmul.f32 %v4678_v42, %v1767_v25  ;;  %v1790_v3 = vmul.f32 %v4678_v42, %v1768_v29  ;;  %v1791_v61 = vmul.f32 %v4678_v42, %v1769_v62  ;;  %v1792_v17 = vmul.f32 %v4678_v42, %v1770_v13 }
 0x2a7   :  { %v1793_v27 = vmul.f32 %v4678_v42, %v1771_v37  ;;  %v1794_v20 = vmul.f32 %v4678_v42, %v1772_v22  ;;  %v1795_v6 = vmul.f32 %v4678_v42, %v1773_v43  ;;  %v1796_v40 = vmul.f32 %v4678_v42, %v1774_v30 }
 0x2a8   :  { %v1797_v55 = vmul.f32 %v4678_v42, %v1775_v49  ;;  %v1798_v36 = vmul.f32 %v4678_v42, %v1776_v18  ;;  %v1799_v46 = vmul.f32 %v4678_v42, %v1777_v48  ;;  %v1800_v44 = vmul.f32 %v4678_v42, %v1778_v63 }
 0x2a9   :  { %v1801_v14 = vmul.f32 %v4678_v42, %v1779_v53  ;;  %v1802_v39 = vmul.f32 %v4678_v42, %v1780_v31  ;;  %v1803_v47 = vmul.f32 %v4678_v42, %v1781_v5  ;;  %v1804_v21 = vmul.f32 %v4678_v42, %v1782_v2 }
 0x2aa   :  { %v1812_v11 = vadd.f32 %v4679_v41, %v1789_v7  ;;  %v1813_v54 = vadd.f32 %v4679_v41, %v1790_v3  ;;  %v1814_v35 = vadd.f32 %v4679_v41, %v1791_v61  ;;  %v1815_v50 = vadd.f32 %v4679_v41, %v1792_v17 }
 0x2ab   :  { %v1816_v10 = vadd.f32 %v4679_v41, %v1793_v27  ;;  %v1817_v33 = vadd.f32 %v4679_v41, %v1794_v20  ;;  %v1818_v51 = vadd.f32 %v4679_v41, %v1795_v6  ;;  %v1819_v45 = vadd.f32 %v4679_v41, %v1796_v40 }
 0x2ac   :  { %v1820_v19 = vadd.f32 %v4679_v41, %v1797_v55  ;;  %v1821_v15 = vadd.f32 %v4679_v41, %v1798_v36  ;;  %v1822_v0 = vadd.f32 %v4679_v41, %v1799_v46  ;;  %v1823_v28 = vadd.f32 %v4679_v41, %v1800_v44 }
 0x2ad   :  { %v1824_v58 = vadd.f32 %v4679_v41, %v1801_v14  ;;  %v1825_v59 = vadd.f32 %v4679_v41, %v1802_v39  ;;  %v1826_v26 = vadd.f32 %v4679_v41, %v1803_v47  ;;  %v1827_v1 = vadd.f32 %v4679_v41, %v1804_v21 }
 0x2ae   :  { %v1828_v32 = vmax.f32 %v1812_v11, 0.0  ;;  %v1829_v8 = vmax.f32 %v1813_v54, 0.0  ;;  %v1830_v52 = vmax.f32 %v1814_v35, 0.0  ;;  %v1831_v12 = vmax.f32 %v1815_v50, 0.0 }
 0x2af   :  { %v1832_v34 = vmax.f32 %v1816_v10, 0.0  ;;  %v1833_v4 = vmax.f32 %v1817_v33, 0.0  ;;  %v1834_v23 = vmax.f32 %v1818_v51, 0.0  ;;  %v1835_v25 = vmax.f32 %v1819_v45, 0.0 }
 0x2b0   :  { %v1836_v29 = vmax.f32 %v1820_v19, 0.0  ;;  %v1837_v62 = vmax.f32 %v1821_v15, 0.0  ;;  %v1838_v13 = vmax.f32 %v1822_v0, 0.0  ;;  %v1839_v42 = vmax.f32 %v1823_v28, 0.0  ;;  %v2264_v19 = vld [vmem:[#allocation2 + $0x84] sm:$0x1] }
 0x2b1   :  { %v1840_v37 = vmax.f32 %v1824_v58, 0.0  ;;  %v1841_v22 = vmax.f32 %v1825_v59, 0.0  ;;  %v1842_v43 = vmax.f32 %v1826_v26, 0.0  ;;  %v1843_v30 = vmax.f32 %v1827_v1, 0.0  ;;  %v2255_v26 = vld [vmem:[#allocation2 + $0x78] sm:$0xf] }
 0x2b2   :  { %v4849_v49 = vpack.c.bf16 %v1828_v32, %v1828_v32  ;;  %v4850_v18 = vpack.c.bf16 %v1829_v8, %v1829_v8  ;;  %v4851_v48 = vpack.c.bf16 %v1830_v52, %v1830_v52  ;;  %v4852_v63 = vpack.c.bf16 %v1831_v12, %v1831_v12  ;;  %v2258_v58 = vld [vmem:[#allocation2 + $0x7c] sm:$0x1] }
 0x2b3   :  { %v4853_v53 = vpack.c.bf16 %v1832_v34, %v1832_v34  ;;  %v4854_v31 = vpack.c.bf16 %v1833_v4, %v1833_v4  ;;  %v4855_v5 = vpack.c.bf16 %v1834_v23, %v1834_v23  ;;  %v4856_v2 = vpack.c.bf16 %v1835_v25, %v1835_v25 }
 0x2b4   :  { %v4857_v7 = vpack.c.bf16 %v1836_v29, %v1836_v29  ;;  %v6634_v3 = vpack.c.bf16 %v1837_v62, %v1837_v62  ;;  %v6636_v61 = vpack.c.bf16 %v1838_v13, %v1838_v13  ;;  %v6638_v17 = vpack.c.bf16 %v1839_v42, %v1839_v42 }
 0x2b5   :  { %v6640_v27 = vpack.c.bf16 %v1840_v37, %v1840_v37  ;;  %v6642_v20 = vpack.c.bf16 %v1841_v22, %v1841_v22  ;;  %v6644_v6 = vpack.c.bf16 %v1842_v43, %v1842_v43  ;;  %v6646_v40 = vpack.c.bf16 %v1843_v30, %v1843_v30 }
 0x2b6   :  { %v2022_v41 = vshrl.u32 %v4849_v49, 16  ;;  %v2025_v55 = vshll.u32 %v4849_v49, 16  ;;  %v2030_v36 = vshrl.u32 %v4850_v18, 16  ;;  %v2033_v46 = vshll.u32 %v4850_v18, 16 }
 0x2b7   :  { %v2038_v44 = vshrl.u32 %v4851_v48, 16  ;;  %v2041_v14 = vshll.u32 %v4851_v48, 16  ;;  %v2046_v39 = vshrl.u32 %v4852_v63, 16  ;;  %v2049_v47 = vshll.u32 %v4852_v63, 16 }
 0x2b8   :  { %v6648_v21 = vrot.slane %v2022_v41, 7  ;;  %v6650_v11 = vrot.slane %v2030_v36, 7  ;;  %v2054_v54 = vshrl.u32 %v4853_v53, 16  ;;  %v2057_v35 = vshll.u32 %v4853_v53, 16 }
 0x2b9   :  { %v6652_v50 = vrot.slane %v2038_v44, 7  ;;  %v6654_v10 = vrot.slane %v2046_v39, 7  ;;  %v2062_v33 = vshrl.u32 %v4854_v31, 16  ;;  %v2065_v51 = vshll.u32 %v4854_v31, 16  ;;  %v2219_v44 = vld [vmem:[#allocation2 + $0x38] sm:$0xf] }
 0x2ba   :  { %v6657_v45 = vor.u32 %v2025_v55, %v6648_v21  ;;  %v6661_v15 = vor.u32 %v2033_v46, %v6650_v11  ;;  %v6672_v1 = vrot.slane %v2054_v54, 7  ;;  %v2070_v8 = vshrl.u32 %v4855_v5, 16 }
 0x2bb   :  { %v6665_v28 = vor.u32 %v2041_v14, %v6652_v50  ;;  %v6669_v59 = vor.u32 %v2049_v47, %v6654_v10  ;;  %v6674_v32 = vrot.slane %v2062_v33, 7  ;;  %v2073_v52 = vshll.u32 %v4855_v5, 16  ;;  %v2225_v33 = vld [vmem:[#allocation2 + $0x40] sm:$0xf] }
 0x2bc   :  { %v2078_v12 = vshrl.u32 %v4856_v2, 16  ;;  %v2081_v34 = vshll.u32 %v4856_v2, 16  ;;  %v2086_v4 = vshrl.u32 %v4857_v7, 16  ;;  %v2089_v23 = vshll.u32 %v4857_v7, 16 }
 0x2bd   :  { %v6677_v25 = vor.u32 %v2057_v35, %v6672_v1  ;;  %v6681_v62 = vor.u32 %v2065_v51, %v6674_v32  ;;  %v2072_v42 = vrot.slane %v2070_v8, 7  ;;  %v2094_v43 = vshrl.u32 %v6634_v3, 16  ;;  %v2222_v35 = vld [vmem:[#allocation2 + $0x3c] sm:$0x1] }
 0x2be   :  { %v2080_v37 = vrot.slane %v2078_v12, 7  ;;  %v6684_v22 = vrot.slane %v2086_v4, 7  ;;  %v2097_v30 = vshll.u32 %v6634_v3, 16  ;;  %v2102_v49 = vshrl.u32 %v6636_v61, 16 }
 0x2bf   :  { %v2105_v18 = vshll.u32 %v6636_v61, 16  ;;  %v2110_v48 = vshrl.u32 %v6638_v17, 16  ;;  %v2075_v63 = vor.u32 %v2073_v52, %v2072_v42  ;;  %v2076_v53 = vrot.slane %v2072_v42, 4  ;;  %v2231_v42 = vld [vmem:[#allocation2 + $0x58] sm:$0xf] }
 0x2c0   :  { %v2083_v31 = vor.u32 %v2081_v34, %v2080_v37  ;;  %v2084_v5 = vrot.slane %v2080_v37, 4  ;;  %v6692_v2 = vor.u32 %v2089_v23, %v6684_v22  ;;  %v2092_v7 = vrot.slane %v6684_v22, 4  ;;  %v2234_v37 = vld [vmem:[#allocation2 + $0x5c] sm:$0x1]  ;;  %v2237_v22 = vld [vmem:[#allocation2 + $0x60] sm:$0xf] }
 0x2c1   :  { %v2096_v41 = vrot.slane %v2094_v43, 7  ;;  %v6695_v55 = vrot.slane %v2102_v49, 7  ;;  %v6697_v36 = vrot.slane %v2110_v48, 7  ;;  %v2113_v3 = vshll.u32 %v6638_v17, 16  ;;  %v2240_v43 = vld [vmem:[#allocation2 + $0x64] sm:$0x1] }
 0x2c2   :  { %v2118_v61 = vshrl.u32 %v6640_v27, 16  ;;  %v2121_v46 = vshll.u32 %v6640_v27, 16  ;;  %v2126_v52 = vshrl.u32 %v6642_v20, 16  ;;  %v2228_v27 = vld [vmem:[#allocation2 + $0x44] sm:$0x1]  ;;  %v2129_v12 = vshll.u32 %v6642_v20, 16 }
 0x2c3   :  { %v2099_v14 = vor.u32 %v2097_v30, %v2096_v41  ;;  %v2100_v39 = vrot.slane %v2096_v41, 4  ;;  %v6703_v47 = vor.u32 %v2105_v18, %v6695_v55  ;;  %v2108_v54 = vrot.slane %v6695_v55, 4  ;;  %v2243_v41 = vld [vmem:[#allocation2 + $0x68] sm:$0xf]  ;;  %v2246_v55 = vld [vmem:[#allocation2 + $0x6c] sm:$0x1] }
 0x2c4   :  { %v6707_v51 = vor.u32 %v2113_v3, %v6697_v36  ;;  %v2116_v8 = vrot.slane %v6697_v36, 4  ;;  %v6710_v17 = vrot.slane %v2118_v61, 7  ;;  %v2134_v34 = vshrl.u32 %v6644_v6, 16  ;;  %v2249_v20 = vld [vmem:[#allocation2 + $0x70] sm:$0xf] }
 0x2c5   :  { %v2137_v4 = vshll.u32 %v6644_v6, 16  ;;  %v2142_v23 = vshrl.u32 %v6646_v40, 16  ;;  %v2128_v18 = vrot.slane %v2126_v52, 7  ;;  %v2145_v48 = vshll.u32 %v6646_v40, 16  ;;  %v2252_v36 = vld [vmem:[#allocation2 + $0x74] sm:$0x1] }
 0x2c6   :  { %v2123_v30 = vor.u32 %v2121_v46, %v6710_v17  ;;  %v2124_v49 = vrot.slane %v6710_v17, 4  ;;  %v2136_v3 = vrot.slane %v2134_v34, 7  ;;  %v2220_v13 = vsel %vm6334_vm1, %v2075_v63, %v2219_v44  ;;  %v2261_v52 = vld [vmem:[#allocation2 + $0x80] sm:$0xf] }
 0x2c7   :  { %v2144_v61 = vrot.slane %v2142_v23, 7  ;;  %v2223_v29 = vsel %vm6269_vm13, %v2076_v53, %v2222_v35  ;;  %v2131_v46 = vor.u32 %v2129_v12, %v2128_v18  ;;  %v2132_v0 = vrot.slane %v2128_v18, 4  ;;  %2221 = vst [vmem:[#allocation2 + $0x38] sm:$0xf] %v2220_v13  ;;  %v2270_v53 = vld [vmem:[#allocation2 + $0x8c] sm:$0x1] }
 0x2c8   :  { %v2226_v17 = vsel %vm6334_vm1, %v2083_v31, %v2225_v33  ;;  %v2229_v40 = vsel %vm6269_vm13, %v2084_v5, %v2228_v27  ;;  %2224 = vst [vmem:[#allocation2 + $0x3c] sm:$0x1] %v2223_v29  ;;  %v2139_v34 = vor.u32 %v2137_v4, %v2136_v3  ;;  %v2140_v23 = vrot.slane %v2136_v3, 4  ;;  %v2273_v13 = vld [vmem:[#allocation2 + $0x90] sm:$0xf] }
 0x2c9   :  { %v2147_v63 = vor.u32 %v2145_v48, %v2144_v61  ;;  %v2148_v44 = vrot.slane %v2144_v61, 4  ;;  %2227 = vst [vmem:[#allocation2 + $0x40] sm:$0xf] %v2226_v17  ;;  %2230 = vst [vmem:[#allocation2 + $0x44] sm:$0x1] %v2229_v40  ;;  %v2232_v35 = vsel %vm6334_vm1, %v6692_v2, %v2231_v42  ;;  %v2235_v31 = vsel %vm6269_vm13, %v2092_v7, %v2234_v37 }
 0x2ca   :  { %v2238_v5 = vsel %vm6334_vm1, %v2099_v14, %v2237_v22  ;;  %v2241_v29 = vsel %vm6269_vm13, %v2100_v39, %v2240_v43  ;;  %v2276_v33 = vld [vmem:[#allocation2 + $0x94] sm:$0x1]  ;;  %v2189_v27 = vld [vmem:[#allocation2 + $0x10] sm:$0xf]  ;;  %v2244_v12 = vsel %vm6334_vm1, %v6703_v47, %v2243_v41  ;;  %v2247_v4 = vsel %vm6269_vm13, %v2108_v54, %v2246_v55  ;;  %2233 = vst [vmem:[#allocation2 + $0x58] sm:$0xf] %v2232_v35 }
 0x2cb   :  { %v2250_v2 = vsel %vm6334_vm1, %v6707_v51, %v2249_v20  ;;  %v2253_v7 = vsel %vm6269_vm13, %v2116_v8, %v2252_v36  ;;  %2236 = vst [vmem:[#allocation2 + $0x5c] sm:$0x1] %v2235_v31  ;;  %2239 = vst [vmem:[#allocation2 + $0x60] sm:$0xf] %v2238_v5  ;;  %v2183_v14 = vld [vmem:[#allocation2 + $0x8] sm:$0xf]  ;;  %v2256_v47 = vsel %vm6334_vm1, %v2123_v30, %v2255_v26 }
 0x2cc   :  { %2242 = vst [vmem:[#allocation2 + $0x64] sm:$0x1] %v2241_v29  ;;  %v2201_v39 = vld [vmem:[#allocation2 + $0x20] sm:$0xf]  ;;  %v2195_v42 = vld [vmem:[#allocation2 + $0x18] sm:$0xf]  ;;  %v2259_v54 = vsel %vm6269_vm13, %v2124_v49, %v2258_v58  ;;  %v2262_v51 = vsel %vm6334_vm1, %v2131_v46, %v2261_v52  ;;  %v2265_v8 = vsel %vm6269_vm13, %v2132_v0, %v2264_v19  ;;  %v2268_v18 = vsel %vm6334_vm1, %v2139_v34, %v2267_v60 }
 0x2cd   :  { %2245 = vst [vmem:[#allocation2 + $0x68] sm:$0xf] %v2244_v12  ;;  %2248 = vst [vmem:[#allocation2 + $0x6c] sm:$0x1] %v2247_v4  ;;  %v2207_v37 = vld [vmem:[#allocation2 + $0x28] sm:$0xf]  ;;  %v2271_v26 = vsel %vm6269_vm13, %v2140_v23, %v2270_v53  ;;  %v2274_v58 = vsel %vm6334_vm1, %v2147_v63, %v2273_v13  ;;  %v2277_v30 = vsel %vm6269_vm13, %v2148_v44, %v2276_v33 }
 0x2ce   :  { %2251 = vst [vmem:[#allocation2 + $0x70] sm:$0xf] %v2250_v2  ;;  %2254 = vst [vmem:[#allocation2 + $0x74] sm:$0x1] %v2253_v7  ;;  %v2213_v22 = vld [vmem:[#allocation2 + $0x30] sm:$0xf]  ;;  %v2190_v60 = vsel %vm6334_vm1, %v6661_v15, %v2189_v27  ;;  %v2184_v49 = vsel %vm6334_vm1, %v6657_v45, %v2183_v14  ;;  %v2202_v48 = vsel %vm6334_vm1, %v6669_v59, %v2201_v39 }
 0x2cf   :  { %v2186_v43 = vld [vmem:[#allocation2 + $0xc] sm:$0x1]  ;;  %2257 = vst [vmem:[#allocation2 + $0x78] sm:$0xf] %v2256_v47  ;;  %2260 = vst [vmem:[#allocation2 + $0x7c] sm:$0x1] %v2259_v54  ;;  %v2208_v15 = vsel %vm6334_vm1, %v6677_v25, %v2207_v37  ;;  %v2214_v45 = vsel %vm6334_vm1, %v6681_v62, %v2213_v22 }
 0x2d0   :  { %2263 = vst [vmem:[#allocation2 + $0x80] sm:$0xf] %v2262_v51  ;;  %2266 = vst [vmem:[#allocation2 + $0x84] sm:$0x1] %v2265_v8  ;;  %v2192_v19 = vld [vmem:[#allocation2 + $0x14] sm:$0x1] }
 0x2d1   :  { %2269 = vst [vmem:[#allocation2 + $0x88] sm:$0xf] %v2268_v18  ;;  %2272 = vst [vmem:[#allocation2 + $0x8c] sm:$0x1] %v2271_v26  ;;  %v4240_v0 = vadd.f32 1e-05, %v6610_v16  ;;  %v2196_v16 = vsel %vm6334_vm1, %v6665_v28, %v2195_v42 }
 0x2d2   :  { %2275 = vst [vmem:[#allocation2 + $0x90] sm:$0xf] %v2274_v58  ;;  %2278 = vst [vmem:[#allocation2 + $0x94] sm:$0x1] %v2277_v30  ;;  %v2198_v41 = vld [vmem:[#allocation2 + $0x1c] sm:$0x1] }
 0x2d3   :  { %v2204_v55 = vld [vmem:[#allocation2 + $0x24] sm:$0x1]  ;;  %2191 = vst [vmem:[#allocation2 + $0x10] sm:$0xf] %v2190_v60  ;;  %2185 = vst [vmem:[#allocation2 + $0x8] sm:$0xf] %v2184_v49  ;;  %5207 = vrsqrt.f32 %v4240_v0 }
 0x2d4   :  { %2203 = vst [vmem:[#allocation2 + $0x20] sm:$0xf] %v2202_v48  ;;  %v8063_v20 = vrot.slane %v6648_v21, 4  ;;  %v2210_v36 = vld [vmem:[#allocation2 + $0x2c] sm:$0x1]  ;;  %v8064_v25 = vrot.slane %v6650_v11, 4 }
 0x2d5   :  { %v2216_v3 = vld [vmem:[#allocation2 + $0x34] sm:$0x1]  ;;  %2197 = vst [vmem:[#allocation2 + $0x18] sm:$0xf] %v2196_v16  ;;  %2209 = vst [vmem:[#allocation2 + $0x28] sm:$0xf] %v2208_v15 }
 0x2d6   :  { %v2187_v59 = vsel %vm6269_vm13, %v8063_v20, %v2186_v43  ;;  %2215 = vst [vmem:[#allocation2 + $0x30] sm:$0xf] %v2214_v45  ;;  %v6786_v28 = vld [vmem:[#allocation2 + $0x38] sm:$0xf]  ;;  %v2193_v61 = vsel %vm6269_vm13, %v8064_v25, %v2192_v19  ;;  %v8065_v21 = vrot.slane %v6652_v50, 4  ;;  %v8066_v6 = vrot.slane %v6654_v10, 4 }
 0x2d7   :  { %2188 = vst [vmem:[#allocation2 + $0xc] sm:$0x1] %v2187_v59  ;;  %2194 = vst [vmem:[#allocation2 + $0x14] sm:$0x1] %v2193_v61  ;;  %v6800_v17 = vld [vmem:[#allocation2 + $0x3c] sm:$0x1] }
 0x2d8   :  { %v2199_v62 = vsel %vm6269_vm13, %v8065_v21, %v2198_v41  ;;  %v2205_v46 = vsel %vm6269_vm13, %v8066_v6, %v2204_v55  ;;  %v8067_v11 = vrot.slane %v6672_v1, 4  ;;  %v8068_v52 = vrot.slane %v6674_v32, 4  ;;  %v8070_v13 = vld [vmem:[#allocation4_spill] sm:$0xff]  ;;  %v8072_v27 = vld [vmem:[#allocation5_spill] sm:$0xff]  ;;  %v8074_v4 = vld [vmem:[#allocation6_spill] sm:$0xff] }
 0x2d9   :  { %2200 = vst [vmem:[#allocation2 + $0x1c] sm:$0x1] %v2199_v62  ;;  %2206 = vst [vmem:[#allocation2 + $0x24] sm:$0x1] %v2205_v46  ;;  %v6812_v10 = vcombine.low %v6786_v28, %v6800_v17  ;;  %v8076_v20 = vld [vmem:[#allocation7_spill] sm:$0xff]  ;;  %v4734_v62 = vcombine.low %v6786_v28, %v6786_v28 }
 0x2da   :  { %v2211_v40 = vsel %vm6269_vm13, %v8067_v11, %v2210_v36  ;;  %v2217_v50 = vsel %vm6269_vm13, %v8068_v52, %v2216_v3  ;;  %v2328_v34 = vld [vmem:[#allocation2 + $0x10] sm:$0xf]  ;;  %v2327_v23 = vld [vmem:[#allocation2 + $0x8] sm:$0xf]  ;;  %v2334_v36 = vld [vmem:[#allocation2 + $0x40] sm:$0xf] }
 0x2db   :  { %2212 = vst [vmem:[#allocation2 + $0x2c] sm:$0x1] %v2211_v40  ;;  %2218 = vst [vmem:[#allocation2 + $0x34] sm:$0x1] %v2217_v50  ;;  %v4729_v63 = vcombine.low %v2328_v34, %v2328_v34  ;;  %v4728_v44 = vcombine.low %v2327_v23, %v2327_v23  ;;  %v2330_v53 = vld [vmem:[#allocation2 + $0x20] sm:$0xf]  ;;  %v4735_v21 = vcombine.low %v2334_v36, %v2334_v36 }
 0x2dc   :  { %v2329_v1 = vld [vmem:[#allocation2 + $0x18] sm:$0xf]  ;;  %v4731_v35 = vcombine.low %v2330_v53, %v2330_v53  ;;  %v2376_v29 = vld [vmem:[#allocation2 + $0x10] sm:$0xf]  ;;  %v2379_v47 = vld [vmem:[#allocation2 + $0x28] sm:$0xf] }
 0x2dd   :  { %2794 = vrot.lane.b32.xlu1 %v4729_v63, %s5222_s17  ;;  %2792 = vrot.lane.b32.xlu0 %v4728_v44, %s5222_s17  ;;  %v6816_v32 = vpop.eup %5207  ;;  %v4730_v31 = vcombine.low %v2329_v1, %v2329_v1  ;;  %v2377_v5 = vld [vmem:[#allocation2 + $0x18] sm:$0xf]  ;;  %v4776_v14 = vcombine.low %v2376_v29, %v2376_v29  ;;  %v2378_v54 = vld [vmem:[#allocation2 + $0x20] sm:$0xf]  ;;  %v4779_v26 = vcombine.low %v2379_v47, %v2379_v47  ;;  %v2332_v0 = vld [vmem:[#allocation2 + $0x30] sm:$0xf] }
 0x2de   :  { %v6820_v38 = vmul.f32 %v6816_v32, %v6483_v9  ;;  %v6824_v33 = vmul.f32 %v6816_v32, %v8070_v13  ;;  %v6828_v12 = vmul.f32 %v6816_v32, %v8072_v27  ;;  %v6834_v9 = vmul.f32 %v6816_v32, %v8074_v4  ;;  %v6836_v2 = vld [vmem:[#allocation2 + $0xc] sm:$0x1]  ;;  %v6841_v42 = vld [vmem:[#allocation2 + $0x14] sm:$0x1]  ;;  %v2331_v60 = vld [vmem:[#allocation2 + $0x28] sm:$0xf] }
 0x2df   :  { %v4777_v7 = vcombine.low %v2377_v5, %v2377_v5  ;;  %v6839_v39 = vcombine.low %v2327_v23, %v6836_v2  ;;  %v6844_v51 = vcombine.low %v2328_v34, %v6841_v42  ;;  %v6858_v18 = vld [vmem:[#allocation2 + $0x14] sm:$0x1]  ;;  %v4778_v58 = vcombine.low %v2378_v54, %v2378_v54  ;;  %v8078_v3 = vld [vmem:[#allocation8_spill] sm:$0xff]  ;;  %v2380_v6 = vld [vmem:[#allocation2 + $0x30] sm:$0xf] }
 0x2e0   :  { %8069 = vst [vmem:[#allocation3_spill] sm:$0xff] %v6820_v38  ;;  %8071 = vst [vmem:[#allocation4_spill] sm:$0xff] %v6824_v33  ;;  %v6846_v8 = vld [vmem:[#allocation2 + $0x1c] sm:$0x1]  ;;  %v6853_v22 = vld [vmem:[#allocation2 + $0x24] sm:$0x1]  ;;  %v6861_v30 = vcombine.low %v2376_v29, %v6858_v18  ;;  %v4733_v15 = vcombine.low %v2332_v0, %v2332_v0  ;;  %v4732_v45 = vcombine.low %v2331_v60, %v2331_v60 }
 0x2e1   :  { %8073 = vst [vmem:[#allocation5_spill] sm:$0xff] %v6828_v12  ;;  %2798 = vrot.lane.b32.xlu1 %v4731_v35, %s5222_s17  ;;  %2796 = vrot.lane.b32.xlu0 %v4730_v31, %s5222_s17  ;;  %8075 = vst [vmem:[#allocation6_spill] sm:$0xff] %v6834_v9  ;;  %v6851_v37 = vcombine.low %v2329_v1, %v6846_v8  ;;  %v6856_v43 = vcombine.low %v2330_v53, %v6853_v22  ;;  %v6863_v19 = vld [vmem:[#allocation2 + $0x1c] sm:$0x1]  ;;  %v6868_v48 = vld [vmem:[#allocation2 + $0x24] sm:$0x1] }
 0x2e2   :  { %v6866_v49 = vcombine.low %v2377_v5, %v6863_v19  ;;  %v6873_v41 = vcombine.low %v2378_v54, %v6868_v48  ;;  %v6875_v55 = vld [vmem:[#allocation2 + $0x2c] sm:$0x1]  ;;  %v6882_v59 = vmul.f32 %v6816_v32, %v8076_v20  ;;  %v6888_v25 = vmul.f32 %v6816_v32, %v8078_v3  ;;  %v6897_v11 = vld [vmem:[#allocation2 + $0x34] sm:$0x1]  ;;  %v2381_v40 = vld [vmem:[#allocation2 + $0x38] sm:$0xf] }
 0x2e3   :  { %v6878_v16 = vcombine.low %v2379_v47, %v6875_v55  ;;  %v6890_v61 = vld [vmem:[#allocation2 + $0x2c] sm:$0x1]  ;;  %v6900_v52 = vcombine.low %v2332_v0, %v6897_v11  ;;  %v6902_v50 = vld [vmem:[#allocation2 + $0x44] sm:$0x1]  ;;  %v2382_v34 = vld [vmem:[#allocation2 + $0x40] sm:$0xf]  ;;  %v4781_v53 = vcombine.low %v2381_v40, %v2381_v40  ;;  %v4780_v1 = vcombine.low %v2380_v6, %v2380_v6 }
 0x2e4   :  { %8077 = vst [vmem:[#allocation7_spill] sm:$0xff] %v6882_v59  ;;  %8079 = vst [vmem:[#allocation8_spill] sm:$0xff] %v6888_v25  ;;  %v6895_v46 = vcombine.low %v2331_v60, %v6890_v61  ;;  %v6907_v23 = vcombine.low %v2334_v36, %v6902_v50  ;;  %v6909_v28 = vld [vmem:[#allocation2 + $0x34] sm:$0x1]  ;;  %v6914_v44 = vld [vmem:[#allocation2 + $0x3c] sm:$0x1] }
 0x2e5   :  { %3162 = vrot.lane.b32.xlu1 %v4777_v7, %s5226_s0  ;;  %3160 = vrot.lane.b32.xlu0 %v4776_v14, %s5226_s0  ;;  %v6912_v63 = vcombine.low %v2380_v6, %v6909_v28  ;;  %v6917_v35 = vcombine.low %v2381_v40, %v6914_v44  ;;  %v6919_v31 = vld [vmem:[#allocation2 + $0x44] sm:$0x1]  ;;  %v2336_v5 = vld [vmem:[#allocation2 + $0x60] sm:$0xf]  ;;  %v2335_v13 = vld [vmem:[#allocation2 + $0x58] sm:$0xf]  ;;  %v4782_v14 = vcombine.low %v2382_v34, %v2382_v34 }
 0x2e6   :  { %v6922_v29 = vcombine.low %v2382_v34, %v6919_v31  ;;  %v8080_v27 = vld [vmem:[#allocation9_spill] sm:$0xff]  ;;  %v4737_v7 = vcombine.low %v2336_v5, %v2336_v5  ;;  %v8082_v47 = vld [vmem:[#allocation10_spill] sm:$0xff]  ;;  %v6946_v36 = vld [vmem:[#allocation2 + $0x6c] sm:$0x1] }
 0x2e7   :  { %v6928_v4 = vmul.f32 %v6816_v32, %v8080_v27  ;;  %v6932_v54 = vmul.f32 %v6816_v32, %v8082_v47  ;;  %v6934_v0 = vld [vmem:[#allocation2 + $0x5c] sm:$0x1]  ;;  %v6951_v40 = vld [vmem:[#allocation2 + $0x74] sm:$0x1]  ;;  %v2386_v34 = vld [vmem:[#allocation2 + $0x70] sm:$0xf] }
 0x2e8   :  { %v6939_v60 = vcombine.low %v2335_v13, %v6934_v0  ;;  %v8094_v9 = vld [vmem:[#allocation12_spill] sm:$0xff] }
 0x2e9   :  { %3166 = vrot.lane.b32.xlu1 %v4779_v26, %s5226_s0  ;;  %3164 = vrot.lane.b32.xlu0 %v4778_v58, %s5226_s0  ;;  %8081 = vst [vmem:[#allocation9_spill] sm:$0xff] %v6928_v4  ;;  %8083 = vst [vmem:[#allocation10_spill] sm:$0xff] %v6932_v54  ;;  %v2338_v26 = vld [vmem:[#allocation2 + $0x70] sm:$0xf]  ;;  %v2337_v58 = vld [vmem:[#allocation2 + $0x68] sm:$0xf]  ;;  %v6986_v12 = vmul.f32 %v6816_v32, %v8094_v9  ;;  %v4786_v9 = vcombine.low %v2386_v34, %v2386_v34 }
 0x2ea   :  { %8084 = vst [vmem:[#allocation16_spill] sm:$0xff] %v6939_v60  ;;  %v4739_v3 = vcombine.low %v2338_v26, %v2338_v26  ;;  %v6949_v6 = vcombine.low %v2337_v58, %v6946_v36  ;;  %v6973_v54 = vld [vmem:[#allocation2 + $0x7c] sm:$0x1]  ;;  %v2341_v33 = vld [vmem:[#allocation2 + $0x88] sm:$0xf] }
 0x2eb   :  { %8095 = vst [vmem:[#allocation12_spill] sm:$0xff] %v6986_v12  ;;  %v2362_v60 = vld [vmem:[#allocation2 + $0x20] sm:$0xe] }
 0x2ec   :  { %8086 = vst [vmem:[#allocation18_spill] sm:$0xff] %v6949_v6 }
 0x2ed   :  { %2802 = vrot.lane.b32.xlu1 %v4733_v15, %s5222_s17  ;;  %2800 = vrot.lane.b32.xlu0 %v4732_v45, %s5222_s17  ;;  %v6941_v15 = vld [vmem:[#allocation2 + $0x64] sm:$0x1]  ;;  %v2384_v45 = vld [vmem:[#allocation2 + $0x60] sm:$0xf] }
 0x2ee   :  { %v6944_v20 = vcombine.low %v2336_v5, %v6941_v15  ;;  %v2387_v5 = vld [vmem:[#allocation2 + $0x78] sm:$0xf]  ;;  %v4784_v59 = vcombine.low %v2384_v45, %v2384_v45 }
 0x2ef   :  { %v4787_v25 = vcombine.low %v2387_v5, %v2387_v5 }
 0x2f0   :  { %8085 = vst [vmem:[#allocation17_spill] sm:$0xff] %v6944_v20  ;;  %v2361_v20 = vld [vmem:[#allocation2 + $0x18] sm:$0xe] }
 0x2f1   :  { %2806 = vrot.lane.b32.xlu1 %v4735_v21, %s5222_s17  ;;  %2804 = vrot.lane.b32.xlu0 %v4734_v62, %s5222_s17  ;;  %v4736_v21 = vcombine.low %v2335_v13, %v2335_v13  ;;  %v2385_v62 = vld [vmem:[#allocation2 + $0x68] sm:$0xf]  ;;  %v6963_v13 = vld [vmem:[#allocation2 + $0x6c] sm:$0x1] }
 0x2f2   :  { %v4785_v47 = vcombine.low %v2385_v62, %v2385_v62 }
 0x2f5   :  { %3170 = vrot.lane.b32.xlu1 %v4781_v53, %s5226_s0  ;;  %3168 = vrot.lane.b32.xlu0 %v4780_v1, %s5226_s0  ;;  %v6954_v53 = vcombine.low %v2338_v26, %v6951_v40  ;;  %v6956_v1 = vld [vmem:[#allocation2 + $0x64] sm:$0x1]  ;;  %v4738_v26 = vcombine.low %v2337_v58, %v2337_v58  ;;  %v2339_v58 = vld [vmem:[#allocation2 + $0x78] sm:$0xf] }
 0x2f6   :  { %v6961_v27 = vcombine.low %v2384_v45, %v6956_v1 }
 0x2f7   :  { %8087 = vst [vmem:[#allocation19_spill] sm:$0xff] %v6954_v53 }
 0x2f8   :  { %8088 = vst [vmem:[#allocation20_spill] sm:$0xff] %v6961_v27  ;;  %v2359_v27 = vld [vmem:[#allocation2 + $0x8] sm:$0xe] }
 0x2f9   :  { %2810 = vrot.lane.b32.xlu1 %v4737_v7, %s5222_s17  ;;  %3172 = vrot.lane.b32.xlu0 %v4782_v14, %s5226_s0  ;;  %v6966_v7 = vcombine.low %v2385_v62, %v6963_v13  ;;  %v6968_v14 = vld [vmem:[#allocation2 + $0x74] sm:$0x1]  ;;  %v2340_v62 = vld [vmem:[#allocation2 + $0x80] sm:$0xf] }
 0x2fa   :  { %v6971_v38 = vcombine.low %v2386_v34, %v6968_v14 }
 0x2fb   :  { %8089 = vst [vmem:[#allocation21_spill] sm:$0xff] %v6966_v7  ;;  %v2314_v7 = vld [vmem:[#allocation2 + $0x18] sm:$0xe] }
 0x2fc   :  { %8090 = vst [vmem:[#allocation22_spill] sm:$0xff] %v6971_v38 }
 0x2fd   :  { %2814 = vrot.lane.b32.xlu1 %v4739_v3, %s5222_s17  ;;  %2808 = vrot.lane.b32.xlu0 %v4736_v21, %s5222_s17  ;;  %v6976_v3 = vcombine.low %v2387_v5, %v6973_v54  ;;  %v8092_v21 = vld [vmem:[#allocation11_spill] sm:$0xff]  ;;  %v2342_v5 = vld [vmem:[#allocation2 + $0x90] sm:$0xf] }
 0x2fe   :  { %v6982_v4 = vmul.f32 %v6816_v32, %v8092_v21  ;;  %v4741_v21 = vcombine.low %v2340_v62, %v2340_v62 }
 0x2ff   :  { %8091 = vst [vmem:[#allocation23_spill] sm:$0xff] %v6976_v3 }
 0x300   :  { %8093 = vst [vmem:[#allocation11_spill] sm:$0xff] %v6982_v4  ;;  %v6999_v4 = vld [vmem:[#allocation2 + $0x84] sm:$0x1] }
 0x301   :  { %3178 = vrot.lane.b32.xlu1 %v4785_v47, %s5226_s0  ;;  %2812 = vrot.lane.b32.xlu0 %v4738_v26, %s5222_s17  ;;  %v6990_v47 = vld [vmem:[#allocation2 + $0x7c] sm:$0x1]  ;;  %v8096_v26 = vld [vmem:[#allocation13_spill] sm:$0xff]  ;;  %v7002_v12 = vcombine.low %v2340_v62, %v6999_v4  ;;  %v4743_v62 = vcombine.low %v2342_v5, %v2342_v5 }
 0x302   :  { %v6994_v3 = vmul.f32 %v6816_v32, %v8096_v26  ;;  %v6997_v45 = vcombine.low %v2339_v58, %v6990_v47  ;;  %v7012_v26 = vmul.f32 %v6816_v32, %v6475_v57  ;;  %v2312_v57 = vld [vmem:[#allocation2 + $0x8] sm:$0xe] }
 0x303   :  { %8099 = vst [vmem:[#allocation25_spill] sm:$0xff] %v7002_v12  ;;  %v4740_v12 = vcombine.low %v2339_v58, %v2339_v58  ;;  %v2313_v58 = vld [vmem:[#allocation2 + $0x10] sm:$0xe] }
 0x304   :  { %8097 = vst [vmem:[#allocation13_spill] sm:$0xff] %v6994_v3  ;;  %8098 = vst [vmem:[#allocation24_spill] sm:$0xff] %v6997_v45  ;;  %v7017_v45 = vld [vmem:[#allocation2 + $0x94] sm:$0x1] }
 0x305   :  { %3182 = vrot.lane.b32.xlu1 %v4787_v25, %s5226_s0  ;;  %3176 = vrot.lane.b32.xlu0 %v4784_v59, %s5226_s0  ;;  %v7004_v25 = vld [vmem:[#allocation2 + $0x8c] sm:$0x1]  ;;  %v8100_v59 = vld [vmem:[#allocation14_spill] sm:$0xff]  ;;  %8102 = vst [vmem:[#allocation26_spill] sm:$0xff] %v7012_v26  ;;  %v7022_v34 = vcombine.low %v2342_v5, %v7017_v45 }
 0x306   :  { %v7008_v38 = vmul.f32 %v6816_v32, %v8100_v59  ;;  %v7015_v3 = vcombine.low %v2341_v33, %v7004_v25  ;;  %v7024_v59 = vld [vmem:[#allocation2 + $0x88] sm:$0xf]  ;;  %v7037_v5 = vld [vmem:[#allocation2 + $0x1c] sm:$0x1] }
 0x307   :  { %8104 = vst [vmem:[#allocation28_spill] sm:$0xff] %v7022_v34  ;;  %8105 = vst [vmem:[#allocation29_spill] sm:$0xff] %v7024_v59  ;;  %v4789_v26 = vcombine.low %v7024_v59, %v7024_v59  ;;  %v7035_v34 = vld [vmem:[#allocation2 + $0x14] sm:$0x1]  ;;  %v4715_v59 = vcombine.low %v2314_v7, %v7037_v5 }
 0x308   :  { %8101 = vst [vmem:[#allocation14_spill] sm:$0xff] %v7008_v38  ;;  %8103 = vst [vmem:[#allocation27_spill] sm:$0xff] %v7015_v3  ;;  %v7026_v38 = vld [vmem:[#allocation2 + $0xc] sm:$0x1]  ;;  %v7032_v3 = vld [vmem:[#allocation2 + $0x80] sm:$0xf] }
 0x309   :  { %2818 = vrot.lane.b32.xlu1 %v4741_v21, %s5222_s17  ;;  %3180 = vrot.lane.b32.xlu0 %v4786_v9, %s5226_s0  ;;  %v4742_v21 = vcombine.low %v2341_v33, %v2341_v33  ;;  %8106 = vst [vmem:[#allocation30_spill] sm:$0xff] %v7032_v3  ;;  %v4713_v9 = vcombine.low %v2312_v57, %v7026_v38  ;;  %v2360_v57 = vld [vmem:[#allocation2 + $0x10] sm:$0xe]  ;;  %v2699_v6 = vrot.slane %v4715_v59, 1  ;;  %v2411_v59 = vld [vmem:[#allocation2 + $0x28] sm:$0xe] }
 0x30a   :  { %v4714_v33 = vcombine.low %v2313_v58, %v7035_v34  ;;  %v4762_v58 = vcombine.low %v2361_v20, %v6846_v8  ;;  %v4811_v20 = vcombine.low %v2411_v59, %v6875_v55  ;;  %v7071_v55 = vld [vmem:[#allocation2 + $0x34] sm:$0x1]  ;;  %v7081_v59 = vmul.f32 %v6816_v32, %v6480_v56 }
 0x30c   :  { %v2698_v53 = vrot.slane %v4714_v33, 1  ;;  %v7061_v33 = vld [vmem:[#allocation2 + $0x24] sm:$0x1] }
 0x30d   :  { %2822 = vrot.lane.b32.xlu1 %v4743_v62, %s5222_s17  ;;  %2816 = vrot.lane.b32.xlu0 %v4740_v12, %s5222_s17  ;;  %v4788_v12 = vcombine.low %v7032_v3, %v7032_v3  ;;  %v2697_v62 = vrot.slane %v4713_v9, 1  ;;  %v2408_v3 = vld [vmem:[#allocation2 + $0x10] sm:$0xe] }
 0x311   :  { %3186 = vrot.lane.b32.xlu1 %v4789_v26, %s5226_s0  ;;  %2820 = vrot.lane.b32.xlu0 %v4742_v21, %s5222_s17  ;;  %v4760_v26 = vcombine.low %v2359_v27, %v6836_v2  ;;  %v4761_v21 = vcombine.low %v2360_v57, %v6841_v42  ;;  %v3066_v2 = vrot.slane %v4762_v58, 1  ;;  %v4808_v27 = vcombine.low %v2408_v3, %v6858_v18  ;;  %v2315_v57 = vld [vmem:[#allocation2 + $0x20] sm:$0xe]  ;;  %v2316_v18 = vld [vmem:[#allocation2 + $0x28] sm:$0xe] }
 0x312   :  { %v3435_v3 = vrot.slane %v4811_v20, 1  ;;  %v2317_v58 = vld [vmem:[#allocation2 + $0x30] sm:$0xe]  ;;  %v7087_v20 = vmul.f32 %v6816_v32, %v6486_v24 }
 0x313   :  { %v3064_v9 = vrot.slane %v4760_v26, 1  ;;  %v3065_v7 = vrot.slane %v4761_v21, 1  ;;  %v3432_v8 = vrot.slane %v4808_v27, 1  ;;  %v7063_v26 = vld [vmem:[#allocation2 + $0x2c] sm:$0x1]  ;;  %v4716_v21 = vcombine.low %v2315_v57, %v7061_v33 }
 0x314   :  { %v2363_v27 = vld [vmem:[#allocation2 + $0x28] sm:$0xe]  ;;  %v2365_v57 = vld [vmem:[#allocation2 + $0x38] sm:$0xe] }
 0x315   :  { %3184 = vrot.lane.b32.xlu0 %v4788_v12, %s5226_s0  ;;  %2714 = vrot.lane.b32.xlu1 %v2697_v62, %s5220_s19  ;;  %v4763_v12 = vcombine.low %v2362_v60, %v6853_v22  ;;  %v2409_v62 = vld [vmem:[#allocation2 + $0x18] sm:$0xe] }
 0x317   :  { %v3067_v42 = vrot.slane %v4763_v12, 1 }
 0x319   :  { %2716 = vrot.lane.b32.xlu0 %v2698_v53, %s5220_s19  ;;  %2718 = vrot.lane.b32.xlu1 %v2699_v6, %s5220_s19  ;;  %v4809_v53 = vcombine.low %v2409_v62, %v6863_v19  ;;  %v2410_v6 = vld [vmem:[#allocation2 + $0x20] sm:$0xe]  ;;  %v2700_v62 = vrot.slane %v4716_v21, 1 }
 0x31a   :  { %v4810_v60 = vcombine.low %v2410_v6, %v6868_v48  ;;  %v2318_v48 = vld [vmem:[#allocation2 + $0x38] sm:$0xe] }
 0x31b   :  { %v3433_v22 = vrot.slane %v4809_v53, 1  ;;  %v2364_v53 = vld [vmem:[#allocation2 + $0x30] sm:$0xe] }
 0x31c   :  { %v3434_v19 = vrot.slane %v4810_v60, 1  ;;  %v4765_v60 = vcombine.low %v2364_v53, %v6897_v11 }
 0x31d   :  { %3080 = vrot.lane.b32.xlu0 %v3064_v9, %s5229_s4  ;;  %3082 = vrot.lane.b32.xlu1 %v3065_v7, %s5229_s4  ;;  %v4717_v9 = vcombine.low %v2316_v18, %v7063_v26  ;;  %v7069_v7 = vld [vmem:[#allocation2 + $0x3c] sm:$0x1]  ;;  %v2366_v18 = vld [vmem:[#allocation2 + $0x40] sm:$0xe] }
 0x31e   :  { %v4719_v12 = vcombine.low %v2318_v48, %v7069_v7  ;;  %v3069_v21 = vrot.slane %v4765_v60, 1  ;;  %v4767_v11 = vcombine.low %v2366_v18, %v6902_v50  ;;  %v2413_v48 = vld [vmem:[#allocation2 + $0x38] sm:$0xe]  ;;  %v7115_v60 = vpop.permute.xlu1 %3174 }
 0x320   :  { %v2703_v6 = vrot.slane %v4719_v12, 1  ;;  %v4813_v12 = vcombine.low %v2413_v48, %v6914_v44  ;;  %v7111_v44 = vld [vmem:[#allocation2 + $0x6c] sm:$0x1] }
 0x321   :  { %3084 = vrot.lane.b32.xlu0 %v3066_v2, %s5229_s4  ;;  %3086 = vrot.lane.b32.xlu1 %v3067_v42, %s5229_s4  ;;  %v2701_v2 = vrot.slane %v4717_v9, 1  ;;  %v4718_v42 = vcombine.low %v2317_v58, %v7071_v55  ;;  %v2412_v9 = vld [vmem:[#allocation2 + $0x30] sm:$0xe]  ;;  %v3071_v58 = vrot.slane %v4767_v11, 1 }
 0x322   :  { %v7123_v48 = vpop.permute.xlu1 %3366 }
 0x323   :  { %8109 = vst [vmem:[#allocation31_spill] sm:$0xff] %v7123_v48 }
 0x325   :  { %3448 = vrot.lane.b32.xlu0 %v3432_v8, %s5228_s11  ;;  %3450 = vrot.lane.b32.xlu1 %v3433_v22, %s5228_s11  ;;  %v2702_v8 = vrot.slane %v4718_v42, 1  ;;  %v4764_v22 = vcombine.low %v2363_v27, %v6890_v61  ;;  %v4766_v61 = vcombine.low %v2365_v57, %v6800_v17  ;;  %v7103_v42 = vld [vmem:[#allocation2 + $0x5c] sm:$0x1]  ;;  %v2320_v17 = vld [vmem:[#allocation2 + $0x58] sm:$0xe]  ;;  %v3437_v27 = vrot.slane %v4813_v12, 1 }
 0x326   :  { %v2369_v12 = vld [vmem:[#allocation2 + $0x68] sm:$0xe] }
 0x327   :  { %v3068_v56 = vrot.slane %v4764_v22, 1  ;;  %v3070_v24 = vrot.slane %v4766_v61, 1  ;;  %v2322_v22 = vld [vmem:[#allocation2 + $0x68] sm:$0xe]  ;;  %v2368_v61 = vld [vmem:[#allocation2 + $0x60] sm:$0xe] }
 0x329   :  { %3452 = vrot.lane.b32.xlu0 %v3434_v19, %s5228_s11  ;;  %3454 = vrot.lane.b32.xlu1 %v3435_v3, %s5228_s11  ;;  %v8107_v19 = vld [vmem:[#allocation15_spill] sm:$0xff] }
 0x32a   :  { %v7091_v3 = vmul.f32 %v6816_v32, %v8107_v19  ;;  %v4812_v32 = vcombine.low %v2412_v9, %v6909_v28  ;;  %v2321_v28 = vld [vmem:[#allocation2 + $0x60] sm:$0xe]  ;;  %8108 = vst [vmem:[#allocation15_spill] sm:$0xff] %v7115_v60 }
 0x32c   :  { %v3436_v50 = vrot.slane %v4812_v32, 1  ;;  %v4769_v32 = vcombine.low %v2368_v61, %v6941_v15 }
 0x32d   :  { %2720 = vrot.lane.b32.xlu0 %v2700_v62, %s5220_s19  ;;  %2722 = vrot.lane.b32.xlu1 %v2701_v2, %s5220_s19  ;;  %v7101_v62 = vpop.permute.xlu0 %2616  ;;  %v2414_v2 = vld [vmem:[#allocation2 + $0x40] sm:$0xe] }
 0x32e   :  { %v4814_v53 = vcombine.low %v2414_v2, %v6919_v31  ;;  %v2370_v2 = vld [vmem:[#allocation2 + $0x70] sm:$0xe] }
 0x330   :  { %v3438_v18 = vrot.slane %v4814_v53, 1  ;;  %v4771_v53 = vcombine.low %v2370_v2, %v6951_v40 }
 0x331   :  { %2724 = vrot.lane.b32.xlu0 %v2702_v8, %s5220_s19  ;;  %2726 = vrot.lane.b32.xlu1 %v2703_v6, %s5220_s19  ;;  %v4721_v6 = vcombine.low %v2320_v17, %v7103_v42  ;;  %v7109_v8 = vld [vmem:[#allocation2 + $0x64] sm:$0x1]  ;;  %v7117_v57 = vpop.permute.xlu0 %2712 }
 0x332   :  { %v4722_v31 = vcombine.low %v2321_v28, %v7109_v8  ;;  %v2417_v28 = vld [vmem:[#allocation2 + $0x68] sm:$0xe] }
 0x333   :  { %v2705_v19 = vrot.slane %v4721_v6, 1  ;;  %v2416_v6 = vld [vmem:[#allocation2 + $0x60] sm:$0xe] }
 0x334   :  { %v2706_v11 = vrot.slane %v4722_v31, 1  ;;  %v4817_v31 = vcombine.low %v2417_v28, %v6963_v13  ;;  %v7151_v13 = vld [vmem:[#allocation2 + $0x7c] sm:$0x1]  ;;  %v7163_v28 = vld [vmem:[#allocation2 + $0x8c] sm:$0x1] }
 0x335   :  { %3088 = vrot.lane.b32.xlu0 %v3068_v56, %s5229_s4  ;;  %3090 = vrot.lane.b32.xlu1 %v3069_v21, %s5229_s4  ;;  %v4723_v56 = vcombine.low %v2322_v22, %v7111_v44  ;;  %v2367_v21 = vld [vmem:[#allocation2 + $0x58] sm:$0xe] }
 0x337   :  { %v2707_v9 = vrot.slane %v4723_v56, 1  ;;  %v2418_v56 = vld [vmem:[#allocation2 + $0x70] sm:$0xe] }
 0x339   :  { %3092 = vrot.lane.b32.xlu0 %v3070_v24, %s5229_s4  ;;  %3094 = vrot.lane.b32.xlu1 %v3071_v58, %s5229_s4  ;;  %v7125_v24 = vpop.permute.xlu0 %2632  ;;  %v4768_v58 = vcombine.low %v2367_v21, %v6934_v0  ;;  %v7135_v0 = vpop.permute.xlu1 %3462 }
 0x33a   :  { %8110 = vst [vmem:[#allocation32_spill] sm:$0xff] %v7125_v24  ;;  %8111 = vst [vmem:[#allocation33_spill] sm:$0xff] %v7135_v0  ;;  %v2374_v0 = vld [vmem:[#allocation2 + $0x90] sm:$0xe] }
 0x33b   :  { %v3072_v17 = vrot.slane %v4768_v58, 1  ;;  %v4775_v60 = vcombine.low %v2374_v0, %v7017_v45  ;;  %v5200_v45 = vld [vmem:[%s8002_s2] sm:$0xff]  }
 0x33c   :  { %4911 = vmatprep.subr.bf16.mxu1 %v5200_v45 }
 0x33d   :  { %3456 = vrot.lane.b32.xlu0 %v3436_v50, %s5228_s11  ;;  %3458 = vrot.lane.b32.xlu1 %v3437_v27, %s5228_s11  ;;  %v3073_v50 = vrot.slane %v4769_v32, 1  ;;  %v4770_v27 = vcombine.low %v2369_v12, %v6946_v36  ;;  %v7137_v15 = vpop.permute.xlu0 %2728  ;;  %v2419_v36 = vld [vmem:[#allocation2 + $0x78] sm:$0xe]  ;;  %v7149_v32 = vld [vmem:[#allocation2 + $0x74] sm:$0x1] }
 0x33e   :  { %8112 = vst [vmem:[#allocation34_spill] sm:$0xff] %v7137_v15  ;;  %v4819_v58 = vcombine.low %v2419_v36, %v6973_v54  ;;  %v2324_v12 = vld [vmem:[#allocation2 + $0x78] sm:$0xe]  ;;  %4912 = vmatpush3.bf16.msra.mxu1 %v5200_v45  ;;  %v3243_v45 = vshll.u32 %v6861_v30, 16 }
 0x33f   :  { %v3074_v22 = vrot.slane %v4770_v27, 1  ;;  %v4725_v54 = vcombine.low %v2324_v12, %v7151_v13  ;;  %v2372_v12 = vld [vmem:[#allocation2 + $0x80] sm:$0xe] }
 0x340   :  { %v3443_v27 = vrot.slane %v4819_v58, 1  ;;  %v4773_v24 = vcombine.low %v2372_v12, %v6999_v4 }
 0x341   :  { %3460 = vrot.lane.b32.xlu0 %v3438_v18, %s5228_s11  ;;  %2730 = vrot.lane.b32.xlu1 %v2705_v19, %s5220_s19  ;;  %v3075_v18 = vrot.slane %v4771_v53, 1  ;;  %v4816_v19 = vcombine.low %v2416_v6, %v6956_v1  ;;  %v2323_v1 = vld [vmem:[#allocation2 + $0x70] sm:$0xe]  ;;  %v7161_v53 = vld [vmem:[#allocation2 + $0x84] sm:$0x1] }
 0x342   :  { %v2325_v6 = vld [vmem:[#allocation2 + $0x80] sm:$0xe]  ;;  %v3077_v4 = vrot.slane %v4773_v24, 1  ;;  %v5201_v24 = vld [vmem:[%s8002_s2 + $0x8] sm:$0xff]  }
 0x343   :  { %v3440_v61 = vrot.slane %v4816_v19, 1  ;;  %v7169_v19 = vld [vmem:[#allocation2 + $0x8] sm:$0xf]  ;;  %4913 = vmatprep.subr.bf16.mxu1 %v5201_v24 }
 0x344   :  { %4914 = vmatpush3.bf16.msra.mxu1 %v5201_v24  ;;  %v2880_v24 = vshrl.u32 %v6844_v51, 16 }
 0x345   :  { %2732 = vrot.lane.b32.xlu0 %v2706_v11, %s5220_s19  ;;  %2734 = vrot.lane.b32.xlu1 %v2707_v9, %s5220_s19  ;;  %v3441_v11 = vrot.slane %v4817_v31, 1  ;;  %v4818_v9 = vcombine.low %v2418_v56, %v6968_v14  ;;  %v4724_v14 = vcombine.low %v2323_v1, %v7149_v32  ;;  %v2371_v1 = vld [vmem:[#allocation2 + $0x78] sm:$0xe] }
 0x347   :  { %v2708_v36 = vrot.slane %v4724_v14, 1  ;;  %v2373_v14 = vld [vmem:[#allocation2 + $0x88] sm:$0xe] }
 0x349   :  { %3096 = vrot.lane.b32.xlu0 %v3072_v17, %s5229_s4  ;;  %3098 = vrot.lane.b32.xlu1 %v3073_v50, %s5229_s4  ;;  %v3442_v50 = vrot.slane %v4818_v9, 1 }
 0x34d   :  { %3100 = vrot.lane.b32.xlu0 %v3074_v22, %s5229_s4  ;;  %3102 = vrot.lane.b32.xlu1 %v3075_v18, %s5229_s4  ;;  %v2326_v22 = vld [vmem:[#allocation2 + $0x88] sm:$0xe]  ;;  %v7165_v18 = vld [vmem:[#allocation2 + $0x10] sm:$0xf] }
 0x34e   :  { %v4727_v9 = vcombine.low %v2326_v22, %v7163_v28  ;;  %v4698_v58 = vcombine.low %v7165_v18, %v7035_v34  ;;  %v4772_v34 = vcombine.low %v2371_v1, %v6990_v47 }
 0x34f   :  { %v7143_v40 = vpop.permute.xlu1 %2794  ;;  %v7145_v21 = vpop.permute.xlu0 %2792 }
 0x350   :  { %v2711_v15 = vrot.slane %v4727_v9, 1  ;;  %v2521_v48 = vshll.u32 %v4698_v58, 16  ;;  %v3076_v47 = vrot.slane %v4772_v34, 1  ;;  %v2519_v1 = vshrl.u32 %v4698_v58, 16 }
 0x351   :  { %3464 = vrot.lane.b32.xlu0 %v3440_v61, %s5228_s11  ;;  %3466 = vrot.lane.b32.xlu1 %v3441_v11, %s5228_s11  ;;  %v2709_v61 = vrot.slane %v4725_v54, 1  ;;  %v4726_v11 = vcombine.low %v2325_v6, %v7161_v53 }
 0x352   :  { %v2523_v12 = vrot.slane %v2521_v48, 1 }
 0x353   :  { %v7155_v2 = vpop.permute.xlu1 %2798  ;;  %v7157_v17 = vpop.permute.xlu0 %2796  ;;  %v2710_v22 = vrot.slane %v4726_v11, 1 }
 0x354   :  { %v2524_v58 = vor.u32 %v2523_v12, %v2519_v1  ;;  %v5202_v12 = vld [vmem:[%s8002_s2 + $0x10] sm:$0xff]  }
 0x355   :  { %3468 = vrot.lane.b32.xlu0 %v3442_v50, %s5228_s11  ;;  %3470 = vrot.lane.b32.xlu1 %v3443_v27, %s5228_s11  ;;  %v4697_v50 = vcombine.low %v7169_v19, %v7026_v38  ;;  %v7183_v27 = vld [vmem:[#allocation2 + $0x18] sm:$0xf] }
 0x356   :  { %v4699_v38 = vcombine.low %v7183_v27, %v7037_v5  ;;  %4915 = vmatprep.subr.bf16.mxu1 %v5202_v12 }
 0x357   :  { %v7171_v31 = vpop.permute.xlu1 %3162  ;;  %v7173_v56 = vpop.permute.xlu0 %3160  ;;  %v2512_v48 = vshrl.u32 %v4697_v50, 16  ;;  %4916 = vmatpush3.bf16.msra.mxu1 %v5202_v12  ;;  %v2894_v12 = vshrl.u32 %v6856_v43, 16 }
 0x358   :  { %v2526_v1 = vshrl.u32 %v4699_v38, 16 }
 0x359   :  { %2736 = vrot.lane.b32.xlu0 %v2708_v36, %s5220_s19  ;;  %2738 = vrot.lane.b32.xlu1 %v2709_v61, %s5220_s19  ;;  %v4774_v36 = vcombine.low %v2373_v14, %v7004_v25  ;;  %v2514_v61 = vshll.u32 %v4697_v50, 16  ;;  %v2528_v25 = vshll.u32 %v4699_v38, 16  ;;  %v3079_v14 = vrot.slane %v4775_v60, 1 }
 0x35a   :  { %v2889_v60 = vshll.u32 %v6851_v37, 16  ;;  %v2873_v50 = vshrl.u32 %v6839_v39, 16  ;;  %v2887_v38 = vshrl.u32 %v6851_v37, 16 }
 0x35b   :  { %v7185_v54 = vpop.permute.xlu1 %3166  ;;  %v7187_v6 = vpop.permute.xlu0 %3164  ;;  %v3078_v5 = vrot.slane %v4774_v36, 1 }
 0x35d   :  { %2740 = vrot.lane.b32.xlu0 %v2710_v22, %s5220_s19  ;;  %2742 = vrot.lane.b32.xlu1 %v2711_v15, %s5220_s19  ;;  %v2516_v22 = vrot.slane %v2514_v61, 1  ;;  %v2875_v15 = vshll.u32 %v6839_v39, 16  ;;  %v2896_v39 = vshll.u32 %v6856_v43, 16 }
 0x35f   :  { %v7197_v11 = vpop.permute.xlu1 %2802  ;;  %v7199_v9 = vpop.permute.xlu0 %2800 }
 0x361   :  { %3104 = vrot.lane.b32.xlu0 %v3076_v47, %s5229_s4  ;;  %3106 = vrot.lane.b32.xlu1 %v3077_v4, %s5229_s4  ;;  %v2517_v47 = vor.u32 %v2516_v22, %v2512_v48  ;;  %v2877_v4 = vrot.slane %v2875_v15, 1  ;;  %v7229_v22 = vld [vmem:[#allocation2 + $0x20] sm:$0xf] }
 0x363   :  { %v7207_v0 = vpop.permute.xlu1 %2806  ;;  %v7209_v34 = vpop.permute.xlu0 %2804  ;;  %v2878_v48 = vor.u32 %v2877_v4, %v2873_v50  ;;  %v4700_v4 = vcombine.low %v7229_v22, %v7061_v33  ;;  %v3245_v50 = vrot.slane %v3243_v45, 1  ;;  %v3241_v33 = vshrl.u32 %v6861_v30, 16  ;;  %v7266_v30 = vld [vmem:[#allocation2 + $0x38] sm:$0xf] }
 0x364   :  { %8113 = vst [vmem:[#allocation35_spill] sm:$0xff] %v7207_v0  ;;  %8114 = vst [vmem:[#allocation36_spill] sm:$0xff] %v7209_v34  ;;  %v2530_v0 = vrot.slane %v2528_v25, 1 }
 0x365   :  { %3108 = vrot.lane.b32.xlu0 %v3078_v5, %s5229_s4  ;;  %3110 = vrot.lane.b32.xlu1 %v3079_v14, %s5229_s4  ;;  %v2882_v5 = vshll.u32 %v6844_v51, 16  ;;  %v2891_v14 = vrot.slane %v2889_v60, 1  ;;  %v5203_v60 = vld [vmem:[%s8002_s2 + $0x18] sm:$0xff]   ;;  %v2898_v51 = vrot.slane %v2896_v39, 1  ;;  %v2535_v39 = vshll.u32 %v4700_v4, 16 }
 0x366   :  { %4917 = vmatprep.subr.bf16.mxu1 %v5203_v60 }
 0x367   :  { %v7217_v36 = vpop.permute.xlu1 %3170  ;;  %v7219_v61 = vpop.permute.xlu0 %3168  ;;  %4918 = vmatpush3.bf16.msra.mxu1 %v5203_v60  ;;  %v3255_v60 = vshrl.u32 %v6873_v41, 16 }
 0x368   :  { %8115 = vst [vmem:[#allocation37_spill] sm:$0xff] %v7217_v36  ;;  %8116 = vst [vmem:[#allocation38_spill] sm:$0xff] %v7219_v61 }
 0x369   :  { %2620 = vrot.lane.b32.xlu0 %v2524_v58, %s5218_s13  ;;  %2618 = vrot.lane.b32.xlu1 %v2517_v47, %s5218_s13  ;;  %v2531_v58 = vor.u32 %v2530_v0, %v2526_v1  ;;  %v2884_v47 = vrot.slane %v2882_v5, 1  ;;  %v7245_v0 = vld [vmem:[#allocation2 + $0x28] sm:$0xf]  ;;  %v2892_v5 = vor.u32 %v2891_v14, %v2887_v38  ;;  %v7247_v1 = vld [vmem:[#allocation2 + $0x30] sm:$0xf] }
 0x36a   :  { %v4701_v14 = vcombine.low %v7245_v0, %v7063_v26  ;;  %v4702_v45 = vcombine.low %v7247_v1, %v7071_v55  ;;  %v5204_v38 = vld [vmem:[%s8002_s2 + $0x20] ss:$0 sps:$4 sm:$0xff]   ;;  %s5230_s2 = smov 120  }
 0x36b   :  { %v7231_v15 = vpop.permute.xlu1 %2810  ;;  %v7233_v25 = vpop.permute.xlu0 %3172  ;;  %4938 = vmatprep.subr.msk.bf16.mxu1 %vm3857_vm3, %v5204_v38  ;;  %v3859_v55 = vsel %vm3857_vm3, %v5204_v38, 0 }
 0x36c   :  { %8117 = vst [vmem:[#allocation39_spill] sm:$0xff] %v7231_v15  ;;  %8118 = vst [vmem:[#allocation40_spill] sm:$0xff] %v7233_v25  ;;  %v3257_v15 = vshll.u32 %v6873_v41, 16  ;;  %v3250_v25 = vshll.u32 %v6866_v49, 16  ;;  %4920 = vmatpush3.bf16.msra.mxu1 %v3859_v55 }
 0x36d   :  { %2984 = vrot.lane.b32.xlu0 %v2878_v48, %s5224_s24  ;;  %2622 = vrot.lane.b32.xlu1 %v2531_v58, %s5218_s13  ;;  %v2885_v58 = vor.u32 %v2884_v47, %v2880_v24  ;;  %v3246_v47 = vor.u32 %v3245_v50, %v3241_v33  ;;  %v3248_v50 = vshrl.u32 %v6866_v49, 16  ;;  %v4703_v33 = vcombine.low %v7266_v30, %v7069_v7 }
 0x36e   :  { %v3252_v43 = vrot.slane %v3250_v25, 1  ;;  %v3262_v49 = vshrl.u32 %v6878_v16, 16 }
 0x36f   :  { %v7249_v37 = vpop.permute.xlu1 %2814  ;;  %v7251_v48 = vpop.permute.xlu0 %2808 }
 0x370   :  { %8119 = vst [vmem:[#allocation41_spill] sm:$0xff] %v7249_v37  ;;  %8120 = vst [vmem:[#allocation42_spill] sm:$0xff] %v7251_v48  ;;  %v3264_v37 = vshll.u32 %v6878_v16, 16  ;;  %v2533_v48 = vshrl.u32 %v4700_v4, 16  ;;  %v2540_v4 = vshrl.u32 %v4701_v14, 16  ;;  %v2917_v16 = vshll.u32 %v6812_v10, 16 }
 0x371   :  { %2988 = vrot.lane.b32.xlu0 %v2892_v5, %s5224_s24  ;;  %2986 = vrot.lane.b32.xlu1 %v2885_v58, %s5224_s24  ;;  %v2899_v5 = vor.u32 %v2898_v51, %v2894_v12  ;;  %v3259_v58 = vrot.slane %v3257_v15, 1  ;;  %v3253_v12 = vor.u32 %v3252_v43, %v3248_v50  ;;  %v2556_v43 = vshll.u32 %v4703_v33, 16 }
 0x372   :  { %v3266_v38 = vrot.slane %v3264_v37, 1  ;;  %v2547_v37 = vshrl.u32 %v4702_v45, 16 }
 0x373   :  { %v7268_v26 = vpop.permute.xlu1 %3178  ;;  %v7270_v24 = vpop.permute.xlu0 %2812  ;;  %v3260_v51 = vor.u32 %v3259_v58, %v3255_v60  ;;  %v2903_v58 = vshll.u32 %v6895_v46, 16 }
 0x374   :  { %8121 = vst [vmem:[#allocation43_spill] sm:$0xff] %v7268_v26  ;;  %8122 = vst [vmem:[#allocation44_spill] sm:$0xff] %v7270_v24  ;;  %v2537_v26 = vrot.slane %v2535_v39, 1  ;;  %v2549_v24 = vshll.u32 %v4702_v45, 16  ;;  %v3267_v55 = vor.u32 %v3266_v38, %v3262_v49  ;;  %v2901_v45 = vshrl.u32 %v6895_v46, 16 }
 0x375   :  { %3352 = vrot.lane.b32.xlu0 %v3246_v47, %s5227_s12  ;;  %2990 = vrot.lane.b32.xlu1 %v2899_v5, %s5224_s24  ;;  %v2542_v47 = vshll.u32 %v4701_v14, 16  ;;  %v2905_v50 = vrot.slane %v2903_v58, 1  ;;  %v2554_v38 = vshrl.u32 %v4703_v33, 16  ;;  %v2919_v14 = vrot.slane %v2917_v16, 1  ;;  %v7303_v49 = vld [vmem:[#allocation2 + $0x58] sm:$0xf] }
 0x376   :  { %v2538_v41 = vor.u32 %v2537_v26, %v2533_v48  ;;  %v2551_v7 = vrot.slane %v2549_v24, 1  ;;  %8129 = vst [vmem:[#allocation51_spill] sm:$0xff] %v7303_v49  ;;  %v2908_v46 = vshrl.u32 %v6900_v52, 16  ;;  %v4705_v33 = vcombine.low %v7303_v49, %v7103_v42 }
 0x377   :  { %v7279_v15 = vpop.permute.xlu1 %3182  ;;  %v7281_v25 = vpop.permute.xlu0 %3176  ;;  %v2922_v42 = vshrl.u32 %v6907_v23, 16 }
 0x378   :  { %8123 = vst [vmem:[#allocation45_spill] sm:$0xff] %v7279_v15  ;;  %8124 = vst [vmem:[#allocation46_spill] sm:$0xff] %v7281_v25  ;;  %v2544_v15 = vrot.slane %v2542_v47, 1  ;;  %v2552_v60 = vor.u32 %v2551_v7, %v2547_v37  ;;  %v3271_v47 = vshll.u32 %v6912_v63, 16  ;;  %v2924_v37 = vshll.u32 %v6907_v23, 16 }
 0x379   :  { %3356 = vrot.lane.b32.xlu0 %v3260_v51, %s5227_s12  ;;  %3354 = vrot.lane.b32.xlu1 %v3253_v12, %s5227_s12  ;;  %v2558_v51 = vrot.slane %v2556_v43, 1  ;;  %v2910_v12 = vshll.u32 %v6900_v52, 16  ;;  %v3285_v52 = vshll.u32 %v6922_v29, 16  ;;  %v3283_v23 = vshrl.u32 %v6922_v29, 16 }
 0x37a   :  { %v2545_v24 = vor.u32 %v2544_v15, %v2540_v4  ;;  %v2915_v4 = vshrl.u32 %v6812_v10, 16 }
 0x37b   :  { %v7286_v39 = vpop.permute.xlu1 %2818  ;;  %v7288_v5 = vpop.permute.xlu0 %3180  ;;  %v2559_v58 = vor.u32 %v2558_v51, %v2554_v38  ;;  %v2912_v43 = vrot.slane %v2910_v12, 1  ;;  %v3278_v38 = vshll.u32 %v6917_v35, 16 }
 0x37c   :  { %8125 = vst [vmem:[#allocation47_spill] sm:$0xff] %v7286_v39  ;;  %8126 = vst [vmem:[#allocation48_spill] sm:$0xff] %v7288_v5  ;;  %v2920_v16 = vor.u32 %v2919_v14, %v2915_v4  ;;  %v8136_v39 = vld [vmem:[#allocation17_spill] sm:$0xff]  ;;  %v7373_v5 = vld [vmem:[#allocation2 + $0x78] sm:$0xf] }
 0x37d   :  { %2624 = vrot.lane.b32.xlu0 %v2538_v41, %s5218_s13  ;;  %3358 = vrot.lane.b32.xlu1 %v3267_v55, %s5227_s12  ;;  %v7305_v41 = vld [vmem:[#allocation2 + $0x60] sm:$0xf]  ;;  %v2906_v55 = vor.u32 %v2905_v50, %v2901_v45  ;;  %v7320_v50 = vld [vmem:[#allocation2 + $0x68] sm:$0xf]  ;;  %v2913_v10 = vor.u32 %v2912_v43, %v2908_v46  ;;  %v2926_v45 = vrot.slane %v2924_v37, 1  ;;  %v3280_v4 = vrot.slane %v3278_v38, 1 }
 0x37e   :  { %8130 = vst [vmem:[#allocation52_spill] sm:$0xff] %v7305_v41  ;;  %8133 = vst [vmem:[#allocation55_spill] sm:$0xff] %v7320_v50  ;;  %v3287_v46 = vrot.slane %v3285_v52, 1  ;;  %v8135_v38 = vld [vmem:[#allocation16_spill] sm:$0xff] }
 0x37f   :  { %v7294_v48 = vpop.permute.xlu1 %2822  ;;  %v7296_v26 = vpop.permute.xlu0 %2816  ;;  %v2927_v37 = vor.u32 %v2926_v45, %v2922_v42  ;;  %v2931_v52 = vshll.u32 %v8135_v38, 16  ;;  %v2568_v42 = vshrl.u32 %v4705_v33, 16  ;;  %8142 = vst [vmem:[#allocation17_spill] sm:$0xff] %v7373_v5 }
 0x380   :  { %8127 = vst [vmem:[#allocation49_spill] sm:$0xff] %v7294_v48  ;;  %8128 = vst [vmem:[#allocation50_spill] sm:$0xff] %v7296_v26 }
 0x381   :  { %2628 = vrot.lane.b32.xlu0 %v2552_v60, %s5218_s13  ;;  %2626 = vrot.lane.b32.xlu1 %v2545_v24, %s5218_s13  ;;  %v4706_v60 = vcombine.low %v7305_v41, %v7109_v8  ;;  %v3273_v24 = vrot.slane %v3271_v47, 1  ;;  %v4707_v8 = vcombine.low %v7320_v50, %v7111_v44  ;;  %v2570_v47 = vshll.u32 %v4705_v33, 16 }
 0x382   :  { %v2929_v33 = vshrl.u32 %v8135_v38, 16 }
 0x383   :  { %v7307_v7 = vpop.permute.xlu1 %3186  ;;  %v7309_v15 = vpop.permute.xlu0 %2820  ;;  %v2584_v44 = vshll.u32 %v4707_v8, 16 }
 0x384   :  { %8131 = vst [vmem:[#allocation53_spill] sm:$0xff] %v7307_v7  ;;  %8132 = vst [vmem:[#allocation54_spill] sm:$0xff] %v7309_v15  ;;  %v2577_v7 = vshll.u32 %v4706_v60, 16  ;;  %v2933_v15 = vrot.slane %v2931_v52, 1 }
 0x385   :  { %2992 = vrot.lane.b32.xlu0 %v2906_v55, %s5224_s24  ;;  %2630 = vrot.lane.b32.xlu1 %v2559_v58, %s5218_s13  ;;  %v3269_v55 = vshrl.u32 %v6912_v63, 16  ;;  %v3276_v63 = vshrl.u32 %v6917_v35, 16 }
 0x386   :  { %v2579_v45 = vrot.slane %v2577_v7, 1 }
 0x387   :  { %v7322_v51 = vpop.permute.xlu1 %2714  ;;  %v7324_v12 = vpop.permute.xlu0 %3184  ;;  %v3274_v14 = vor.u32 %v3273_v24, %v3269_v55  ;;  %v3281_v55 = vor.u32 %v3280_v4, %v3276_v63  ;;  %v2938_v4 = vshll.u32 %v8136_v39, 16  ;;  %v2582_v63 = vshrl.u32 %v4707_v8, 16 }
 0x388   :  { %8134 = vst [vmem:[#allocation56_spill] sm:$0xff] %v7324_v12  ;;  %v3288_v12 = vor.u32 %v3287_v46, %v3283_v23  ;;  %v8137_v46 = vld [vmem:[#allocation18_spill] sm:$0xff] }
 0x389   :  { %2996 = vrot.lane.b32.xlu0 %v2920_v16, %s5224_s24  ;;  %2994 = vrot.lane.b32.xlu1 %v2913_v10, %s5224_s24  ;;  %v2572_v16 = vrot.slane %v2570_v47, 1  ;;  %v2945_v7 = vshll.u32 %v8137_v46, 16  ;;  %v2940_v52 = vrot.slane %v2938_v4, 1  ;;  %v2943_v38 = vshrl.u32 %v8137_v46, 16 }
 0x38b   :  { %v7334_v58 = vpop.permute.xlu1 %2718  ;;  %v7336_v43 = vpop.permute.xlu0 %2716  ;;  %v2573_v35 = vor.u32 %v2572_v16, %v2568_v42  ;;  %v7359_v16 = vld [vmem:[#allocation2 + $0x70] sm:$0xf]  ;;  %v2947_v42 = vrot.slane %v2945_v7, 1 }
 0x38c   :  { %8139 = vst [vmem:[#allocation16_spill] sm:$0xff] %v7359_v16 }
 0x38d   :  { %3360 = vrot.lane.b32.xlu0 %v3274_v14, %s5227_s12  ;;  %2998 = vrot.lane.b32.xlu1 %v2927_v37, %s5224_s24  ;;  %v2575_v14 = vshrl.u32 %v4706_v60, 16  ;;  %v2586_v37 = vrot.slane %v2584_v44, 1 }
 0x38f   :  { %v7342_v24 = vpop.permute.xlu1 %3082  ;;  %v7344_v10 = vpop.permute.xlu0 %3080  ;;  %v2580_v48 = vor.u32 %v2579_v45, %v2575_v14  ;;  %v2587_v60 = vor.u32 %v2586_v37, %v2582_v63  ;;  %v2934_v45 = vor.u32 %v2933_v15, %v2929_v33  ;;  %v8140_v14 = vld [vmem:[#allocation20_spill] sm:$0xff]  ;;  %v8141_v63 = vld [vmem:[#allocation21_spill] sm:$0xff]  ;;  %v7375_v15 = vld [vmem:[#allocation2 + $0x80] sm:$0xf] }
 0x390   :  { %v3299_v8 = vshll.u32 %v8140_v14, 16  ;;  %v3306_v26 = vshll.u32 %v8141_v63, 16  ;;  %8143 = vst [vmem:[#allocation18_spill] sm:$0xff] %v7375_v15 }
 0x391   :  { %3362 = vrot.lane.b32.xlu1 %v3281_v55, %s5227_s12  ;;  %3364 = vrot.lane.b32.xlu0 %v3288_v12, %s5227_s12  ;;  %v8138_v12 = vld [vmem:[#allocation19_spill] sm:$0xff] }
 0x392   :  { %v2952_v23 = vshll.u32 %v8138_v12, 16  ;;  %v2950_v46 = vshrl.u32 %v8138_v12, 16 }
 0x393   :  { %v7349_v29 = vpop.permute.xlu1 %3086  ;;  %v7351_v47 = vpop.permute.xlu0 %3084 }
 0x394   :  { %v2954_v37 = vrot.slane %v2952_v23, 1  ;;  %v4709_v23 = vcombine.low %v7373_v5, %v7151_v13 }
 0x395   :  { %2634 = vrot.lane.b32.xlu1 %v2573_v35, %s5218_s13  ;;  %2636 = vrot.lane.b32.xlu0 %v2580_v48, %s5218_s13  ;;  %v2936_v48 = vshrl.u32 %v8136_v39, 16  ;;  %v4708_v35 = vcombine.low %v7359_v16, %v7149_v32  ;;  %v8144_v39 = vld [vmem:[#allocation22_spill] sm:$0xff]  ;;  %v3297_v32 = vshrl.u32 %v8140_v14, 16  ;;  %v4710_v16 = vcombine.low %v7375_v15, %v7161_v53 }
 0x396   :  { %v3313_v25 = vshll.u32 %v8144_v39, 16  ;;  %v2955_v50 = vor.u32 %v2954_v37, %v2950_v46  ;;  %v3304_v14 = vshrl.u32 %v8141_v63, 16  ;;  %v3311_v13 = vshrl.u32 %v8144_v39, 16 }
 0x397   :  { %v7361_v44 = vpop.permute.xlu1 %3450  ;;  %v7363_v55 = vpop.permute.xlu0 %3448  ;;  %v2941_v33 = vor.u32 %v2940_v52, %v2936_v48  ;;  %v3308_v52 = vrot.slane %v3306_v26, 1  ;;  %v2591_v41 = vshll.u32 %v4708_v35, 16  ;;  %v2598_v37 = vshll.u32 %v4709_v23, 16 }
 0x398   :  { %v2605_v5 = vshll.u32 %v4710_v16, 16  ;;  %v2589_v63 = vshrl.u32 %v4708_v35, 16  ;;  %v7417_v35 = vld [vmem:[#allocation2 + $0x84] sm:$0x1] }
 0x399   :  { %2638 = vrot.lane.b32.xlu1 %v2587_v60, %s5218_s13  ;;  %3000 = vrot.lane.b32.xlu0 %v2934_v45, %s5224_s24  ;;  %v2948_v60 = vor.u32 %v2947_v42, %v2943_v38  ;;  %v3301_v45 = vrot.slane %v3299_v8, 1  ;;  %v7390_v42 = vld [vmem:[#allocation2 + $0x88] sm:$0xf]  ;;  %v3315_v38 = vrot.slane %v3313_v25, 1  ;;  %v3309_v26 = vor.u32 %v3308_v52, %v3304_v14 }
 0x39a   :  { %8145 = vst [vmem:[#allocation19_spill] sm:$0xff] %v7390_v42  ;;  %v4711_v53 = vcombine.low %v7390_v42, %v7163_v28  ;;  %v2593_v15 = vrot.slane %v2591_v41, 1  ;;  %v2600_v39 = vrot.slane %v2598_v37, 1  ;;  %v2607_v49 = vrot.slane %v2605_v5, 1 }
 0x39b   :  { %v7377_v4 = vpop.permute.xlu1 %3454  ;;  %v7379_v7 = vpop.permute.xlu0 %3452  ;;  %v3302_v12 = vor.u32 %v3301_v45, %v3297_v32  ;;  %v3316_v25 = vor.u32 %v3315_v38, %v3311_v13  ;;  %v8149_v38 = vld [vmem:[#allocation24_spill] sm:$0xff]  ;;  %v2596_v41 = vshrl.u32 %v4709_v23, 16  ;;  %v2603_v13 = vshrl.u32 %v4710_v16, 16 }
 0x39c   :  { %v2594_v42 = vor.u32 %v2593_v15, %v2589_v63  ;;  %v8152_v15 = vld [vmem:[#allocation25_spill] sm:$0xff]  ;;  %v2610_v23 = vshrl.u32 %v4711_v53, 16  ;;  %v2957_v16 = vshrl.u32 %v8149_v38, 16 }
 0x39d   :  { %3002 = vrot.lane.b32.xlu1 %v2941_v33, %s5224_s24  ;;  %3004 = vrot.lane.b32.xlu0 %v2948_v60, %s5224_s24  ;;  %v8146_v33 = vld [vmem:[#allocation23_spill] sm:$0xff]  ;;  %v2608_v36 = vor.u32 %v2607_v49, %v2603_v13  ;;  %v2966_v5 = vshll.u32 %v8152_v15, 16 }
 0x39e   :  { %v3320_v60 = vshll.u32 %v8146_v33, 16 }
 0x39f   :  { %v7392_v8 = vpop.permute.xlu1 %2722  ;;  %v7394_v48 = vpop.permute.xlu0 %2720  ;;  %v2968_v61 = vrot.slane %v2966_v5, 1 }
 0x3a0   :  { %v3322_v32 = vrot.slane %v3320_v60, 1  ;;  %v2959_v60 = vshll.u32 %v8149_v38, 16 }
 0x3a1   :  { %3006 = vrot.lane.b32.xlu1 %v2955_v50, %s5224_s24  ;;  %3368 = vrot.lane.b32.xlu0 %v3302_v12, %s5227_s12  ;;  %v3318_v50 = vshrl.u32 %v8146_v33, 16  ;;  %v2612_v12 = vshll.u32 %v4711_v53, 16 }
 0x3a3   :  { %v7403_v46 = vpop.permute.xlu1 %2726  ;;  %v7405_v45 = vpop.permute.xlu0 %2724  ;;  %v3323_v14 = vor.u32 %v3322_v32, %v3318_v50  ;;  %v2614_v33 = vrot.slane %v2612_v12, 1  ;;  %v2961_v32 = vrot.slane %v2959_v60, 1  ;;  %v8153_v50 = vld [vmem:[#allocation27_spill] sm:$0xff] }
 0x3a4   :  { %v2973_v63 = vshll.u32 %v8153_v50, 16  ;;  %v2971_v38 = vshrl.u32 %v8153_v50, 16 }
 0x3a5   :  { %3370 = vrot.lane.b32.xlu1 %v3309_v26, %s5227_s12  ;;  %3372 = vrot.lane.b32.xlu0 %v3316_v25, %s5227_s12  ;;  %v2601_v26 = vor.u32 %v2600_v39, %v2596_v41  ;;  %v8154_v39 = vld [vmem:[#allocation30_spill] sm:$0xff]  ;;  %v2390_v41 = vld [vmem:[#allocation2 + $0x90] sm:$0xf]  ;;  %v2962_v13 = vor.u32 %v2961_v32, %v2957_v16 }
 0x3a6   :  { %v4804_v12 = vcombine.low %v8154_v39, %v7417_v35  ;;  %v2975_v53 = vrot.slane %v2973_v63, 1  ;;  %v2407_v32 = vld [vmem:[#allocation2 + $0x9c] sm:$0x1] }
 0x3a7   :  { %v7410_v28 = vpop.permute.xlu1 %3090  ;;  %v7412_v52 = vpop.permute.xlu0 %3088 }
 0x3a8   :  { %8147 = vst [vmem:[#allocation20_spill] sm:$0xff] %v7410_v28  ;;  %8148 = vst [vmem:[#allocation21_spill] sm:$0xff] %v7412_v52  ;;  %v2391_v28 = vld [vmem:[#allocation2 + $0x98] sm:$0xf] }
 0x3a9   :  { %3374 = vrot.lane.b32.xlu1 %v3323_v14, %s5227_s12  ;;  %2640 = vrot.lane.b32.xlu0 %v2594_v42, %s5218_s13  ;;  %v7428_v42 = vld [vmem:[#allocation2 + $0x8c] sm:$0x1]  ;;  %v2615_v14 = vor.u32 %v2614_v33, %v2610_v23  ;;  %v8158_v33 = vld [vmem:[#allocation29_spill] sm:$0xff]  ;;  %v4807_v50 = vcombine.low %v2391_v28, %v2407_v32 }
 0x3aa   :  { %v4805_v23 = vcombine.low %v8158_v33, %v7428_v42 }
 0x3ab   :  { %v7419_v37 = vpop.permute.xlu1 %3094  ;;  %v7421_v25 = vpop.permute.xlu0 %3092 }
 0x3ac   :  { %8150 = vst [vmem:[#allocation22_spill] sm:$0xff] %v7419_v37  ;;  %8151 = vst [vmem:[#allocation23_spill] sm:$0xff] %v7421_v25  ;;  %v8157_v37 = vld [vmem:[#allocation28_spill] sm:$0xff]  ;;  %v7437_v25 = vld [vmem:[#allocation2 + $0x94] sm:$0x1] }
 0x3ad   :  { %2642 = vrot.lane.b32.xlu1 %v2601_v26, %s5218_s13  ;;  %2644 = vrot.lane.b32.xlu0 %v2608_v36, %s5218_s13  ;;  %v2980_v26 = vshll.u32 %v8157_v37, 16  ;;  %v2964_v36 = vshrl.u32 %v8152_v15, 16  ;;  %v4806_v39 = vcombine.low %v2390_v41, %v7437_v25  ;;  %v2978_v15 = vshrl.u32 %v8157_v37, 16 }
 0x3af   :  { %v7432_v49 = vpop.permute.xlu1 %3458  ;;  %v7434_v60 = vpop.permute.xlu0 %3456  ;;  %v2969_v16 = vor.u32 %v2968_v61, %v2964_v36  ;;  %v3341_v61 = vshll.u32 %v4806_v39, 16  ;;  %v3348_v36 = vshll.u32 %v4807_v50, 16 }
 0x3b0   :  { %8155 = vst [vmem:[#allocation24_spill] sm:$0xff] %v7432_v49  ;;  %8156 = vst [vmem:[#allocation25_spill] sm:$0xff] %v7434_v60  ;;  %v2976_v49 = vor.u32 %v2975_v53, %v2971_v38  ;;  %v2982_v60 = vrot.slane %v2980_v26, 1  ;;  %v4791_v53 = vcombine.low %v2391_v28, %v2391_v28  ;;  %v3325_v26 = vshrl.u32 %v4804_v12, 16 }
 0x3b1   :  { %2646 = vrot.lane.b32.xlu1 %v2615_v14, %s5218_s13  ;;  %3008 = vrot.lane.b32.xlu0 %v2962_v13, %s5224_s24  ;;  %v3327_v14 = vshll.u32 %v4804_v12, 16  ;;  %v4790_v13 = vcombine.low %v2390_v41, %v2390_v41 }
 0x3b3   :  { %v7446_v5 = vpop.permute.xlu1 %2730  ;;  %v7448_v63 = vpop.permute.xlu0 %3460  ;;  %v3329_v34 = vrot.slane %v3327_v14, 1  ;;  %v3339_v14 = vshrl.u32 %v4806_v39, 16 }
 0x3b4   :  { %8159 = vst [vmem:[#allocation27_spill] sm:$0xff] %v7446_v5  ;;  %8160 = vst [vmem:[#allocation30_spill] sm:$0xff] %v7448_v63  ;;  %v2983_v5 = vor.u32 %v2982_v60, %v2978_v15  ;;  %v3334_v63 = vshll.u32 %v4805_v23, 16  ;;  %v3332_v60 = vshrl.u32 %v4805_v23, 16  ;;  %v3350_v15 = vrot.slane %v3348_v36, 1 }
 0x3b5   :  { %3010 = vrot.lane.b32.xlu1 %v2969_v16, %s5224_s24  ;;  %3012 = vrot.lane.b32.xlu0 %v2976_v49, %s5224_s24  ;;  %v3330_v41 = vor.u32 %v3329_v34, %v3325_v26  ;;  %v3343_v16 = vrot.slane %v3341_v61, 1  ;;  %v2421_v34 = vld [vmem:[#allocation2 + $0x88] sm:$0xe] }
 0x3b6   :  { %v3336_v38 = vrot.slane %v3334_v63, 1  ;;  %v2422_v63 = vld [vmem:[#allocation2 + $0x90] sm:$0xe]  ;;  %v4821_v26 = vcombine.low %v2421_v34, %v7428_v42  ;;  %v8167_v34 = vld [vmem:[#allocation7_spill] sm:$0xff] }
 0x3b7   :  { %v7453_v33 = vpop.permute.xlu1 %2734  ;;  %v7455_v52 = vpop.permute.xlu0 %2732  ;;  %v4822_v36 = vcombine.low %v2422_v63, %v7437_v25  ;;  %v8164_v25 = vld [vmem:[#allocation4_spill] sm:$0xff] }
 0x3b8   :  { %8161 = vst [vmem:[#allocation28_spill] sm:$0xff] %v7453_v33  ;;  %v2420_v33 = vld [vmem:[#allocation2 + $0x80] sm:$0xe]  ;;  %v3337_v12 = vor.u32 %v3336_v38, %v3332_v60  ;;  %v8168_v63 = vld [vmem:[#allocation8_spill] sm:$0xff] }
 0x3b9   :  { %3014 = vrot.lane.b32.xlu1 %v2983_v5, %s5224_s24  ;;  %3188 = vrot.lane.b32.xlu0 %v4790_v13, %s5226_s0  ;;  %v3346_v5 = vshrl.u32 %v4807_v50, 16  ;;  %v3446_v38 = vrot.slane %v4822_v36, 1 }
 0x3bb   :  { %v7459_v49 = vpop.permute.xlu1 %3098  ;;  %v7461_v37 = vpop.permute.xlu0 %3096  ;;  %v3351_v61 = vor.u32 %v3350_v15, %v3346_v5  ;;  %v8166_v5 = vld [vmem:[#allocation6_spill] sm:$0xff] }
 0x3bc   :  { %8162 = vst [vmem:[#allocation29_spill] sm:$0xff] %v7459_v49  ;;  %8163 = vst [vmem:[#allocation57_spill] sm:$0xff] %v7461_v37  ;;  %v3344_v49 = vor.u32 %v3343_v16, %v3339_v14  ;;  %v4820_v37 = vcombine.low %v2420_v33, %v7417_v35  ;;  %v8165_v14 = vld [vmem:[#allocation5_spill] sm:$0xff] }
 0x3bd   :  { %3190 = vrot.lane.b32.xlu1 %v4791_v53, %s5226_s0  ;;  %3376 = vrot.lane.b32.xlu0 %v3330_v41, %s5227_s12  ;;  %v2423_v53 = vld [vmem:[#allocation2 + $0x98] sm:$0xe] }
 0x3be   :  { %v3444_v50 = vrot.slane %v4820_v37, 1  ;;  %v4823_v35 = vcombine.low %v2423_v53, %v2407_v32 }
 0x3bf   :  { %v7465_v13 = vpop.permute.xlu1 %3102  ;;  %v7467_v28 = vpop.permute.xlu0 %3100 }
 0x3c0   :  { %v3447_v37 = vrot.slane %v4823_v35, 1 }
 0x3c1   :  { %3378 = vrot.lane.b32.xlu1 %v3337_v12, %s5227_s12  ;;  %3380 = vrot.lane.b32.xlu0 %v3344_v49, %s5227_s12  ;;  %v3445_v49 = vrot.slane %v4821_v26, 1  ;;  %v8170_v26 = vld [vmem:[#allocation10_spill] sm:$0xff] }
 0x3c3   :  { %v7472_v23 = vpop.permute.xlu1 %3466  ;;  %v7474_v39 = vpop.permute.xlu0 %3464 }
 0x3c5   :  { %3382 = vrot.lane.b32.xlu1 %v3351_v61, %s5227_s12  ;;  %3472 = vrot.lane.b32.xlu0 %v3444_v50, %s5228_s11  ;;  %v8169_v50 = vld [vmem:[#allocation9_spill] sm:$0xff] }
 0x3c7   :  { %v7480_v33 = vpop.permute.xlu1 %3470  ;;  %v7482_v41 = vpop.permute.xlu0 %3468 }
 0x3c9   :  { %3474 = vrot.lane.b32.xlu1 %v3445_v49, %s5228_s11  ;;  %3476 = vrot.lane.b32.xlu0 %v3446_v38, %s5228_s11  ;;  %v8171_v49 = vld [vmem:[#allocation11_spill] sm:$0xff]  ;;  %v8172_v38 = vld [vmem:[#allocation12_spill] sm:$0xff] }
 0x3cb   :  { %v7486_v16 = vpop.permute.xlu1 %2738  ;;  %v7488_v42 = vpop.permute.xlu0 %2736 }
 0x3cd   :  { %3478 = vrot.lane.b32.xlu1 %v3447_v37, %s5228_s11  ;;  %4280 = vrot.lane.b32.xlu0 %v8164_v25, %s5230_s2  ;;  %v5215_v37 = vld [vmem:[#allocation2] sm:$0xf] }
 0x3ce   :  { %v3482_v25 = vsel %vm1239_vm2, %v5215_v37, %v7101_v62 }
 0x3cf   :  { %v7493_v32 = vpop.permute.xlu1 %2742  ;;  %v7495_v60 = vpop.permute.xlu0 %2740 }
 0x3d1   :  { %4282 = vrot.lane.b32.xlu1 %v8165_v14, %s5230_s2  ;;  %4284 = vrot.lane.b32.xlu0 %v8166_v5, %s5230_s2 }
 0x3d3   :  { %v7501_v15 = vpop.permute.xlu1 %3106  ;;  %v7503_v12 = vpop.permute.xlu0 %3104 }
 0x3d5   :  { %4286 = vrot.lane.b32.xlu1 %v8167_v34, %s5230_s2  ;;  %4288 = vrot.lane.b32.xlu0 %v8168_v63, %s5230_s2 }
 0x3d7   :  { %v7509_v61 = vpop.permute.xlu1 %3110  ;;  %v7511_v53 = vpop.permute.xlu0 %3108 }
 0x3d9   :  { %4290 = vrot.lane.b32.xlu1 %v8169_v50, %s5230_s2  ;;  %4292 = vrot.lane.b32.xlu0 %v8170_v26, %s5230_s2  ;;  %v3529_v50 = vsel %vm1305_vm4, %v3482_v25, %v7117_v57 }
 0x3da   :  { %v3561_v62 = vsel %vm1371_vm6, %v3529_v50, %v7145_v21  ;;  %v8175_v21 = vld [vmem:[#allocation26_spill] sm:$0xff] }
 0x3db   :  { %v2619_v36 = vpop.permute.xlu1 %2618  ;;  %v2621_v35 = vpop.permute.xlu0 %2620 }
 0x3dc   :  { %v3485_v14 = vsel %vm1239_vm2, %v7169_v19, %v2619_v36  ;;  %v3488_v63 = vsel %vm1239_vm2, %v7165_v18, %v2621_v35 }
 0x3dd   :  { %4294 = vrot.lane.b32.xlu1 %v8171_v49, %s5230_s2  ;;  %4296 = vrot.lane.b32.xlu0 %v8172_v38, %s5230_s2  ;;  %v3531_v26 = vsel %vm1305_vm4, %v3485_v14, %v7322_v51  ;;  %v8173_v49 = vld [vmem:[#allocation13_spill] sm:$0xff]  ;;  %v8174_v38 = vld [vmem:[#allocation14_spill] sm:$0xff]  ;;  %v3533_v18 = vsel %vm1305_vm4, %v3488_v63, %v7336_v43  ;;  %v8176_v63 = vld [vmem:[#allocation3_spill] sm:$0xff] }
 0x3de   :  { %v3563_v35 = vsel %vm1371_vm6, %v3531_v26, %v7143_v40  ;;  %v3565_v43 = vsel %vm1371_vm6, %v3533_v18, %v7157_v17 }
 0x3df   :  { %v2623_v5 = vpop.permute.xlu1 %2622  ;;  %v2985_v34 = vpop.permute.xlu0 %2984 }
 0x3e0   :  { %v3491_v19 = vsel %vm1239_vm2, %v7183_v27, %v2623_v5  ;;  %v3593_v57 = vsel %vm1437_vm8, %v3561_v62, %v2985_v34 }
 0x3e1   :  { %4298 = vrot.lane.b32.xlu1 %v8173_v49, %s5230_s2  ;;  %4300 = vrot.lane.b32.xlu0 %v8174_v38, %s5230_s2  ;;  %v3535_v37 = vsel %vm1305_vm4, %v3491_v19, %v7334_v58  ;;  %v3626_v27 = vsel %vm3624_vm5, %v3593_v57, %v7344_v10 }
 0x3e2   :  { %v3567_v34 = vsel %vm1371_vm6, %v3535_v37, %v7155_v2  ;;  %v3659_v10 = vsel %vm3657_vm7, %v3626_v27, %v7173_v56 }
 0x3e3   :  { %v2987_v36 = vpop.permute.xlu1 %2986  ;;  %v2989_v51 = vpop.permute.xlu0 %2988 }
 0x3e4   :  { %v3595_v25 = vsel %vm1437_vm8, %v3563_v35, %v2987_v36  ;;  %v3597_v40 = vsel %vm1437_vm8, %v3565_v43, %v2989_v51 }
 0x3e5   :  { %4302 = vrot.lane.b32.xlu1 %v8175_v21, %s5230_s2  ;;  %4304 = vrot.lane.b32.xlu0 %v7081_v59, %s5230_s2  ;;  %v3628_v5 = vsel %vm3624_vm5, %v3595_v25, %v7342_v24  ;;  %v3630_v17 = vsel %vm3624_vm5, %v3597_v40, %v7351_v47 }
 0x3e6   :  { %v3661_v2 = vsel %vm3657_vm7, %v3628_v5, %v7171_v31  ;;  %v3663_v38 = vsel %vm3657_vm7, %v3630_v17, %v7187_v6  ;;  %v8179_v5 = vld [vmem:[#allocation35_spill] sm:$0xff] }
 0x3e7   :  { %v2991_v14 = vpop.permute.xlu1 %2990  ;;  %v3353_v58 = vpop.permute.xlu0 %3352  ;;  %v8181_v17 = vld [vmem:[#allocation23_spill] sm:$0xff] }
 0x3e8   :  { %v3599_v59 = vsel %vm1437_vm8, %v3567_v34, %v2991_v14  ;;  %v3692_v50 = vsel %vm3690_vm9, %v3659_v10, %v3353_v58  ;;  %v8178_v58 = vld [vmem:[#allocation21_spill] sm:$0xff] }
 0x3e9   :  { %4306 = vrot.lane.b32.xlu1 %v8176_v63, %s5230_s2  ;;  %4308 = vrot.lane.b32.xlu0 %v7087_v20, %s5230_s2  ;;  %v3632_v56 = vsel %vm3624_vm5, %v3599_v59, %v7349_v29  ;;  %v3725_v20 = vsel %vm3723_vm10, %v3692_v50, %v7363_v55  ;;  %v8180_v63 = vld [vmem:[#allocation20_spill] sm:$0xff] }
 0x3ea   :  { %v3665_v29 = vsel %vm3657_vm7, %v3632_v56, %v7185_v54 }
 0x3eb   :  { %v3355_v24 = vpop.permute.xlu1 %3354  ;;  %v3357_v26 = vpop.permute.xlu0 %3356 }
 0x3ec   :  { %v3694_v49 = vsel %vm3690_vm9, %v3661_v2, %v3355_v24  ;;  %v3696_v31 = vsel %vm3690_vm9, %v3663_v38, %v3357_v26  ;;  %v8182_v2 = vld [vmem:[#allocation22_spill] sm:$0xff] }
 0x3ed   :  { %4310 = vrot.lane.b32.xlu1 %v7091_v3, %s5230_s2  ;;  %v3727_v47 = vsel %vm3723_vm10, %v3694_v49, %v7361_v44  ;;  %v3729_v3 = vsel %vm3723_vm10, %v3696_v31, %v7379_v7  ;;  %v8183_v26 = vld [vmem:[#allocation38_spill] sm:$0xff]  ;;  %v8184_v49 = vld [vmem:[#allocation15_spill] sm:$0xff] }
 0x3ee   :  { %v4824_v62 = vcombine.low %v3725_v20, %v3727_v47  ;;  %v8185_v47 = vld [vmem:[#allocation37_spill] sm:$0xff] }
 0x3ef   :  { %v3359_v19 = vpop.permute.xlu1 %3358  ;;  %v2625_v18 = vpop.permute.xlu0 %2624 }
 0x3f0   :  { %v3698_v6 = vsel %vm3690_vm9, %v3665_v29, %v3359_v19  ;;  %4921 = vmatprep.mubr.msk.bf16.mxu1 %vm3832_vm11, %v4824_v62  ;;  %v3494_v51 = vsel %vm1239_vm2, %v7229_v22, %v2625_v18  ;;  %v8186_v29 = vld [vmem:[#allocation40_spill] sm:$0xff]  ;;  %v8187_v18 = vld [vmem:[#allocation31_spill] sm:$0xff] }
 0x3f1   :  { %v3731_v55 = vsel %vm3723_vm10, %v3698_v6, %v7377_v4  ;;  %v3537_v7 = vsel %vm1305_vm4, %v3494_v51, %v7394_v48  ;;  %v8189_v51 = vld [vmem:[#allocation25_spill] sm:$0xff] }
 0x3f2   :  { %v4825_v44 = vcombine.low %v3729_v3, %v3731_v55 }
 0x3f3   :  { %v2627_v57 = vpop.permute.xlu1 %2626  ;;  %v2629_v36 = vpop.permute.xlu0 %2628 }
 0x3f4   :  { %4922 = vmatmul.mubr.msk.bf16.vlgmr.msra.gmra.mrb[0].mxu1 %vm3832_vm11, %v4825_v44  ;;  %v3497_v54 = vsel %vm1239_vm2, %v7245_v0, %v2627_v57  ;;  %v3500_v35 = vsel %vm1239_vm2, %v7247_v1, %v2629_v36  ;;  %v3569_v0 = vsel %vm1371_vm6, %v3537_v7, %v7199_v9  ;;  %v8188_v44 = vld [vmem:[#allocation33_spill] sm:$0xff] }
 0x3f5   :  { %v3539_v4 = vsel %vm1305_vm4, %v3497_v54, %v7392_v8  ;;  %v3541_v21 = vsel %vm1305_vm4, %v3500_v35, %v7405_v45  ;;  %v8177_v8 = vld [vmem:[#allocation36_spill] sm:$0xff] }
 0x3f6   :  { %v3571_v40 = vsel %vm1371_vm6, %v3539_v4, %v7197_v11  ;;  %v3573_v14 = vsel %vm1371_vm6, %v3541_v21, %v8177_v8  ;;  %v8190_v35 = vld [vmem:[#allocation24_spill] sm:$0xff] }
 0x3f7   :  { %v2631_v37 = vpop.permute.xlu1 %2630  ;;  %v2993_v25 = vpop.permute.xlu0 %2992 }
 0x3f8   :  { %v3503_v22 = vsel %vm1239_vm2, %v7266_v30, %v2631_v37  ;;  %v3601_v27 = vsel %vm1437_vm8, %v3569_v0, %v2993_v25  ;;  %v8191_v37 = vld [vmem:[#allocation30_spill] sm:$0xff] }
 0x3f9   :  { %v3543_v48 = vsel %vm1305_vm4, %v3503_v22, %v7403_v46  ;;  %v3634_v9 = vsel %vm3624_vm5, %v3601_v27, %v8178_v58  ;;  %v5216_v27 = vld [vmem:[#allocation2 + $0x50] sm:$0xf]  ;;  %v8195_v58 = vld [vmem:[#allocation34_spill] sm:$0xff] }
 0x3fa   :  { %v3575_v34 = vsel %vm1371_vm6, %v3543_v48, %v8179_v5  ;;  %v3667_v56 = vsel %vm3657_vm7, %v3634_v9, %v8183_v26  ;;  %v8193_v48 = vld [vmem:[#allocation51_spill] sm:$0xff] }
 0x3fb   :  { %v2995_v1 = vpop.permute.xlu1 %2994  ;;  %v2997_v43 = vpop.permute.xlu0 %2996  ;;  %v8196_v5 = vld [vmem:[#allocation27_spill] sm:$0xff] }
 0x3fc   :  { %v3603_v45 = vsel %vm1437_vm8, %v3571_v40, %v2995_v1  ;;  %v3605_v30 = vsel %vm1437_vm8, %v3573_v14, %v2997_v43  ;;  %v8192_v1 = vld [vmem:[#allocation32_spill] sm:$0xff] }
 0x3fd   :  { %v3636_v46 = vsel %vm3624_vm5, %v3603_v45, %v8180_v63  ;;  %v3638_v11 = vsel %vm3624_vm5, %v3605_v30, %v8181_v17  ;;  %v3506_v43 = vsel %vm1239_vm2, %v5216_v27, %v8192_v1  ;;  %v8194_v45 = vld [vmem:[#allocation52_spill] sm:$0xff]  ;;  %v8198_v63 = vld [vmem:[#allocation55_spill] sm:$0xff] }
 0x3fe   :  { %v3669_v31 = vsel %vm3657_vm7, %v3636_v46, %v8185_v47  ;;  %v3671_v19 = vsel %vm3657_vm7, %v3638_v11, %v8186_v29  ;;  %v3545_v9 = vsel %vm1305_vm4, %v3506_v43, %v8195_v58  ;;  %v8207_v27 = vld [vmem:[#allocation48_spill] sm:$0xff] }
 0x3ff   :  { %v2999_v59 = vpop.permute.xlu1 %2998  ;;  %v3361_v10 = vpop.permute.xlu0 %3360 }
 0x400   :  { %v3607_v50 = vsel %vm1437_vm8, %v3575_v34, %v2999_v59  ;;  %v3700_v20 = vsel %vm3690_vm9, %v3667_v56, %v3361_v10  ;;  %v8197_v59 = vld [vmem:[#allocation42_spill] sm:$0xff]  ;;  %v8200_v56 = vld [vmem:[#allocation28_spill] sm:$0xff] }
 0x401   :  { %v3640_v24 = vsel %vm3624_vm5, %v3607_v50, %v8182_v2  ;;  %v3733_v54 = vsel %vm3723_vm10, %v3700_v20, %v8189_v51  ;;  %v3577_v10 = vsel %vm1371_vm6, %v3545_v9, %v8197_v59  ;;  %v8201_v20 = vld [vmem:[#allocation57_spill] sm:$0xff] }
 0x402   :  { %v3673_v38 = vsel %vm3657_vm7, %v3640_v24, %v8184_v49  ;;  %v8199_v24 = vld [vmem:[#allocation39_spill] sm:$0xff] }
 0x403   :  { %v3363_v62 = vpop.permute.xlu1 %3362  ;;  %v3706_v6 = vsel %vm3690_vm9, %v3673_v38, %v8187_v18  ;;  %v3365_v3 = vpop.permute.xlu0 %3364  ;;  %v8203_v18 = vld [vmem:[#allocation29_spill] sm:$0xff] }
 0x404   :  { %v3702_v55 = vsel %vm3690_vm9, %v3669_v31, %v3363_v62  ;;  %v3739_v57 = vsel %vm3723_vm10, %v3706_v6, %v8188_v44  ;;  %v3704_v36 = vsel %vm3690_vm9, %v3671_v19, %v3365_v3  ;;  %v8202_v31 = vld [vmem:[#allocation44_spill] sm:$0xff]  ;;  %v8204_v3 = vld [vmem:[#allocation41_spill] sm:$0xff] }
 0x405   :  { %v3735_v7 = vsel %vm3723_vm10, %v3702_v55, %v8190_v35  ;;  %v3737_v25 = vsel %vm3723_vm10, %v3704_v36, %v8191_v37  ;;  %v8206_v35 = vld [vmem:[#allocation43_spill] sm:$0xff] }
 0x406   :  { %v4826_v4 = vcombine.low %v3733_v54, %v3735_v7  ;;  %v4827_v21 = vcombine.low %v3737_v25, %v3739_v57  ;;  %v8205_v57 = vld [vmem:[#allocation46_spill] sm:$0xff] }
 0x407   :  { %v2635_v22 = vpop.permute.xlu1 %2634  ;;  %v2637_v0 = vpop.permute.xlu0 %2636 }
 0x408   :  { %4925 = vmatprep.mubr.msk.bf16.mxu1 %vm3832_vm11, %v4826_v4  ;;  %v3509_v40 = vsel %vm1239_vm2, %v8193_v48, %v2635_v22  ;;  %v3512_v30 = vsel %vm1239_vm2, %v8194_v45, %v2637_v0  ;;  %v8208_v48 = vld [vmem:[#allocation45_spill] sm:$0xff] }
 0x409   :  { %4926 = vmatmul.mubr.msk.bf16.gmra.mrb[4].mxu1 %vm3832_vm11, %v4827_v21  ;;  %v3547_v34 = vsel %vm1305_vm4, %v3509_v40, %v8196_v5  ;;  %v3549_v17 = vsel %vm1305_vm4, %v3512_v30, %v7455_v52 }
 0x40a   :  { %v3579_v26 = vsel %vm1371_vm6, %v3547_v34, %v8199_v24  ;;  %v3581_v62 = vsel %vm1371_vm6, %v3549_v17, %v8202_v31  ;;  %v8214_v31 = vld [vmem:[#allocation47_spill] sm:$0xff] }
 0x40b   :  { %v2639_v8 = vpop.permute.xlu1 %2638  ;;  %v3001_v14 = vpop.permute.xlu0 %3000 }
 0x40c   :  { %v3515_v46 = vsel %vm1239_vm2, %v8198_v63, %v2639_v8  ;;  %v3609_v11 = vsel %vm1437_vm8, %v3577_v10, %v3001_v14 }
 0x40d   :  { %v3551_v49 = vsel %vm1305_vm4, %v3515_v46, %v8200_v56  ;;  %v3642_v47 = vsel %vm3624_vm5, %v3609_v11, %v8201_v20  ;;  %v8209_v46 = vld [vmem:[#allocation16_spill] sm:$0xff]  ;;  %v8210_v11 = vld [vmem:[#allocation17_spill] sm:$0xff]  ;;  %v8213_v20 = vld [vmem:[#allocation50_spill] sm:$0xff] }
 0x40e   :  { %v3583_v55 = vsel %vm1371_vm6, %v3551_v49, %v8204_v3  ;;  %v3675_v36 = vsel %vm3657_vm7, %v3642_v47, %v8205_v57  ;;  %v8212_v49 = vld [vmem:[#allocation19_spill] sm:$0xff]  ;;  %v8215_v57 = vld [vmem:[#allocation54_spill] sm:$0xff] }
 0x40f   :  { %v3003_v50 = vpop.permute.xlu1 %3002  ;;  %v3005_v2 = vpop.permute.xlu0 %3004 }
 0x410   :  { %v3611_v38 = vsel %vm1437_vm8, %v3579_v26, %v3003_v50  ;;  %v3613_v52 = vsel %vm1437_vm8, %v3581_v62, %v3005_v2  ;;  %v8211_v26 = vld [vmem:[#allocation18_spill] sm:$0xff] }
 0x411   :  { %v3644_v6 = vsel %vm3624_vm5, %v3611_v38, %v8203_v18  ;;  %v3646_v51 = vsel %vm3624_vm5, %v3613_v52, %v7467_v28 }
 0x412   :  { %v3677_v7 = vsel %vm3657_vm7, %v3644_v6, %v8206_v35  ;;  %v3679_v28 = vsel %vm3657_vm7, %v3646_v51, %v8207_v27  ;;  %v8216_v51 = vld [vmem:[#allocation49_spill] sm:$0xff] }
 0x413   :  { %v3007_v29 = vpop.permute.xlu1 %3006  ;;  %v3369_v19 = vpop.permute.xlu0 %3368 }
 0x414   :  { %v3615_v44 = vsel %vm1437_vm8, %v3583_v55, %v3007_v29  ;;  %v3708_v54 = vsel %vm3690_vm9, %v3675_v36, %v3369_v19 }
 0x415   :  { %v3648_v4 = vsel %vm3624_vm5, %v3615_v44, %v7465_v13  ;;  %v3741_v22 = vsel %vm3723_vm10, %v3708_v54, %v7474_v39 }
 0x416   :  { %v3681_v40 = vsel %vm3657_vm7, %v3648_v4, %v8208_v48 }
 0x417   :  { %v3371_v37 = vpop.permute.xlu1 %3370  ;;  %v3373_v25 = vpop.permute.xlu0 %3372 }
 0x418   :  { %v3710_v21 = vsel %vm3690_vm9, %v3677_v7, %v3371_v37  ;;  %v3712_v43 = vsel %vm3690_vm9, %v3679_v28, %v3373_v25  ;;  %v8217_v7 = vld [vmem:[#allocation56_spill] sm:$0xff]  ;;  %v8218_v37 = vld [vmem:[#allocation53_spill] sm:$0xff] }
 0x419   :  { %v3743_v0 = vsel %vm3723_vm10, %v3710_v21, %v7472_v23  ;;  %v3745_v39 = vsel %vm3723_vm10, %v3712_v43, %v7482_v41 }
 0x41a   :  { %v4828_v1 = vcombine.low %v3741_v22, %v3743_v0 }
 0x41b   :  { %v3375_v8 = vpop.permute.xlu1 %3374  ;;  %v2641_v14 = vpop.permute.xlu0 %2640 }
 0x41c   :  { %v3714_v13 = vsel %vm3690_vm9, %v3681_v40, %v3375_v8  ;;  %4929 = vmatprep.mubr.msk.bf16.mxu1 %vm3832_vm11, %v4828_v1  ;;  %v3518_v17 = vsel %vm1239_vm2, %v8209_v46, %v2641_v14 }
 0x41d   :  { %v3747_v23 = vsel %vm3723_vm10, %v3714_v13, %v7480_v33  ;;  %v3553_v33 = vsel %vm1305_vm4, %v3518_v17, %v7488_v42 }
 0x41e   :  { %v4829_v45 = vcombine.low %v3745_v39, %v3747_v23  ;;  %v3585_v47 = vsel %vm1371_vm6, %v3553_v33, %v8213_v20 }
 0x41f   :  { %v2643_v30 = vpop.permute.xlu1 %2642  ;;  %v2645_v58 = vpop.permute.xlu0 %2644 }
 0x420   :  { %4930 = vmatmul.mubr.msk.bf16.gmra.mrb[8].mxu1 %vm3832_vm11, %v4829_v45  ;;  %v3521_v41 = vsel %vm1239_vm2, %v8210_v11, %v2643_v30  ;;  %v3524_v56 = vsel %vm1239_vm2, %v8211_v26, %v2645_v58 }
 0x421   :  { %v3555_v24 = vsel %vm1305_vm4, %v3521_v41, %v7486_v16  ;;  %v3557_v16 = vsel %vm1305_vm4, %v3524_v56, %v7495_v60 }
 0x422   :  { %v3587_v62 = vsel %vm1371_vm6, %v3555_v24, %v8214_v31  ;;  %v3589_v36 = vsel %vm1371_vm6, %v3557_v16, %v8215_v57 }
 0x423   :  { %v2647_v9 = vpop.permute.xlu1 %2646  ;;  %v3009_v5 = vpop.permute.xlu0 %3008 }
 0x424   :  { %v3527_v38 = vsel %vm1239_vm2, %v8212_v49, %v2647_v9  ;;  %v3617_v19 = vsel %vm1437_vm8, %v3585_v47, %v3009_v5 }
 0x425   :  { %v3559_v18 = vsel %vm1305_vm4, %v3527_v38, %v7493_v32  ;;  %v3650_v6 = vsel %vm3624_vm5, %v3617_v19, %v7503_v12 }
 0x426   :  { %v3591_v54 = vsel %vm1371_vm6, %v3559_v18, %v8216_v51  ;;  %v3683_v32 = vsel %vm3657_vm7, %v3650_v6, %v8217_v7 }
 0x427   :  { %v3011_v34 = vpop.permute.xlu1 %3010  ;;  %v3013_v59 = vpop.permute.xlu0 %3012 }
 0x428   :  { %v3619_v42 = vsel %vm1437_vm8, %v3587_v62, %v3011_v34  ;;  %v3621_v35 = vsel %vm1437_vm8, %v3589_v36, %v3013_v59 }
 0x429   :  { %v3652_v3 = vsel %vm3624_vm5, %v3619_v42, %v7501_v15  ;;  %v3654_v0 = vsel %vm3624_vm5, %v3621_v35, %v7511_v53 }
 0x42a   :  { %v3685_v12 = vsel %vm3657_vm7, %v3652_v3, %v8218_v37 }
 0x42b   :  { %v3015_v10 = vpop.permute.xlu1 %3014  ;;  %v3189_v63 = vpop.permute.xlu0 %3188 }
 0x42c   :  { %v3623_v60 = vsel %vm1437_vm8, %v3591_v54, %v3015_v10  ;;  %v3687_v43 = vsel %vm3657_vm7, %v3654_v0, %v3189_v63 }
 0x42d   :  { %v3656_v27 = vsel %vm3624_vm5, %v3623_v60, %v7509_v61 }
 0x42f   :  { %v3191_v50 = vpop.permute.xlu1 %3190  ;;  %v3377_v2 = vpop.permute.xlu0 %3376 }
 0x430   :  { %v3716_v15 = vsel %vm3690_vm9, %v3683_v32, %v3377_v2  ;;  %v3689_v48 = vsel %vm3657_vm7, %v3656_v27, %v3191_v50 }
 0x433   :  { %v3379_v52 = vpop.permute.xlu1 %3378  ;;  %v3381_v29 = vpop.permute.xlu0 %3380 }
 0x434   :  { %v3718_v25 = vsel %vm3690_vm9, %v3685_v12, %v3379_v52  ;;  %v3720_v40 = vsel %vm3690_vm9, %v3687_v43, %v3381_v29 }
 0x437   :  { %v3383_v55 = vpop.permute.xlu1 %3382  ;;  %v3473_v44 = vpop.permute.xlu0 %3472 }
 0x438   :  { %v3749_v21 = vsel %vm3723_vm10, %v3716_v15, %v3473_v44  ;;  %v3722_v8 = vsel %vm3690_vm9, %v3689_v48, %v3383_v55 }
 0x43b   :  { %v3475_v4 = vpop.permute.xlu1 %3474  ;;  %v3477_v1 = vpop.permute.xlu0 %3476 }
 0x43c   :  { %v3751_v22 = vsel %vm3723_vm10, %v3718_v25, %v3475_v4  ;;  %v3753_v13 = vsel %vm3723_vm10, %v3720_v40, %v3477_v1 }
 0x43d   :  { %v4830_v28 = vcombine.low %v3749_v21, %v3751_v22 }
 0x43f   :  { %v3479_v14 = vpop.permute.xlu1 %3478  ;;  %4933 = vmatprep.mubr.msk.bf16.mxu1 %vm3832_vm11, %v4830_v28 }
 0x440   :  { %v3755_v53 = vsel %vm3723_vm10, %v3722_v8, %v3479_v14 }
 0x441   :  { %v4831_v39 = vcombine.low %v3753_v13, %v3755_v53 }
 0x443   :  { %4934 = vmatmul.mubr.msk.bf16.gmra.mrb[12].mxu1 %vm3832_vm11, %v4831_v39 }
 0x4c7   :  { %v4923_v61 = vpop.f32.mrb[0].mxu1 }
 0x4c8   :  { %v3895_v23 = vpop.f32.mrb[1].mxu1  ;;  %v3961_v34 = vsel %vm1239_vm2, %v4923_v61, 0.0 }
 0x4c9   :  { %v4924_v45 = vpop.f32.mrb[2].mxu1  ;;  %v3958_v58 = vsel %vm1239_vm2, %v3895_v23, 0.0 }
 0x4ca   :  { %v3898_v30 = vpop.f32.mrb[3].mxu1  ;;  %v3963_v10 = vsel %vm1239_vm2, %v4924_v45, 0.0 }
 0x4cb   :  { %v3959_v9 = vsel %vm1239_vm2, %v3898_v30, 0.0 }
 0x4cc   :  { %v3960_v5 = vadd.f32 %v3959_v9, %v3958_v58 }
 0x4ce   :  { %v3962_v59 = vadd.f32 %v3961_v34, %v3960_v5 }
 0x4d0   :  { %v3964_v63 = vadd.f32 %v3963_v10, %v3962_v59 }
 0x4dc   :  { %v4927_v46 = vpop.f32.mrb[4].mxu1 }
 0x4dd   :  { %v3911_v17 = vpop.f32.mrb[5].mxu1  ;;  %v3969_v26 = vsel %vm1239_vm2, %v4927_v46, 0.0 }
 0x4de   :  { %v3965_v11 = vsel %vm1239_vm2, %v3911_v17, 0.0  ;;  %v4928_v41 = vpop.f32.mrb[6].mxu1 }
 0x4df   :  { %v3966_v50 = vadd.f32 %v3965_v11, %v3964_v63  ;;  %v3914_v2 = vpop.f32.mrb[7].mxu1  ;;  %v3971_v49 = vsel %vm1239_vm2, %v4928_v41, 0.0 }
 0x4e0   :  { %v3967_v33 = vsel %vm1239_vm2, %v3914_v2, 0.0 }
 0x4e1   :  { %v3968_v24 = vadd.f32 %v3967_v33, %v3966_v50 }
 0x4e3   :  { %v3970_v56 = vadd.f32 %v3969_v26, %v3968_v24 }
 0x4e5   :  { %v3972_v38 = vadd.f32 %v3971_v49, %v3970_v56 }
 0x4f3   :  { %v4931_v20 = vpop.f32.mrb[8].mxu1 }
 0x4f4   :  { %v3927_v47 = vpop.f32.mrb[9].mxu1  ;;  %v3977_v16 = vsel %vm1239_vm2, %v4931_v20, 0.0 }
 0x4f5   :  { %v3973_v31 = vsel %vm1239_vm2, %v3927_v47, 0.0  ;;  %v4932_v62 = vpop.f32.mrb[10].mxu1 }
 0x4f6   :  { %v3974_v52 = vadd.f32 %v3973_v31, %v3972_v38  ;;  %v3930_v29 = vpop.f32.mrb[11].mxu1  ;;  %v3979_v6 = vsel %vm1239_vm2, %v4932_v62, 0.0  ;;  %v4281_v38 = vpop.permute.xlu0 %4280 }
 0x4f7   :  { %v3975_v19 = vsel %vm1239_vm2, %v3930_v29, 0.0 }
 0x4f8   :  { %v3976_v42 = vadd.f32 %v3975_v19, %v3974_v52 }
 0x4fa   :  { %v3978_v18 = vadd.f32 %v3977_v16, %v3976_v42 }
 0x4fc   :  { %v3980_v3 = vadd.f32 %v3979_v6, %v3978_v18  ;;  %v4285_v6 = vpop.permute.xlu0 %4284 }
 0x516   :  { %v4935_v55 = vpop.f32.mrb[12].mxu1 }
 0x517   :  { %v3943_v44 = vpop.f32.mrb[13].mxu1  ;;  %v3985_v7 = vsel %vm1239_vm2, %v4935_v55, 0.0 }
 0x518   :  { %v3981_v57 = vsel %vm1239_vm2, %v3943_v44, 0.0  ;;  %v4936_v36 = vpop.f32.mrb[14].mxu1 }
 0x519   :  { %v3982_v51 = vadd.f32 %v3981_v57, %v3980_v3  ;;  %v3946_v54 = vpop.f32.mrb[15].mxu1  ;;  %v3987_v37 = vsel %vm1239_vm2, %v4936_v36, 0.0 }
 0x51a   :  { %v3983_v35 = vsel %vm1239_vm2, %v3946_v54, 0.0 }
 0x51b   :  { %v3984_v60 = vadd.f32 %v3983_v35, %v3982_v51 }
 0x51d   :  { %v3986_v32 = vadd.f32 %v3985_v7, %v3984_v60 }
 0x51f   :  { %v3988_v12 = vadd.f32 %v3987_v37, %v3986_v32  ;;  %v4289_v32 = vpop.permute.xlu0 %4288 }
 0x521   :  { %v3989_v15 = vrot.slane %v3988_v12, 4 }
 0x523   :  { %v3990_v25 = vadd.f32 %v3989_v15, %v3988_v12 }
 0x525   :  { %v3991_v4 = vrot.slane %v3990_v25, 2 }
 0x527   :  { %v3992_v21 = vadd.f32 %v3991_v4, %v3990_v25 }
 0x529   :  { %v3993_v22 = vrot.slane %v3992_v21, 1 }
 0x52b   :  { %v3994_v0 = vadd.f32 %v3993_v22, %v3992_v21 }
 0x52d   :  { %v3995_v27 = vmul.f32 0.0078125, %v3994_v0 }
 0x52f   :  { %v7778_v28 = vsub.f32 %v3895_v23, %v3995_v27  ;;  %v7780_v1 = vsub.f32 %v3898_v30, %v3995_v27  ;;  %v7782_v43 = vsub.f32 %v4923_v61, %v3995_v27  ;;  %v7784_v48 = vsub.f32 %v4924_v45, %v3995_v27 }
 0x530   :  { %v7786_v40 = vsub.f32 %v3911_v17, %v3995_v27  ;;  %v7788_v8 = vsub.f32 %v3914_v2, %v3995_v27  ;;  %v7790_v14 = vsub.f32 %v4927_v46, %v3995_v27  ;;  %v7792_v13 = vsub.f32 %v4928_v41, %v3995_v27 }
 0x531   :  { %v7794_v53 = vsub.f32 %v3927_v47, %v3995_v27  ;;  %v7796_v39 = vsub.f32 %v3930_v29, %v3995_v27  ;;  %v7798_v23 = vsub.f32 %v4931_v20, %v3995_v27  ;;  %v7800_v30 = vsub.f32 %v4932_v62, %v3995_v27  ;;  %v4283_v20 = vpop.permute.xlu1 %4282 }
 0x532   :  { %v7802_v61 = vsub.f32 %v3943_v44, %v3995_v27  ;;  %v7804_v45 = vsub.f32 %v3946_v54, %v3995_v27  ;;  %v7806_v58 = vsub.f32 %v4935_v55, %v3995_v27  ;;  %v7808_v9 = vsub.f32 %v4936_v36, %v3995_v27 }
 0x533   :  { %v4012_v5 = vmul.f32 %v7778_v28, %v7778_v28  ;;  %v4013_v34 = vmul.f32 %v7780_v1, %v7780_v1  ;;  %v4014_v59 = vmul.f32 %v7782_v43, %v7782_v43  ;;  %v4015_v10 = vmul.f32 %v7784_v48, %v7784_v48 }
 0x534   :  { %v4016_v11 = vmul.f32 %v7786_v40, %v7786_v40  ;;  %v4017_v2 = vmul.f32 %v7788_v8, %v7788_v8  ;;  %v4018_v26 = vmul.f32 %v7790_v14, %v7790_v14  ;;  %v4019_v47 = vmul.f32 %v7792_v13, %v7792_v13 }
 0x535   :  { %v4028_v63 = vsel %vm1239_vm2, %v4012_v5, 0.0  ;;  %v4029_v46 = vsel %vm1239_vm2, %v4013_v34, 0.0  ;;  %v4031_v41 = vsel %vm1239_vm2, %v4014_v59, 0.0  ;;  %v4033_v33 = vsel %vm1239_vm2, %v4015_v10, 0.0  ;;  %v4287_v3 = vpop.permute.xlu1 %4286  ;;  %v4293_v34 = vpop.permute.xlu0 %4292 }
 0x536   :  { %v4030_v17 = vadd.f32 %v4029_v46, %v4028_v63  ;;  %v4035_v56 = vsel %vm1239_vm2, %v4016_v11, 0.0  ;;  %v4037_v31 = vsel %vm1239_vm2, %v4017_v2, 0.0  ;;  %v4020_v52 = vmul.f32 %v7794_v53, %v7794_v53 }
 0x537   :  { %v4039_v29 = vsel %vm1239_vm2, %v4018_v26, 0.0  ;;  %v4021_v42 = vmul.f32 %v7796_v39, %v7796_v39  ;;  %v4041_v16 = vsel %vm1239_vm2, %v4019_v47, 0.0  ;;  %v4022_v55 = vmul.f32 %v7798_v23, %v7798_v23 }
 0x538   :  { %v4032_v50 = vadd.f32 %v4031_v41, %v4030_v17  ;;  %v4043_v44 = vsel %vm1239_vm2, %v4020_v52, 0.0  ;;  %v4023_v36 = vmul.f32 %v7800_v30, %v7800_v30  ;;  %v4024_v35 = vmul.f32 %v7802_v61, %v7802_v61 }
 0x539   :  { %v4045_v51 = vsel %vm1239_vm2, %v4021_v42, 0.0  ;;  %v4047_v60 = vsel %vm1239_vm2, %v4022_v55, 0.0  ;;  %v4291_v37 = vpop.permute.xlu1 %4290  ;;  %v4025_v12 = vmul.f32 %v7804_v45, %v7804_v45  ;;  %v4026_v4 = vmul.f32 %v7806_v58, %v7806_v58  ;;  %v4297_v41 = vpop.permute.xlu0 %4296 }
 0x53a   :  { %v4034_v24 = vadd.f32 %v4033_v33, %v4032_v50  ;;  %v4049_v15 = vsel %vm1239_vm2, %v4023_v36, 0.0  ;;  %v4051_v21 = vsel %vm1239_vm2, %v4024_v35, 0.0  ;;  %v4027_v0 = vmul.f32 %v7808_v9, %v7808_v9  ;;  %v4848_v36 = vld [vmem:[%s8004_s8] ss:$0 sm:$0xff] }
 0x53b   :  { %v4053_v27 = vsel %vm1239_vm2, %v4025_v12, 0.0  ;;  %v4055_v10 = vsel %vm1239_vm2, %v4026_v4, 0.0 }
 0x53c   :  { %v4036_v49 = vadd.f32 %v4035_v56, %v4034_v24  ;;  %v4057_v46 = vsel %vm1239_vm2, %v4027_v0, 0.0 }
 0x53d   :  { %v4295_v59 = vpop.permute.xlu1 %4294  ;;  %v4301_v26 = vpop.permute.xlu0 %4300 }
 0x53e   :  { %v4038_v62 = vadd.f32 %v4037_v31, %v4036_v49 }
 0x540   :  { %v4040_v19 = vadd.f32 %v4039_v29, %v4038_v62 }
 0x541   :  { %v4299_v50 = vpop.permute.xlu1 %4298  ;;  %v4305_v62 = vpop.permute.xlu0 %4304 }
 0x542   :  { %v4042_v18 = vadd.f32 %v4041_v16, %v4040_v19  ;;  %v4847_v19 = vld [vmem:[%s8003_s7] ss:$0 sm:$0xff] }
 0x543   :  { %v4328_v42 = vmul.f32 %v4847_v19, %v4281_v38  ;;  %v4329_v16 = vmul.f32 %v4847_v19, %v4283_v20  ;;  %v4331_v55 = vmul.f32 %v4847_v19, %v4287_v3  ;;  %v4334_v35 = vmul.f32 %v4847_v19, %v4293_v34 }
 0x544   :  { %v4044_v57 = vadd.f32 %v4043_v44, %v4042_v18  ;;  %v4330_v18 = vmul.f32 %v4847_v19, %v4285_v6  ;;  %v4337_v12 = vmul.f32 %v4847_v19, %v4299_v50  ;;  %v4340_v4 = vmul.f32 %v4847_v19, %v4305_v62 }
 0x545   :  { %v4303_v56 = vpop.permute.xlu1 %4302  ;;  %v4309_v44 = vpop.permute.xlu0 %4308  ;;  %v7864_v6 = vadd.f32 %v4848_v36, %v4328_v42  ;;  %v7866_v3 = vadd.f32 %v4848_v36, %v4329_v16  ;;  %v7870_v0 = vadd.f32 %v4848_v36, %v4331_v55 }
 0x546   :  { %v4046_v54 = vadd.f32 %v4045_v51, %v4044_v57  ;;  %v4332_v51 = vmul.f32 %v4847_v19, %v4289_v32  ;;  %v4342_v38 = vmul.f32 %v4847_v19, %v4309_v44 }
 0x548   :  { %v4048_v7 = vadd.f32 %v4047_v60, %v4046_v54  ;;  %v4333_v54 = vmul.f32 %v4847_v19, %v4291_v37  ;;  %v4335_v60 = vmul.f32 %v4847_v19, %v4295_v59  ;;  %v7872_v32 = vadd.f32 %v4848_v36, %v4332_v51 }
 0x549   :  { %v4307_v52 = vpop.permute.xlu1 %4306  ;;  %v7882_v59 = vadd.f32 %v4848_v36, %v4337_v12 }
 0x54a   :  { %v4050_v25 = vadd.f32 %v4049_v15, %v4048_v7  ;;  %v4336_v7 = vmul.f32 %v4847_v19, %v4297_v41  ;;  %v4338_v15 = vmul.f32 %v4847_v19, %v4301_v26  ;;  %v7874_v37 = vadd.f32 %v4848_v36, %v4333_v54 }
 0x54b   :  { %v7892_v41 = vadd.f32 %v4848_v36, %v4342_v38 }
 0x54c   :  { %v4052_v22 = vadd.f32 %v4051_v21, %v4050_v25  ;;  %v4339_v25 = vmul.f32 %v4847_v19, %v4303_v56  ;;  %v4341_v21 = vmul.f32 %v4847_v19, %v4307_v52  ;;  %v7880_v34 = vadd.f32 %v4848_v36, %v4336_v7  ;;  %v4845_v56 = vld [vmem:[%s8005_s5] ss:$0 sm:$0xff] }
 0x54d   :  { %v4311_v57 = vpop.permute.xlu1 %4310 }
 0x54e   :  { %v4054_v5 = vadd.f32 %v4053_v27, %v4052_v22  ;;  %v4343_v20 = vmul.f32 %v4847_v19, %v4311_v57  ;;  %v7868_v22 = vadd.f32 %v4848_v36, %v4330_v18  ;;  %v7876_v27 = vadd.f32 %v4848_v36, %v4334_v35 }
 0x550   :  { %v4056_v63 = vadd.f32 %v4055_v10, %v4054_v5  ;;  %v7878_v5 = vadd.f32 %v4848_v36, %v4335_v60  ;;  %v7884_v10 = vadd.f32 %v4848_v36, %v4338_v15  ;;  %v7894_v50 = vadd.f32 %v4848_v36, %v4343_v20 }
 0x552   :  { %v4058_v17 = vadd.f32 %v4057_v46, %v4056_v63  ;;  %v7886_v63 = vadd.f32 %v4848_v36, %v4339_v25 }
 0x554   :  { %v4059_v11 = vrot.slane %v4058_v17, 4 }
 0x556   :  { %v4060_v2 = vadd.f32 %v4059_v11, %v4058_v17  ;;  %v7888_v17 = vadd.f32 %v4848_v36, %v4340_v4  ;;  %v7890_v11 = vadd.f32 %v4848_v36, %v4341_v21 }
 0x558   :  { %v4061_v33 = vrot.slane %v4060_v2, 2 }
 0x55a   :  { %v4062_v24 = vadd.f32 %v4061_v33, %v4060_v2 }
 0x55c   :  { %v4063_v49 = vrot.slane %v4062_v24, 1 }
 0x55e   :  { %v4064_v47 = vadd.f32 %v4063_v49, %v4062_v24 }
 0x560   :  { %v4065_v31 = vmul.f32 0.0078125, %v4064_v47 }
 0x562   :  { %v4067_v29 = vadd.f32 1e-05, %v4065_v31 }
 0x564   :  { %5209 = vrsqrt.f32 %v4067_v29 }
 0x56e   :  { %v5210_v46 = vpop.eup %5209 }
 0x56f   :  { %v4069_v2 = vmul.f32 %v5210_v46, %v7778_v28  ;;  %v4070_v33 = vmul.f32 %v5210_v46, %v7780_v1  ;;  %v4071_v24 = vmul.f32 %v5210_v46, %v7782_v43  ;;  %v4072_v26 = vmul.f32 %v5210_v46, %v7784_v48 }
 0x570   :  { %v4073_v49 = vmul.f32 %v5210_v46, %v7786_v40  ;;  %v4074_v47 = vmul.f32 %v5210_v46, %v7788_v8  ;;  %v4075_v31 = vmul.f32 %v5210_v46, %v7790_v14  ;;  %v4076_v62 = vmul.f32 %v5210_v46, %v7792_v13 }
 0x571   :  { %v4077_v28 = vmul.f32 %v5210_v46, %v7794_v53  ;;  %v4078_v1 = vmul.f32 %v5210_v46, %v7796_v39  ;;  %v4079_v43 = vmul.f32 %v5210_v46, %v7798_v23  ;;  %v4080_v48 = vmul.f32 %v5210_v46, %v7800_v30  ;;  %v4846_v23 = vld [vmem:[%s8006_s6] ss:$0 sm:$0xff] }
 0x572   :  { %v4081_v52 = vmul.f32 %v5210_v46, %v7802_v61  ;;  %v4082_v29 = vmul.f32 %v5210_v46, %v7804_v45  ;;  %v4083_v40 = vmul.f32 %v5210_v46, %v7806_v58  ;;  %v4084_v8 = vmul.f32 %v5210_v46, %v7808_v9 }
 0x573   :  { %v4091_v19 = vmul.f32 %v4845_v56, %v4069_v2  ;;  %v4092_v14 = vmul.f32 %v4845_v56, %v4070_v33  ;;  %v4093_v42 = vmul.f32 %v4845_v56, %v4071_v24  ;;  %v4094_v13 = vmul.f32 %v4845_v56, %v4072_v26 }
 0x574   :  { %v4095_v16 = vmul.f32 %v4845_v56, %v4073_v49  ;;  %v4096_v53 = vmul.f32 %v4845_v56, %v4074_v47  ;;  %v4097_v18 = vmul.f32 %v4845_v56, %v4075_v31  ;;  %v4098_v39 = vmul.f32 %v4845_v56, %v4076_v62 }
 0x575   :  { %v4099_v30 = vmul.f32 %v4845_v56, %v4077_v28  ;;  %v4100_v61 = vmul.f32 %v4845_v56, %v4078_v1  ;;  %v4101_v55 = vmul.f32 %v4845_v56, %v4079_v43  ;;  %v4102_v45 = vmul.f32 %v4845_v56, %v4080_v48 }
 0x576   :  { %v4103_v44 = vmul.f32 %v4845_v56, %v4081_v52  ;;  %v4104_v58 = vmul.f32 %v4845_v56, %v4082_v29  ;;  %v4105_v57 = vmul.f32 %v4845_v56, %v4083_v40  ;;  %v4106_v9 = vmul.f32 %v4845_v56, %v4084_v8 }
 0x577   :  { %v4114_v36 = vadd.f32 %v4846_v23, %v4091_v19  ;;  %v4115_v51 = vadd.f32 %v4846_v23, %v4092_v14  ;;  %v4116_v54 = vadd.f32 %v4846_v23, %v4093_v42  ;;  %v4117_v35 = vadd.f32 %v4846_v23, %v4094_v13 }
 0x578   :  { %v4118_v60 = vadd.f32 %v4846_v23, %v4095_v16  ;;  %v4119_v7 = vadd.f32 %v4846_v23, %v4096_v53  ;;  %v4120_v12 = vadd.f32 %v4846_v23, %v4097_v18  ;;  %v4121_v15 = vadd.f32 %v4846_v23, %v4098_v39 }
 0x579   :  { %v4122_v25 = vadd.f32 %v4846_v23, %v4099_v30  ;;  %v4123_v4 = vadd.f32 %v4846_v23, %v4100_v61  ;;  %v4124_v21 = vadd.f32 %v4846_v23, %v4101_v55  ;;  %v4125_v38 = vadd.f32 %v4846_v23, %v4102_v45 }
 0x57a   :  { %v4126_v20 = vadd.f32 %v4846_v23, %v4103_v44  ;;  %v4127_v46 = vadd.f32 %v4846_v23, %v4104_v58  ;;  %v4128_v2 = vadd.f32 %v4846_v23, %v4105_v57  ;;  %v4129_v33 = vadd.f32 %v4846_v23, %v4106_v9 }
 0x57b   :  { %v4367_v24 = vadd.f32 %v7864_v6, %v4114_v36  ;;  %v4368_v26 = vadd.f32 %v7866_v3, %v4115_v51  ;;  %v4369_v56 = vadd.f32 %v7868_v22, %v4116_v54  ;;  %v4370_v49 = vadd.f32 %v7870_v0, %v4117_v35 }
 0x57c   :  { %v4371_v47 = vadd.f32 %v7872_v32, %v4118_v60  ;;  %v4372_v31 = vadd.f32 %v7874_v37, %v4119_v7  ;;  %v4373_v62 = vadd.f32 %v7876_v27, %v4120_v12  ;;  %v4374_v28 = vadd.f32 %v7878_v5, %v4121_v15 }
 0x57d   :  { %v4375_v1 = vadd.f32 %v7880_v34, %v4122_v25  ;;  %v4376_v43 = vadd.f32 %v7882_v59, %v4123_v4  ;;  %v4377_v6 = vadd.f32 %v7884_v10, %v4124_v21  ;;  %v4378_v3 = vadd.f32 %v7886_v63, %v4125_v38 }
 0x57e   :  { %v4379_v22 = vadd.f32 %v7888_v17, %v4126_v20  ;;  %v4380_v0 = vadd.f32 %v7890_v11, %v4127_v46  ;;  %v4381_v32 = vadd.f32 %v7892_v41, %v4128_v2  ;;  %v4382_v37 = vadd.f32 %v7894_v50, %v4129_v33 }
 0x57f   :  { %v4383_v48 = vmax.f32 %v4367_v24, 0.0  ;;  %v4384_v27 = vmax.f32 %v4368_v26, 0.0  ;;  %v4385_v52 = vmax.f32 %v4369_v56, 0.0  ;;  %v4386_v5 = vmax.f32 %v4370_v49, 0.0 }
 0x580   :  { %v4387_v29 = vmax.f32 %v4371_v47, 0.0  ;;  %v4388_v34 = vmax.f32 %v4372_v31, 0.0  ;;  %v4389_v40 = vmax.f32 %v4373_v62, 0.0  ;;  %v4390_v59 = vmax.f32 %v4374_v28, 0.0 }
 0x581   :  { %v4391_v8 = vmax.f32 %v4375_v1, 0.0  ;;  %v4392_v10 = vmax.f32 %v4376_v43, 0.0  ;;  %v4393_v19 = vmax.f32 %v4377_v6, 0.0  ;;  %v4394_v63 = vmax.f32 %v4378_v3, 0.0  ;;  %4399 = vst.msk [vmem:[%s8007_s9] sm:$0xff] %vm1239_vm2, %v4383_v48  ;;  %4400 = vst.msk [vmem:[%s8007_s9 + $0x8] sm:$0xff] %vm1239_vm2, %v4384_v27 }
 0x582   :  { %4401 = vst.msk [vmem:[%s8007_s9 + $0x10] sm:$0xff] %vm1239_vm2, %v4385_v52  ;;  %4402 = vst.msk [vmem:[%s8007_s9 + $0x18] sm:$0xff] %vm1239_vm2, %v4386_v5  ;;  %v4395_v17 = vmax.f32 %v4379_v22, 0.0  ;;  %v4396_v11 = vmax.f32 %v4380_v0, 0.0  ;;  %v4397_v41 = vmax.f32 %v4381_v32, 0.0  ;;  %v4398_v50 = vmax.f32 %v4382_v37, 0.0 }
 0x583   :  { %4403 = vst.msk [vmem:[%s8007_s9 + $0x20] sm:$0xff] %vm1239_vm2, %v4387_v29  ;;  %4404 = vst.msk [vmem:[%s8007_s9 + $0x28] sm:$0xff] %vm1239_vm2, %v4388_v34 }
 0x584   :  { %4405 = vst.msk [vmem:[%s8007_s9 + $0x30] sm:$0xff] %vm1239_vm2, %v4389_v40  ;;  %4406 = vst.msk [vmem:[%s8007_s9 + $0x38] sm:$0xff] %vm1239_vm2, %v4390_v59 }
 0x585   :  { %4407 = vst.msk [vmem:[%s8007_s9 + $0x40] sm:$0xff] %vm1239_vm2, %v4391_v8  ;;  %4408 = vst.msk [vmem:[%s8007_s9 + $0x48] sm:$0xff] %vm1239_vm2, %v4392_v10 }
 0x586   :  { %4409 = vst.msk [vmem:[%s8007_s9 + $0x50] sm:$0xff] %vm1239_vm2, %v4393_v19  ;;  %4410 = vst.msk [vmem:[%s8007_s9 + $0x58] sm:$0xff] %vm1239_vm2, %v4394_v63 }
 0x587   :  { %4411 = vst.msk [vmem:[%s8007_s9 + $0x60] sm:$0xff] %vm1239_vm2, %v4395_v17  ;;  %4412 = vst.msk [vmem:[%s8007_s9 + $0x68] sm:$0xff] %vm1239_vm2, %v4396_v11 }
 0x588   :  { %4413 = vst.msk [vmem:[%s8007_s9 + $0x70] sm:$0xff] %vm1239_vm2, %v4397_v41  ;;  %4414 = vst.msk [vmem:[%s8007_s9 + $0x78] sm:$0xff] %vm1239_vm2, %v4398_v50 }

</bundles_post_ra>
